<compile_context>
chip_gen: v6e
topology: v6e:2x2x1
jax: 0.10.0
libtpu: 0.0.40
codegen_flags: <defaults>
</compile_context>

<pallas_src>
import functools
import numpy as np
import jax
import jax.numpy as jnp
from jax import lax
from jax.experimental import pallas as pl
from jax.experimental.pallas import tpu as pltpu


def _round_up(v, m):
    return (v + m - 1) // m * m


# ----------------------------------------------------------------------------
# Pallas kernel: whole bottleneck for one batch element.
# refs:
#   x_ref   (1, HW, CP)   f32  input rows, channels zero-padded to CP
#   w1_ref  (CP, CP)      bf16 conv1 weight with BN1 scale folded in
#   b1_ref  (1, CP)       f32  BN1 shift
#   w2_ref  (9*CP, CP)    bf16 conv2 tap weights (im2col layout), BN2 folded
#   b2_ref  (1, CP)       f32  BN2 shift
#   w3_ref  (CP, CP)      bf16 conv3 weight with BN3 scale folded in
#   b3_ref  (1, CP)       f32  BN3 shift
#   ew_ref  (k, CP)       f32  ECA conv1d taps, broadcast across lanes
#   out_ref (1, HW, CP)   f32
# ----------------------------------------------------------------------------
def _eca_bottleneck_kernel(x_ref, w1_ref, b1_ref, w2_ref, b2_ref, w3_ref,
                           b3_ref, ew_ref, out_ref, *, H, W, k_size):
    HW = H * W
    CP = x_ref.shape[-1]

    x = x_ref[0]                                        # (HW, CP) f32
    xb = x.astype(jnp.bfloat16)

    # ---- conv1 (1x1, BN1 folded) + relu --------------------------------
    h1 = jnp.dot(xb, w1_ref[...], preferred_element_type=jnp.float32)
    h1 = jnp.maximum(h1 + b1_ref[...], 0.0)             # (HW, CP) f32
    h1b = h1.astype(jnp.bfloat16)                       # single cast for im2col

    # ---- conv2 (3x3, pad=1, BN2 folded) + relu -------------------------
    # Zero-pad W+1 rows on each side so every tap offset d = oy*W + ox is a
    # static in-bounds slice; a per-column mask handles the left/right image
    # borders (row wrap-around).  All tap plumbing stays in bf16; one fused
    # (HW, 9*CP) @ (9*CP, CP) MXU matmul accumulates in f32.
    zrow = jnp.zeros((W + 1, CP), jnp.bfloat16)
    hp = jnp.concatenate([zrow, h1b, zrow], axis=0)     # (HW + 2W + 2, CP) bf16
    col = lax.broadcasted_iota(jnp.int32, (HW, 1), 0) % W
    not_left = col >= 1                                  # (HW, 1) bool
    not_right = col <= W - 2                             # (HW, 1) bool
    taps = []
    for oy in (-1, 0, 1):
        for ox in (-1, 0, 1):
            d = oy * W + ox
            s = hp[W + 1 + d: W + 1 + d + HW, :]        # (HW, CP) static slice
            if ox == -1:
                s = jnp.where(not_left, s, jnp.bfloat16(0))
            elif ox == 1:
                s = jnp.where(not_right, s, jnp.bfloat16(0))
            taps.append(s)
    im2col = jnp.concatenate(taps, axis=1)              # (HW, 9*CP) bf16
    h2 = jnp.dot(im2col, w2_ref[...], preferred_element_type=jnp.float32)
    h2 = jnp.maximum(h2 + b2_ref[...], 0.0)             # (HW, CP) f32

    # ---- conv3 (1x1, BN3 folded) ---------------------------------------
    h3 = jnp.dot(h2.astype(jnp.bfloat16), w3_ref[...],
                 preferred_element_type=jnp.float32)
    h3 = h3 + b3_ref[...]                               # (HW, CP) f32
    # NOTE: padded channels (>= Cout) of h3 are exactly zero (zero weight
    # columns, zero bias), so the ECA/residual path below is padding-safe.

    # ---- ECA: GAP -> 1-D channel conv (k shifted adds) -> sigmoid -------
    y = jnp.mean(h3, axis=0, keepdims=True)             # (1, CP) f32
    pad = (k_size - 1) // 2
    if pad > 0:
        zl = jnp.zeros((1, pad), jnp.float32)
        yp = jnp.concatenate([zl, y, zl], axis=1)       # (1, CP + 2*pad)
    else:
        yp = y
    ew = ew_ref[...]                                    # (k, CP)
    logits = jnp.zeros((1, CP), jnp.float32)
    for t in range(k_size):
        logits = logits + ew[t:t + 1, :] * yp[:, t:t + CP]
    attn = jax.nn.sigmoid(logits)                       # (1, CP)

    # ---- scale, residual (identity), relu ------------------------------
    out = jnp.maximum(h3 * attn + x, 0.0)
    out_ref[0] = out.astype(out_ref.dtype)


# ----------------------------------------------------------------------------
# Wrapper: BN folding, weight packing, lane padding, pallas_call.
# ----------------------------------------------------------------------------
def _fold_bn(gamma, beta, mean, var, eps=1e-5):
    scale = gamma / jnp.sqrt(var + eps)
    shift = beta - mean * scale
    return scale, shift


def eca_bottleneck_pallas(x_nchw, params):
    f32 = jnp.float32
    N, Cin, H, W = x_nchw.shape
    P = params['w1'].shape[0]          # planes
    Cout = params['w3'].shape[0]       # planes * 4
    k_size = params['w_eca'].shape[0]
    assert Cin == Cout, "identity residual requires inplanes == planes*4"
    HW = H * W
    CP = _round_up(max(Cin, P, Cout), 128)   # lane-dense padded channel dim

    # BN scales folded into conv weights; only shifts remain as biases.
    s1, t1 = _fold_bn(*params['bn1'])
    s2, t2 = _fold_bn(*params['bn2'])
    s3, t3 = _fold_bn(*params['bn3'])

    # conv1: (P, Cin, 1, 1) -> (Cin, P) scaled, padded to (CP, CP), bf16
    w1_eff = (params['w1'][:, :, 0, 0] * s1[:, None]).T           # (Cin, P)
    w1_pad = jnp.zeros((CP, CP), f32).at[:Cin, :P].set(w1_eff).astype(jnp.bfloat16)
    b1_pad = jnp.zeros((1, CP), f32).at[0, :P].set(t1)

    # conv2: (P, P, 3, 3) -> per-tap (in, out) blocks stacked as (9*CP, CP)
    w2_scaled = params['w2'] * s2[:, None, None, None]            # scale out dim
    w2_taps = jnp.transpose(w2_scaled, (2, 3, 1, 0)).reshape(9, P, P)  # (k, in, out)
    w2_big = jnp.zeros((9 * CP, CP), f32)
    for k in range(9):
        w2_big = w2_big.at[k * CP:k * CP + P, :P].set(w2_taps[k])
    w2_big = w2_big.astype(jnp.bfloat16)
    b2_pad = jnp.zeros((1, CP), f32).at[0, :P].set(t2)

    # conv3: (Cout, P, 1, 1) -> (P, Cout) scaled, padded to (CP, CP), bf16
    w3_eff = (params['w3'][:, :, 0, 0] * s3[:, None]).T           # (P, Cout)
    w3_pad = jnp.zeros((CP, CP), f32).at[:P, :Cout].set(w3_eff).astype(jnp.bfloat16)
    b3_pad = jnp.zeros((1, CP), f32).at[0, :Cout].set(t3)

    # ECA 1-D conv taps broadcast across lanes (no dense banded matrix)
    ew = jnp.broadcast_to(params['w_eca'].astype(f32)[:, None], (k_size, CP))

    # NCHW -> (N, HW, CP) with zero-padded channels
    x_rows = jnp.transpose(x_nchw, (0, 2, 3, 1)).reshape(N, HW, Cin)
    x_pad = jnp.pad(x_rows, ((0, 0), (0, 0), (0, CP - Cin)))

    kernel = functools.partial(_eca_bottleneck_kernel, H=H, W=W, k_size=k_size)
    rep2 = lambda n: (0, 0)

    out_pad = pl.pallas_call(
        kernel,
        out_shape=jax.ShapeDtypeStruct((N, HW, CP), x_nchw.dtype),
        grid_spec=pltpu.PrefetchScalarGridSpec(
            num_scalar_prefetch=0,
            grid=(N,),
            in_specs=[
                pl.BlockSpec((1, HW, CP), lambda n: (n, 0, 0)),   # x
                pl.BlockSpec((CP, CP), rep2),                     # w1
                pl.BlockSpec((1, CP), rep2),                      # b1
                pl.BlockSpec((9 * CP, CP), rep2),                 # w2 (im2col)
                pl.BlockSpec((1, CP), rep2),                      # b2
                pl.BlockSpec((CP, CP), rep2),                     # w3
                pl.BlockSpec((1, CP), rep2),                      # b3
                pl.BlockSpec((k_size, CP), rep2),                 # eca taps
            ],
            out_specs=pl.BlockSpec((1, HW, CP), lambda n: (n, 0, 0)),
        ),
        compiler_params=pltpu.CompilerParams(
            dimension_semantics=("parallel",),
            vmem_limit_bytes=32 * 1024 * 1024),
    )(x_pad, w1_pad, b1_pad, w2_big, b2_pad, w3_pad, b3_pad, ew)

    # (N, HW, CP) -> NCHW, dropping the channel padding
    out_rows = out_pad[:, :, :Cout]
    return jnp.transpose(out_rows.reshape(N, H, W, Cout), (0, 3, 1, 2))


# ----------------------------------------------------------------------------
# Pure-JAX reference mirroring the PyTorch forward (eval-mode BN)
# ----------------------------------------------------------------------------
def eca_bottleneck_reference(x, p):
    def bn(o, gbmv, eps=1e-5):
        g, b, m, v = gbmv
        sh = lambda a: a[None, :, None, None]
        return (o - sh(m)) / jnp.sqrt(sh(v) + eps) * sh(g) + sh(b)

    dn = ('NCHW', 'OIHW', 'NCHW')
    o = lax.conv_general_dilated(x, p['w1'], (1, 1), 'VALID', dimension_numbers=dn)
    o = jnp.maximum(bn(o, p['bn1']), 0.0)
    o = lax.conv_general_dilated(o, p['w2'], (1, 1), ((1, 1), (1, 1)),
                                 dimension_numbers=dn)
    o = jnp.maximum(bn(o, p['bn2']), 0.0)
    o = lax.conv_general_dilated(o, p['w3'], (1, 1), 'VALID', dimension_numbers=dn)
    o = bn(o, p['bn3'])
    # ECA
    y = o.mean(axis=(2, 3))                              # (N, C)
    ks = p['w_eca'].shape[0]
    pad = (ks - 1) // 2
    yp = jnp.pad(y, ((0, 0), (pad, pad)))
    logits = sum(p['w_eca'][t] * yp[:, t:t + y.shape[1]] for t in range(ks))
    attn = jax.nn.sigmoid(logits)
    o = o * attn[:, :, None, None]
    o = jnp.maximum(o + x, 0.0)
    return o


# ----------------------------------------------------------------------------
if __name__ == "__main__":
    # inplanes = planes*4 so the identity residual is valid (stride=1,
    # downsample=None), matching the module defaults.
    N, planes, H, W, k_size = 2, 4, 16, 16, 3
    inplanes = planes * 4            # = 16 = Cout
    Cout = planes * 4

    key = jax.random.PRNGKey(0)
    ks = jax.random.split(key, 16)
    f32 = jnp.float32

    params = {
        'w1': 0.2 * jax.random.normal(ks[0], (planes, inplanes, 1, 1), f32),
        'w2': 0.2 * jax.random.normal(ks[1], (planes, planes, 3, 3), f32),
        'w3': 0.2 * jax.random.normal(ks[2], (Cout, planes, 1, 1), f32),
        'w_eca': 0.5 * jax.random.normal(ks[3], (k_size,), f32),  # Conv1d(1,1,k) weight
        'bn1': (1.0 + 0.1 * jax.random.normal(ks[4], (planes,), f32),
                0.1 * jax.random.normal(ks[5], (planes,), f32),
                0.1 * jax.random.normal(ks[6], (planes,), f32),
                0.5 + jnp.abs(jax.random.normal(ks[7], (planes,), f32)) * 0.5),
        'bn2': (1.0 + 0.1 * jax.random.normal(ks[8], (planes,), f32),
                0.1 * jax.random.normal(ks[9], (planes,), f32),
                0.1 * jax.random.normal(ks[10], (planes,), f32),
                0.5 + jnp.abs(jax.random.normal(ks[11], (planes,), f32)) * 0.5),
        'bn3': (1.0 + 0.1 * jax.random.normal(ks[12], (Cout,), f32),
                0.1 * jax.random.normal(ks[13], (Cout,), f32),
                0.1 * jax.random.normal(ks[14], (Cout,), f32),
                0.5 + jnp.abs(jax.random.normal(ks[15], (Cout,), f32)) * 0.5),
    }

    x = jax.random.normal(jax.random.PRNGKey(42), (N, inplanes, H, W), f32)

    out = eca_bottleneck_pallas(x, params)
    out = jax.block_until_ready(out)

    ref = jax.block_until_ready(eca_bottleneck_reference(x, params))
    # bf16 MXU inputs (f32 accumulation) => slightly looser tolerance vs f32 ref.
    np.testing.assert_allclose(np.asarray(out), np.asarray(ref),
                               rtol=2e-2, atol=3e-2)

    print("KERNEL_OK")
</pallas_src>

<mosaic_0001>
module attributes {stable_mosaic.version = 11 : i64} {
  func.func @_eca_bottleneck_kernel(%arg0: i32, %arg1: memref<1x256x128xf32, #tpu.memory_space<vmem>>, %arg2: memref<128x128xbf16, #tpu.memory_space<vmem>>, %arg3: memref<1x128xf32, #tpu.memory_space<vmem>>, %arg4: memref<1152x128xbf16, #tpu.memory_space<vmem>>, %arg5: memref<1x128xf32, #tpu.memory_space<vmem>>, %arg6: memref<128x128xbf16, #tpu.memory_space<vmem>>, %arg7: memref<1x128xf32, #tpu.memory_space<vmem>>, %arg8: memref<3x128xf32, #tpu.memory_space<vmem>>, %arg9: memref<1x256x128xf32, #tpu.memory_space<vmem>>) attributes {dimension_semantics = [#tpu.dimension_semantics<parallel>], iteration_bounds = array<i64: 2>, scalar_prefetch = 0 : i64, scratch_operands = 0 : i64, tpu.core_type = #tpu.core_type<tc>, window_params = [{transform_indices = @transform_0, window_bounds = array<i64: 1, 256, 128>}, {pipeline_mode = #tpu.pipeline_mode<synchronous>, transform_indices = @transform_1, window_bounds = array<i64: 128, 128>}, {pipeline_mode = #tpu.pipeline_mode<synchronous>, transform_indices = @transform_2, window_bounds = array<i64: 1, 128>}, {pipeline_mode = #tpu.pipeline_mode<synchronous>, transform_indices = @transform_3, window_bounds = array<i64: 1152, 128>}, {pipeline_mode = #tpu.pipeline_mode<synchronous>, transform_indices = @transform_4, window_bounds = array<i64: 1, 128>}, {pipeline_mode = #tpu.pipeline_mode<synchronous>, transform_indices = @transform_5, window_bounds = array<i64: 128, 128>}, {pipeline_mode = #tpu.pipeline_mode<synchronous>, transform_indices = @transform_6, window_bounds = array<i64: 1, 128>}, {pipeline_mode = #tpu.pipeline_mode<synchronous>, transform_indices = @transform_7, window_bounds = array<i64: 3, 128>}, {transform_indices = @transform_8, window_bounds = array<i64: 1, 256, 128>}]} {
    %c0 = arith.constant 0 : index
    %c0_0 = arith.constant 0 : index
    %c0_1 = arith.constant 0 : index
    %0 = vector.load %arg1[%c0, %c0_0, %c0_1] : memref<1x256x128xf32, #tpu.memory_space<vmem>>, vector<1x256x128xf32>
    %1 = vector.shape_cast %0 : vector<1x256x128xf32> to vector<256x128xf32>
    %2 = arith.truncf %1 : vector<256x128xf32> to vector<256x128xbf16>
    %c0_2 = arith.constant 0 : index
    %c0_3 = arith.constant 0 : index
    %3 = vector.load %arg2[%c0_2, %c0_3] : memref<128x128xbf16, #tpu.memory_space<vmem>>, vector<128x128xbf16>
    %cst = arith.constant dense<0.000000e+00> : vector<256x128xf32>
    %4 = tpu.matmul %2, %3, %cst {dimension_numbers = #tpu.dot_dimension_numbers<[1], [0], [0], [1], [0, 0, 1, 1], [], []>} : vector<256x128xbf16>, vector<128x128xbf16>, vector<256x128xf32> -> vector<256x128xf32>
    %c0_4 = arith.constant 0 : index
    %c0_5 = arith.constant 0 : index
    %5 = vector.load %arg3[%c0_4, %c0_5] : memref<1x128xf32, #tpu.memory_space<vmem>>, vector<1x128xf32>
    %6 = vector.broadcast %5 : vector<1x128xf32> to vector<256x128xf32>
    %7 = arith.addf %4, %6 : vector<256x128xf32>
    %cst_6 = arith.constant 0.000000e+00 : f32
    %8 = vector.broadcast %cst_6 : f32 to vector<256x128xf32>
    %9 = arith.maximumf %7, %8 : vector<256x128xf32>
    %10 = arith.truncf %9 : vector<256x128xf32> to vector<256x128xbf16>
    %cst_7 = arith.constant 0.000000e+00 : bf16
    %11 = vector.broadcast %cst_7 : bf16 to vector<17x128xbf16>
    %12 = tpu.concatenate %11, %10, %11 in 0 : vector<17x128xbf16>, vector<256x128xbf16>, vector<17x128xbf16> -> vector<290x128xbf16>
    %13 = tpu.iota {dimensions = array<i32: 0>} : vector<256x1xi32>
    %c16_i32 = arith.constant 16 : i32
    %c0_i32 = arith.constant 0 : i32
    %14 = arith.cmpi eq, %c16_i32, %c0_i32 : i32
    %c1_i32 = arith.constant 1 : i32
    %15 = arith.select %14, %c1_i32, %c16_i32 : i32
    %16 = vector.broadcast %15 : i32 to vector<256x1xi32>
    %17 = arith.remsi %13, %16 : vector<256x1xi32>
    %c0_i32_8 = arith.constant 0 : i32
    %18 = vector.broadcast %c0_i32_8 : i32 to vector<256x1xi32>
    %19 = arith.cmpi ne, %17, %18 : vector<256x1xi32>
    %c0_i32_9 = arith.constant 0 : i32
    %20 = vector.broadcast %c0_i32_9 : i32 to vector<256x1xi32>
    %21 = arith.cmpi slt, %17, %20 : vector<256x1xi32>
    %c0_i32_10 = arith.constant 0 : i32
    %22 = arith.cmpi slt, %15, %c0_i32_10 : i32
    %23 = vector.broadcast %22 : i1 to vector<256x1xi1>
    %24 = vector.broadcast %23 : vector<256x1xi1> to vector<256x1xi1>
    %25 = arith.xori %21, %24 : vector<256x1xi1>
    %26 = arith.andi %25, %19 : vector<256x1xi1>
    %27 = vector.broadcast %15 : i32 to vector<256x1xi32>
    %28 = arith.addi %17, %27 : vector<256x1xi32>
    %29 = arith.select %26, %28, %17 : vector<256x1xi1>, vector<256x1xi32>
    %c1_i32_11 = arith.constant 1 : i32
    %30 = vector.broadcast %c1_i32_11 : i32 to vector<256x1xi32>
    %31 = arith.cmpi sge, %29, %30 : vector<256x1xi32>
    %c14_i32 = arith.constant 14 : i32
    %32 = vector.broadcast %c14_i32 : i32 to vector<256x1xi32>
    %33 = arith.cmpi sle, %29, %32 : vector<256x1xi32>
    %34 = vector.extract_strided_slice %12 {offsets = [0, 0], sizes = [256, 128], strides = [1, 1]} : vector<290x128xbf16> to vector<256x128xbf16>
    %cst_12 = arith.constant 0.000000e+00 : bf16
    %35 = vector.shape_cast %31 : vector<256x1xi1> to vector<256x1xi1>
    %36 = vector.broadcast %35 : vector<256x1xi1> to vector<256x128xi1>
    %37 = vector.broadcast %cst_12 : bf16 to vector<256x128xbf16>
    %38 = arith.select %36, %34, %37 : vector<256x128xi1>, vector<256x128xbf16>
    %39 = vector.extract_strided_slice %12 {offsets = [1, 0], sizes = [256, 128], strides = [1, 1]} : vector<290x128xbf16> to vector<256x128xbf16>
    %40 = vector.extract_strided_slice %12 {offsets = [2, 0], sizes = [256, 128], strides = [1, 1]} : vector<290x128xbf16> to vector<256x128xbf16>
    %cst_13 = arith.constant 0.000000e+00 : bf16
    %41 = vector.shape_cast %33 : vector<256x1xi1> to vector<256x1xi1>
    %42 = vector.broadcast %41 : vector<256x1xi1> to vector<256x128xi1>
    %43 = vector.broadcast %cst_13 : bf16 to vector<256x128xbf16>
    %44 = arith.select %42, %40, %43 : vector<256x128xi1>, vector<256x128xbf16>
    %45 = vector.extract_strided_slice %12 {offsets = [16, 0], sizes = [256, 128], strides = [1, 1]} : vector<290x128xbf16> to vector<256x128xbf16>
    %cst_14 = arith.constant 0.000000e+00 : bf16
    %46 = vector.shape_cast %31 : vector<256x1xi1> to vector<256x1xi1>
    %47 = vector.broadcast %46 : vector<256x1xi1> to vector<256x128xi1>
    %48 = vector.broadcast %cst_14 : bf16 to vector<256x128xbf16>
    %49 = arith.select %47, %45, %48 : vector<256x128xi1>, vector<256x128xbf16>
    %50 = vector.extract_strided_slice %12 {offsets = [17, 0], sizes = [256, 128], strides = [1, 1]} : vector<290x128xbf16> to vector<256x128xbf16>
    %51 = vector.extract_strided_slice %12 {offsets = [18, 0], sizes = [256, 128], strides = [1, 1]} : vector<290x128xbf16> to vector<256x128xbf16>
    %cst_15 = arith.constant 0.000000e+00 : bf16
    %52 = vector.shape_cast %33 : vector<256x1xi1> to vector<256x1xi1>
    %53 = vector.broadcast %52 : vector<256x1xi1> to vector<256x128xi1>
    %54 = vector.broadcast %cst_15 : bf16 to vector<256x128xbf16>
    %55 = arith.select %53, %51, %54 : vector<256x128xi1>, vector<256x128xbf16>
    %56 = vector.extract_strided_slice %12 {offsets = [32, 0], sizes = [256, 128], strides = [1, 1]} : vector<290x128xbf16> to vector<256x128xbf16>
    %cst_16 = arith.constant 0.000000e+00 : bf16
    %57 = vector.shape_cast %31 : vector<256x1xi1> to vector<256x1xi1>
    %58 = vector.broadcast %57 : vector<256x1xi1> to vector<256x128xi1>
    %59 = vector.broadcast %cst_16 : bf16 to vector<256x128xbf16>
    %60 = arith.select %58, %56, %59 : vector<256x128xi1>, vector<256x128xbf16>
    %61 = vector.extract_strided_slice %12 {offsets = [33, 0], sizes = [256, 128], strides = [1, 1]} : vector<290x128xbf16> to vector<256x128xbf16>
    %62 = vector.extract_strided_slice %12 {offsets = [34, 0], sizes = [256, 128], strides = [1, 1]} : vector<290x128xbf16> to vector<256x128xbf16>
    %cst_17 = arith.constant 0.000000e+00 : bf16
    %63 = vector.shape_cast %33 : vector<256x1xi1> to vector<256x1xi1>
    %64 = vector.broadcast %63 : vector<256x1xi1> to vector<256x128xi1>
    %65 = vector.broadcast %cst_17 : bf16 to vector<256x128xbf16>
    %66 = arith.select %64, %62, %65 : vector<256x128xi1>, vector<256x128xbf16>
    %67 = tpu.concatenate %38, %39, %44, %49, %50, %55, %60, %61, %66 in 1 : vector<256x128xbf16>, vector<256x128xbf16>, vector<256x128xbf16>, vector<256x128xbf16>, vector<256x128xbf16>, vector<256x128xbf16>, vector<256x128xbf16>, vector<256x128xbf16>, vector<256x128xbf16> -> vector<256x1152xbf16>
    %c0_18 = arith.constant 0 : index
    %c0_19 = arith.constant 0 : index
    %68 = vector.load %arg4[%c0_18, %c0_19] : memref<1152x128xbf16, #tpu.memory_space<vmem>>, vector<1152x128xbf16>
    %cst_20 = arith.constant dense<0.000000e+00> : vector<256x128xf32>
    %69 = tpu.matmul %67, %68, %cst_20 {dimension_numbers = #tpu.dot_dimension_numbers<[1], [0], [0], [1], [0, 0, 1, 1], [], []>} : vector<256x1152xbf16>, vector<1152x128xbf16>, vector<256x128xf32> -> vector<256x128xf32>
    %c0_21 = arith.constant 0 : index
    %c0_22 = arith.constant 0 : index
    %70 = vector.load %arg5[%c0_21, %c0_22] : memref<1x128xf32, #tpu.memory_space<vmem>>, vector<1x128xf32>
    %71 = vector.broadcast %70 : vector<1x128xf32> to vector<256x128xf32>
    %72 = arith.addf %69, %71 : vector<256x128xf32>
    %cst_23 = arith.constant 0.000000e+00 : f32
    %73 = vector.broadcast %cst_23 : f32 to vector<256x128xf32>
    %74 = arith.maximumf %72, %73 : vector<256x128xf32>
    %75 = arith.truncf %74 : vector<256x128xf32> to vector<256x128xbf16>
    %c0_24 = arith.constant 0 : index
    %c0_25 = arith.constant 0 : index
    %76 = vector.load %arg6[%c0_24, %c0_25] : memref<128x128xbf16, #tpu.memory_space<vmem>>, vector<128x128xbf16>
    %cst_26 = arith.constant dense<0.000000e+00> : vector<256x128xf32>
    %77 = tpu.matmul %75, %76, %cst_26 {dimension_numbers = #tpu.dot_dimension_numbers<[1], [0], [0], [1], [0, 0, 1, 1], [], []>} : vector<256x128xbf16>, vector<128x128xbf16>, vector<256x128xf32> -> vector<256x128xf32>
    %c0_27 = arith.constant 0 : index
    %c0_28 = arith.constant 0 : index
    %78 = vector.load %arg7[%c0_27, %c0_28] : memref<1x128xf32, #tpu.memory_space<vmem>>, vector<1x128xf32>
    %79 = vector.broadcast %78 : vector<1x128xf32> to vector<256x128xf32>
    %80 = arith.addf %77, %79 : vector<256x128xf32>
    %cst_29 = arith.constant dense<0.000000e+00> : vector<128xf32>
    %81 = vector.multi_reduction <add>, %80, %cst_29 [0] : vector<256x128xf32> to vector<128xf32>
    %82 = vector.shape_cast %81 : vector<128xf32> to vector<1x128xf32>
    %cst_30 = arith.constant 2.560000e+02 : f32
    %83 = vector.broadcast %cst_30 : f32 to vector<1x128xf32>
    %84 = arith.divf %82, %83 : vector<1x128xf32>
    %cst_31 = arith.constant 0.000000e+00 : f32
    %85 = vector.broadcast %cst_31 : f32 to vector<1x1xf32>
    %86 = tpu.concatenate %85, %84, %85 in 1 : vector<1x1xf32>, vector<1x128xf32>, vector<1x1xf32> -> vector<1x130xf32>
    %c0_32 = arith.constant 0 : index
    %c0_33 = arith.constant 0 : index
    %87 = vector.load %arg8[%c0_32, %c0_33] : memref<3x128xf32, #tpu.memory_space<vmem>>, vector<3x128xf32>
    %cst_34 = arith.constant 0.000000e+00 : f32
    %88 = vector.broadcast %cst_34 : f32 to vector<1x128xf32>
    %89 = vector.extract_strided_slice %87 {offsets = [0, 0], sizes = [1, 128], strides = [1, 1]} : vector<3x128xf32> to vector<1x128xf32>
    %90 = vector.extract_strided_slice %86 {offsets = [0, 0], sizes = [1, 128], strides = [1, 1]} : vector<1x130xf32> to vector<1x128xf32>
    %91 = arith.mulf %89, %90 : vector<1x128xf32>
    %92 = arith.addf %88, %91 : vector<1x128xf32>
    %93 = vector.extract_strided_slice %87 {offsets = [1, 0], sizes = [1, 128], strides = [1, 1]} : vector<3x128xf32> to vector<1x128xf32>
    %94 = vector.extract_strided_slice %86 {offsets = [0, 1], sizes = [1, 128], strides = [1, 1]} : vector<1x130xf32> to vector<1x128xf32>
    %95 = arith.mulf %93, %94 : vector<1x128xf32>
    %96 = arith.addf %92, %95 : vector<1x128xf32>
    %97 = vector.extract_strided_slice %87 {offsets = [2, 0], sizes = [1, 128], strides = [1, 1]} : vector<3x128xf32> to vector<1x128xf32>
    %98 = vector.extract_strided_slice %86 {offsets = [0, 2], sizes = [1, 128], strides = [1, 1]} : vector<1x130xf32> to vector<1x128xf32>
    %99 = arith.mulf %97, %98 : vector<1x128xf32>
    %100 = arith.addf %96, %99 : vector<1x128xf32>
    %101 = arith.negf %100 : vector<1x128xf32>
    %102 = math.exp %101 : vector<1x128xf32>
    %cst_35 = arith.constant 1.000000e+00 : f32
    %103 = vector.broadcast %cst_35 : f32 to vector<1x128xf32>
    %104 = arith.addf %103, %102 : vector<1x128xf32>
    %105 = arith.divf %103, %104 : vector<1x128xf32>
    %106 = vector.broadcast %105 : vector<1x128xf32> to vector<256x128xf32>
    %107 = arith.mulf %80, %106 : vector<256x128xf32>
    %108 = arith.addf %107, %1 : vector<256x128xf32>
    %cst_36 = arith.constant 0.000000e+00 : f32
    %109 = vector.broadcast %cst_36 : f32 to vector<256x128xf32>
    %110 = arith.maximumf %108, %109 : vector<256x128xf32>
    %c0_37 = arith.constant 0 : index
    %c0_38 = arith.constant 0 : index
    %c0_39 = arith.constant 0 : index
    %111 = vector.load %arg9[%c0_37, %c0_38, %c0_39] : memref<1x256x128xf32, #tpu.memory_space<vmem>>, vector<1x256x128xf32>
    %112 = vector.shape_cast %111 : vector<1x256x128xf32> to vector<256x128xf32>
    %113 = vector.shape_cast %110 : vector<256x128xf32> to vector<1x256x128xf32>
    tpu.vector_store %arg9[%c0_37, %c0_38, %c0_39], %113 {strides = array<i32>} : memref<1x256x128xf32, #tpu.memory_space<vmem>>, vector<1x256x128xf32>,
    return
  }
  func.func @transform_0(%arg0: i32) -> (i32, i32, i32) {
    %c0_i32 = arith.constant 0 : i32
    %c0_i32_0 = arith.constant 0 : i32
    %c0_i32_1 = arith.constant 0 : i32
    return %arg0, %c0_i32, %c0_i32_0 : i32, i32, i32
  }
  func.func @transform_1(%arg0: i32) -> (i32, i32) {
    %c0_i32 = arith.constant 0 : i32
    %c0_i32_0 = arith.constant 0 : i32
    %c0_i32_1 = arith.constant 0 : i32
    return %c0_i32, %c0_i32_0 : i32, i32
  }
  func.func @transform_2(%arg0: i32) -> (i32, i32) {
    %c0_i32 = arith.constant 0 : i32
    %c0_i32_0 = arith.constant 0 : i32
    %c0_i32_1 = arith.constant 0 : i32
    return %c0_i32, %c0_i32_0 : i32, i32
  }
  func.func @transform_3(%arg0: i32) -> (i32, i32) {
    %c0_i32 = arith.constant 0 : i32
    %c0_i32_0 = arith.constant 0 : i32
    %c0_i32_1 = arith.constant 0 : i32
    return %c0_i32, %c0_i32_0 : i32, i32
  }
  func.func @transform_4(%arg0: i32) -> (i32, i32) {
    %c0_i32 = arith.constant 0 : i32
    %c0_i32_0 = arith.constant 0 : i32
    %c0_i32_1 = arith.constant 0 : i32
    return %c0_i32, %c0_i32_0 : i32, i32
  }
  func.func @transform_5(%arg0: i32) -> (i32, i32) {
    %c0_i32 = arith.constant 0 : i32
    %c0_i32_0 = arith.constant 0 : i32
    %c0_i32_1 = arith.constant 0 : i32
    return %c0_i32, %c0_i32_0 : i32, i32
  }
  func.func @transform_6(%arg0: i32) -> (i32, i32) {
    %c0_i32 = arith.constant 0 : i32
    %c0_i32_0 = arith.constant 0 : i32
    %c0_i32_1 = arith.constant 0 : i32
    return %c0_i32, %c0_i32_0 : i32, i32
  }
  func.func @transform_7(%arg0: i32) -> (i32, i32) {
    %c0_i32 = arith.constant 0 : i32
    %c0_i32_0 = arith.constant 0 : i32
    %c0_i32_1 = arith.constant 0 : i32
    return %c0_i32, %c0_i32_0 : i32, i32
  }
  func.func @transform_8(%arg0: i32) -> (i32, i32, i32) {
    %c0_i32 = arith.constant 0 : i32
    %c0_i32_0 = arith.constant 0 : i32
    %c0_i32_1 = arith.constant 0 : i32
    return %arg0, %c0_i32, %c0_i32_0 : i32, i32, i32
  }
}

</mosaic_0001>

<bundles_post_ra>
// kernel: tpu_custom_call.1
= control target key start
LH: loop header
LB: loop body
LE: loop exit
PB: predicated region body
PF: predicated region fallthrough
CT: control target
= control target key end

     0   :  { %s8027_s0 = inlined_call_operand.hbm [shape: f32[2,256,128], index: 0, kind: input, shape index: {}]   ;;  %s8028_s1 = inlined_call_operand.hbm [shape: bf16[128,128], index: 1, kind: input, shape index: {}]   ;;  %s8029_s2 = inlined_call_operand.vmem [shape: f32[1,128], index: 2, kind: input, shape index: {}]   ;;  %s8030_s3 = inlined_call_operand.hbm [shape: bf16[1152,128], index: 3, kind: input, shape index: {}]   ;;  %s8031_s4 = inlined_call_operand.vmem [shape: f32[1,128], index: 4, kind: input, shape index: {}]   ;;  %s8032_s5 = inlined_call_operand.hbm [shape: bf16[128,128], index: 5, kind: input, shape index: {}]   ;;  %s8033_s6 = inlined_call_operand.vmem [shape: f32[1,128], index: 6, kind: input, shape index: {}]   ;;  %s8034_s7 = inlined_call_operand.vmem [shape: f32[3,128], index: 7, kind: input, shape index: {}]   ;;  %s8035_s8 = inlined_call_operand.hbm [shape: f32[2,256,128], index: 8, kind: output, shape index: {}]  }
   0x1   :  { %8106 = sst [smem:[#allocation49_spill]] %s8028_s1 }
   0x2   :  { %8107 = sst [smem:[#allocation50_spill]] %s8030_s3 }
   0x3   :  { %13 = vsyncpa [#allocation3], 0 }
   0x4   :  { %15 = vsyncpa [#allocation3 + $0x1], 0 }
   0x5   :  { %16 = vsyncpa [#allocation6], 0 }
   0x6   :  { %17 = vsyncpa [#allocation9], 0 }
   0x7   :  { %18 = vsyncpa [#allocation4], 0 }
   0x8   :  { %20 = vsyncpa [#allocation4 + $0x1], 0  ;;  %s5528_s27 = smov 0   ;;  %s5530_s28 = smov 0  }
   0x9   :  { %s5532_s29 = smov 0   ;;  %s5534_s30 = smov 0  }
   0xa LB: > { %s5549_s9 = sadd.s32 4294967295, %s5465_s30   ;;  %s4202_s10 = sadd.s32 4294967294, %s5465_s30   ;;  %s5465_s30 = sphi %s5534_s30, %s8499_s30   ;;  %s5461_s29 = sphi %s5532_s29, %s8498_s29   ;;  %s5457_s28 = sphi %s5530_s28, %s8497_s28   ;;  %s5453_s27 = sphi %s5528_s27, %s8496_s27  }
   0xb   : > { %p46_p0 = scmp.ne.s32.totalorder %s5457_s28, %s5453_s27  ;;  %p8036_p1 = scmp.eq.s32.totalorder %s5549_s9, 0 }
   0xc   : > { %p223_p3 = scmp.eq.s32.totalorder %s4202_s10, 1  ;;  %p4203_p5 = scmp.ge.s32.totalorder %s5465_s30, 1 }
   0xd   : > { %p5558_p4 = por %p8036_p1, %p46_p0  ;;  %p230_p7 = scmp.lt.s32.totalorder %s5465_s30, 3 }
   0xe   : > { %p5563_p6 = por %p223_p3, %p46_p0  ;;  %s5467_s14 = smov [#allocation5]  }
   0xf   : > { %s8108_s11 = scalar_select %p5558_p4, 1, 0 }
  0x10   : > { %s8109_s12 = scalar_select %p5563_p6, 1, 0 }
  0x11   : > { %p5568_p8 = pnand %p4203_p5, %p230_p7  ;;  %s242_s15 = sshll.u32 %s5467_s14, 4  ;;  %s243_s15 = int_to_ptr.vmem [resolvable:$true] %s242_s15 }
  0x12   : > { %s5468_s17 = smov [#allocation7]   ;;  %s5469_s19 = smov [#allocation8]  }
  0x13   : > { %s8110_s13 = scalar_select %p5568_p8, 1, 0 }
  0x14   : > { %p5091_p9 = pneg %p5568_p8  ;;  %s258_s18 = sshll.u32 %s5468_s17, 4  ;;  %s259_s18 = int_to_ptr.vmem [resolvable:$true] %s258_s18 }
  0x15   : > { %s274_s20 = sshll.u32 %s5469_s19, 4  ;;  %s5298_s21 = scalar_lea.vmem %s243_s15, 1024  ;;  %s275_s20 = int_to_ptr.vmem [resolvable:$true] %s274_s20 }
  0x16   : > { %p5577_p11 = pnand %p5091_p9, %p8036_p1  ;;  %p5299_p13 = scmp.ne.s32.totalorder %s243_s15, %s5298_s21 }
  0x17   : > { %p5306_p5 = scmp.lt.s32.totalorder %s243_s15, %s243_s15  ;;  %p5307_p7 = scmp.lt.s32.totalorder %s5298_s21, %s5298_s21 }
  0x18   : > { %p5289_p12 = pneg %p5577_p11 }
  0x19   : > { %p5308_p9 = por %p5307_p7, %p5306_p5 }
  0x1a   : > { %p5301_p0 = pnand %p5299_p13, %p5289_p12 }
  0x1c   : > { %p5302_p3 = pneg %p5301_p0 }
  0x1e   : > { %p5309_p10 = pnand %p5308_p9, %p5302_p3 }
  0x20   : > { %5312 = shalt.err (!%p5309_p10)
}
  0x21   : > { %s5470_s22 = smov 64   ;;  %s5471_s23 = smov 4  }
  0x22   : > { %s8112_s1 = sld [smem:[#allocation49_spill]]  ;;  %s5324_s26 = scalar_lea.vmem %s259_s18, 9216 }
  0x23   : > { %p5325_p1 = scmp.ne.s32.totalorder %s259_s18, %s5324_s26  ;;  %p5332_p2 = scmp.lt.s32.totalorder %s259_s18, %s259_s18 }
  0x24   : > { %p5333_p6 = scmp.lt.s32.totalorder %s5324_s26, %s5324_s26 }
  0x25   : > { %p5327_p13 = pnand %p5325_p1, %p5289_p12 }
  0x26   : > { %p5334_p5 = por %p5333_p6, %p5332_p2 }
  0x27   : > { %p5328_p0 = pneg %p5327_p13 }
  0x28   : > { %5094 = dma.hbm_to_vmem [thread:$0]  (!%p5577_p11), %s8112_s1, 1024, %s243_s15, [#allocation6], %s5470_s22, %s5470_s22, %s5471_s23  }
  0x29   : > { %p5335_p3 = pnand %p5334_p5, %p5328_p0 }
  0x2b   : > { %5338 = shalt.err (!%p5335_p3)
}
  0x2c   : > { %s8113_s3 = sld [smem:[#allocation50_spill]]  ;;  %s5350_s15 = scalar_lea.vmem %s275_s20, 1024 }
  0x2d   : > { %p5351_p10 = scmp.ne.s32.totalorder %s275_s20, %s5350_s15  ;;  %p5358_p9 = scmp.lt.s32.totalorder %s275_s20, %s275_s20 }
  0x2e   : > { %p5359_p13 = scmp.lt.s32.totalorder %s5350_s15, %s5350_s15 }
  0x2f   : > { %p5353_p7 = pnand %p5351_p10, %p5289_p12 }
  0x30   : > { %p5360_p4 = por %p5359_p13, %p5358_p9 }
  0x31   : > { %p5354_p1 = pneg %p5353_p7 }
  0x32   : > { %5097 = dma.hbm_to_vmem [thread:$0]  (!%p5577_p11), %s8113_s3, 9216, %s259_s18, [#allocation6], %s5470_s22, %s5470_s22, %s5471_s23  }
  0x33   : > { %p5361_p2 = pnand %p5360_p4, %p5354_p1 }
  0x35   : > { %5364 = shalt.err (!%p5361_p2)
}
  0x36   : > { %5100 = dma.hbm_to_vmem [thread:$0]  (!%p5577_p11), %s8032_s5, 1024, %s275_s20, [#allocation9], %s5470_s22, %s5470_s22, %s5471_s23  }
  0x37   : > { %s5608_s18 = sadd.s32 1, %s5465_s30   ;;  %s33_s16 = sadd.s32 1, %s5461_s29 }
  0x38   : > { %s30_s21 = ssub.s32 %s5465_s30, %s5608_s18  ;;  %p40_p6 = scmp.ne.s32.totalorder %s5461_s29, %s5457_s28 }
  0x39   : > { %p31_p4 = scmp.eq.s32.totalorder %s30_s21, 0  ;;  %p41_p12 = scmp.eq.s32.totalorder %s5465_s30, 0 }
  0x3a   : > { %p5112_p0 = scmp.lt.s32.totalorder %s5465_s30, 2  ;;  %p8114_p3 = scmp.eq.s32.totalorder %s5549_s9, 1 }
  0x3b   : > { %s5618_s24 = scalar_select %p31_p4, %s5461_s29, %s33_s16  }
  0x3c   : > { %p42_p5 = por %p41_p12, %p40_p6  ;;  %p5622_p10 = por %p8114_p3, %p40_p6 }
  0x3d   : > { %s294_s26 = sand.u32 1, %s5461_s29   ;;  %s4393_s10 = sshll.u32 %s5465_s30, 12 }
  0x3e   : > { %s8115_s25 = scalar_select %p5622_p10, 1, 0 }
  0x3f   : > { %s4208_s20 = sshll.u32 %s294_s26, 8  ;;  %s5631_s14 = scalar_lea.hbm %s8027_s0, %s4393_s10 }
  0x40   : > { %s298_s15 = scalar_lea.vmem [#allocation2], %s4208_s20  ;;  %p5633_p11 = pnand %p5112_p0, %p42_p5 }
  0x41   : > { %s305_s17 = sshll.u32 %s298_s15, 4  ;;  %s5639_s21 = scalar_lea.sflag [#allocation3], %s294_s26  ;;  %s5637_s17 = int_to_ptr.vmem [resolvable:$true] %s305_s17 }
  0x42   : > { %s5365_s16 = scalar_lea.hbm %s5631_s14, 4096  ;;  %p5367_p1 = pneg %p5633_p11 }
  0x43   : > { %p5366_p7 = scmp.ne.s32.totalorder %s5631_s14, %s5365_s16  ;;  %s5370_s20 = scalar_lea.hbm %s8027_s0, 8192 }
  0x44   : > { %p5371_p2 = scmp.lt.s32.totalorder %s5631_s14, %s8027_s0  ;;  %p5372_p4 = scmp.lt.s32.totalorder %s5370_s20, %s5365_s16 }
  0x45   : > { %p5368_p9 = pnand %p5367_p1, %p5366_p7 }
  0x46   : > { %p5373_p6 = por %p5372_p4, %p5371_p2 }
  0x47   : > { %p5369_p13 = pneg %p5368_p9 }
  0x49   : > { %p5374_p12 = pnand %p5373_p6, %p5369_p13 }
  0x4b   : > { %5377 = shalt.err (!%p5374_p12)
}
  0x4c   : > { %s5378_s26 = scalar_lea.vmem %s5637_s17, 4096  ;;  %s5472_s1 = smov [#allocation2]  }
  0x4d   : > { %p5379_p0 = scmp.ne.s32.totalorder %s5637_s17, %s5378_s26  ;;  %s5383_s3 = sshll.u32 %s5472_s1, 4  ;;  %s5384_s3 = int_to_ptr.vmem [resolvable:$false] %s5383_s3 }
  0x4e   : > { %s5385_s10 = scalar_lea.vmem %s5384_s3, 8192  ;;  %p5386_p7 = scmp.lt.s32.totalorder %s5637_s17, %s5384_s3 }
  0x4f   : > { %p5381_p5 = pnand %p5379_p0, %p5367_p1  ;;  %p5387_p9 = scmp.lt.s32.totalorder %s5385_s10, %s5378_s26 }
  0x51   : > { %p5382_p3 = pneg %p5381_p5  ;;  %p5388_p10 = por %p5387_p9, %p5386_p7 }
  0x53   : > { %p5389_p8 = pnand %p5388_p10, %p5382_p3 }
  0x55   : > { %5392 = shalt.err (!%p5389_p8)
}
  0x56   : > { %s5473_s16 = smov 128   ;;  %s5474_s22 = smov 8  }
  0x57   : > { %5104 = dma.hbm_to_vmem [thread:$0]  (!%p5633_p11), %s5631_s14, 4096, %s5637_s17, %s5639_s21, %s5473_s16, %s5473_s16, %s5474_s22  }
  0x58   : > { %p8117_p1 = scmp.ne.s32.totalorder %s8110_s13, 0 }
  0x5a   : > { %317 = sbr.rel (%p8117_p1) target bundleno = 1437 (0x59d), region = 52 }
  0x5f   : > { %s5663_s1 = sand.u32 1, %s5457_s28   ;;  %p8118_p8 = scmp.ne.s32.totalorder %s8108_s11, 0 }
  0x60   : > { %s4212_s3 = sshll.u32 %s5663_s1, 8  ;;  %s320_s20 = scalar_lea.sflag [#allocation3], %s5663_s1 }
  0x61   : > { %s5669_s23 = scalar_lea.vmem [#allocation2], %s4212_s3 }
  0x62   : > { %5436 = dma.done.wait (%p8118_p8), %s320_s20, 4096  }
  0x63   : > { %5438 = vsyncadd (%p8118_p8), %s320_s20, 4294963200  ;;  %p8119_p10 = scmp.eq.s32.totalorder %s5549_s9, 0 }
  0x65   : > { %5440 = dma.done.wait (%p8119_p10), [#allocation6], 10240   ;;  %p8120_p11 = pmov %p8119_p10 }
  0x66   : > { %p8121_p13 = pmov %p8119_p10 }
  0x67   : > { %5442 = vsyncadd (%p8120_p11), [#allocation6], 4294957056 }
  0x68   : > { %5444 = dma.done.wait (%p8121_p13), [#allocation9], 1024   ;;  %p8122_p2 = pmov %p8119_p10 }
  0x69   : > { %v5163_v0 = vld [vmem:[#allocation5 + $0x38] sm:$0xff]   ;;  %v5164_v1 = vld [vmem:[#allocation5 + $0x30] sm:$0xff]   ;;  %v5165_v2 = vld [vmem:[#allocation5 + $0x28] sm:$0xff]   ;;  %vm5475_vm2 = vmmov 1   ;;  %vm844_vm12 = vcmask 1040384   ;;  %s5477_s15 = smov 1  }
  0x6a   : > { %5446 = vsyncadd (%p8122_p2), [#allocation9], 4294966272  ;;  %4915 = vmatprep.subr.bf16.mxu0 %v5163_v0  ;;  %5059 = vmatprep.subr.bf16.mxu1 %v5163_v0  ;;  %v5166_v3 = vld [vmem:[#allocation5 + $0x20] sm:$0xff]   ;;  %v372_v5 = vld [vmem:[%s5669_s23 + $0x8] sm:$0xff]  ;;  %s5478_s26 = smov 127   ;;  %s5479_s10 = smov 126  }
  0x6b   : > { %4916 = vmatpush3.bf16.msra.mxu0 %v5163_v0  ;;  %5067 = vmatpush3.bf16.msra.mxu1 %v5163_v0  ;;  %v371_v4 = vld [vmem:[%s5669_s23] sm:$0xff]  ;;  %v5167_v7 = vld [vmem:[#allocation5 + $0x18] sm:$0xff]   ;;  %v388_v9 = vld [vmem:[%s5669_s23 + $0x88] sm:$0xff]  ;;  %s7923_s20 = scalar_lea.vmem [#allocation10], %s4212_s3  ;;  %s4394_s3 = sshll.u32 %s5549_s9, 12 }
  0x6c   : > { %4917 = vmatprep.subr.bf16.mxu0 %v5164_v1  ;;  %5060 = vmatprep.subr.bf16.mxu1 %v5164_v1  ;;  %v403_v6 = vpack.c.bf16 %v372_v5, %v371_v4  ;;  %v387_v8 = vld [vmem:[%s5669_s23 + $0x80] sm:$0xff]  ;;  %v5168_v11 = vld [vmem:[#allocation5 + $0x10] sm:$0xff]   ;;  %v5169_v12 = vld [vmem:[#allocation5 + $0x8] sm:$0xff]   ;;  %s7966_s13 = scalar_lea.hbm %s8035_s8, %s4394_s3  ;;  %s4087_s14 = scalar_lea.sflag [#allocation4], %s5663_s1 }
  0x6d   : > { %v411_v10 = vpack.c.bf16 %v388_v9, %v387_v8  ;;  %v5170_v13 = vld [vmem:[#allocation5] sm:$0xff]   ;;  %v373_v14 = vld [vmem:[%s5669_s23 + $0x10] sm:$0xff]  ;;  %v374_v15 = vld [vmem:[%s5669_s23 + $0x18] sm:$0xff]  ;;  %p8493_p6 = scmp.ne.s32.totalorder %s8115_s25, 0  ;;  %s5480_s19 = smov [#allocation10]  }
  0x6e   : > { %4931 = vmatprep.mubr.bf16.mxu0 %v403_v6  ;;  %v375_v16 = vld [vmem:[%s5669_s23 + $0x20] sm:$0xff]  ;;  %v376_v17 = vld [vmem:[%s5669_s23 + $0x28] sm:$0xff]  ;;  %v389_v18 = vld [vmem:[%s5669_s23 + $0x90] sm:$0xff]  ;;  %v404_v24 = vpack.c.bf16 %v374_v15, %v373_v14  ;;  %s5397_s21 = sshll.u32 %s5480_s19, 4  ;;  %s5398_s21 = int_to_ptr.vmem [resolvable:$false] %s5397_s21 }
  0x6f   : > { %4918 = vmatpush3.bf16.msra.mxu0 %v5164_v1  ;;  %5068 = vmatpush3.bf16.msra.mxu1 %v5164_v1  ;;  %v390_v19 = vld [vmem:[%s5669_s23 + $0x98] sm:$0xff]  ;;  %v391_v21 = vld [vmem:[%s5669_s23 + $0xa0] sm:$0xff]  ;;  %v392_v22 = vld [vmem:[%s5669_s23 + $0xa8] sm:$0xff]  ;;  %v405_v26 = vpack.c.bf16 %v376_v17, %v375_v16 }
  0x70   : > { %4919 = vmatprep.subr.bf16.mxu0 %v5165_v2  ;;  %5061 = vmatprep.subr.bf16.mxu1 %v5165_v2  ;;  %v5171_v20 = vld [vmem:[#allocation7 + $0xf8] sm:$0xff]   ;;  %v412_v27 = vpack.c.bf16 %v390_v19, %v389_v18  ;;  %v5175_v29 = vld [vmem:[#allocation7 + $0xf0] sm:$0xff]   ;;  %v413_v30 = vpack.c.bf16 %v392_v22, %v391_v21  ;;  %v379_v34 = vld [vmem:[%s5669_s23 + $0x40] sm:$0xff] }
  0x71   : > { %4947 = vmatprep.mubr.bf16.mxu1 %v411_v10  ;;  %v5172_v23 = vld [vmem:[#allocation7 + $0x78] sm:$0xff]   ;;  %v5176_v31 = vld [vmem:[#allocation7 + $0x70] sm:$0xff]   ;;  %v380_v35 = vld [vmem:[%s5669_s23 + $0x48] sm:$0xff] }
  0x72   : > { %v5173_v25 = vld [vmem:[#allocation7 + $0xb8] sm:$0xff]   ;;  %v377_v32 = vld [vmem:[%s5669_s23 + $0x30] sm:$0xff]  ;;  %v395_v39 = vld [vmem:[%s5669_s23 + $0xc0] sm:$0xff]  ;;  %v407_v43 = vpack.c.bf16 %v380_v35, %v379_v34 }
  0x73   : > { %4920 = vmatpush3.bf16.msra.mxu0 %v5165_v2  ;;  %5069 = vmatpush3.bf16.msra.mxu1 %v5165_v2  ;;  %v5174_v28 = vld [vmem:[#allocation7 + $0x38] sm:$0xff]   ;;  %v393_v36 = vld [vmem:[%s5669_s23 + $0xb0] sm:$0xff]  ;;  %v396_v40 = vld [vmem:[%s5669_s23 + $0xc8] sm:$0xff] }
  0x74   : > { %4921 = vmatprep.subr.bf16.mxu0 %v5166_v3  ;;  %5062 = vmatprep.subr.bf16.mxu1 %v5166_v3  ;;  %v378_v33 = vld [vmem:[%s5669_s23 + $0x38] sm:$0xff]  ;;  %v5177_v38 = vld [vmem:[#allocation7 + $0xb0] sm:$0xff]   ;;  %v415_v45 = vpack.c.bf16 %v396_v40, %v395_v39  ;;  %v383_v48 = vld [vmem:[%s5669_s23 + $0x60] sm:$0xff] }
  0x75   : > { %v394_v37 = vld [vmem:[%s5669_s23 + $0xb8] sm:$0xff]  ;;  %v5178_v41 = vld [vmem:[#allocation7 + $0x30] sm:$0xff]   ;;  %v406_v42 = vpack.c.bf16 %v378_v33, %v377_v32  ;;  %v384_v49 = vld [vmem:[%s5669_s23 + $0x68] sm:$0xff] }
  0x76   : > { %v414_v44 = vpack.c.bf16 %v394_v37, %v393_v36  ;;  %v381_v46 = vld [vmem:[%s5669_s23 + $0x50] sm:$0xff]  ;;  %v382_v47 = vld [vmem:[%s5669_s23 + $0x58] sm:$0xff]  ;;  %v399_v52 = vld [vmem:[%s5669_s23 + $0xe0] sm:$0xff]  ;;  %v409_v55 = vpack.c.bf16 %v384_v49, %v383_v48 }
  0x77   : > { %4922 = vmatpush3.bf16.msra.mxu0 %v5166_v3  ;;  %5070 = vmatpush3.bf16.msra.mxu1 %v5166_v3  ;;  %v397_v50 = vld [vmem:[%s5669_s23 + $0xd0] sm:$0xff]  ;;  %v398_v51 = vld [vmem:[%s5669_s23 + $0xd8] sm:$0xff]  ;;  %v400_v53 = vld [vmem:[%s5669_s23 + $0xe8] sm:$0xff]  ;;  %v408_v54 = vpack.c.bf16 %v382_v47, %v381_v46 }
  0x78   : > { %4923 = vmatprep.subr.bf16.mxu0 %v5167_v7  ;;  %5063 = vmatprep.subr.bf16.mxu1 %v5167_v7  ;;  %v416_v56 = vpack.c.bf16 %v398_v51, %v397_v50  ;;  %v417_v57 = vpack.c.bf16 %v400_v53, %v399_v52  ;;  %v385_v58 = vld [vmem:[%s5669_s23 + $0x70] sm:$0xff]  ;;  %v386_v59 = vld [vmem:[%s5669_s23 + $0x78] sm:$0xff]  ;;  %v5179_v0 = vld [vmem:[#allocation7 + $0xe8] sm:$0xff]  }
  0x79   : > { %v401_v60 = vld [vmem:[%s5669_s23 + $0xf0] sm:$0xff]  ;;  %v402_v61 = vld [vmem:[%s5669_s23 + $0xf8] sm:$0xff]  ;;  %v410_v62 = vpack.c.bf16 %v386_v59, %v385_v58  ;;  %v5181_v1 = vld [vmem:[#allocation7 + $0xa8] sm:$0xff]  }
  0x7a   : > { %v418_v63 = vpack.c.bf16 %v402_v61, %v401_v60  ;;  %v5180_v2 = vld [vmem:[#allocation7 + $0x68] sm:$0xff]   ;;  %v5183_v4 = vld [vmem:[#allocation7 + $0xe0] sm:$0xff]   ;;  %v5187_v8 = vld [vmem:[#allocation7 + $0xd8] sm:$0xff]  }
  0x7b   : > { %4924 = vmatpush3.bf16.msra.mxu0 %v5167_v7  ;;  %5071 = vmatpush3.bf16.msra.mxu1 %v5167_v7  ;;  %v5182_v3 = vld [vmem:[#allocation7 + $0x28] sm:$0xff]   ;;  %v5185_v5 = vld [vmem:[#allocation7 + $0xa0] sm:$0xff]   ;;  %v5189_v9 = vld [vmem:[#allocation7 + $0x98] sm:$0xff]  }
  0x7c   : > { %4925 = vmatprep.subr.bf16.mxu0 %v5168_v11  ;;  %5064 = vmatprep.subr.bf16.mxu1 %v5168_v11  ;;  %v5184_v6 = vld [vmem:[#allocation7 + $0x60] sm:$0xff]   ;;  %v5188_v10 = vld [vmem:[#allocation7 + $0x58] sm:$0xff]   ;;  %v5192_v14 = vld [vmem:[#allocation7 + $0x50] sm:$0xff]  }
  0x7d   : > { %v5186_v7 = vld [vmem:[#allocation7 + $0x20] sm:$0xff]   ;;  %v5194_v15 = vld [vmem:[#allocation7 + $0x10] sm:$0xff]   ;;  %v5195_v16 = vld [vmem:[#allocation7 + $0xc8] sm:$0xff]  }
  0x7e   : > { %v5197_v17 = vld [vmem:[#allocation7 + $0x88] sm:$0xff]   ;;  %v5201_v21 = vld [vmem:[#allocation7 + $0x80] sm:$0xff]   ;;  %vm1394_vm3 = vmpackc.low %vm5475_vm2, %vm5475_vm2 }
  0x7f   : > { %4926 = vmatpush3.bf16.msra.mxu0 %v5168_v11  ;;  %5072 = vmatpush3.bf16.msra.mxu1 %v5168_v11  ;;  %v5190_v11 = vld [vmem:[#allocation7 + $0x18] sm:$0xff]   ;;  %v5196_v18 = vld [vmem:[#allocation7 + $0x48] sm:$0xff]   ;;  %v5200_v22 = vld [vmem:[#allocation7 + $0x40] sm:$0xff]  }
  0x80   : > { %4927 = vmatprep.subr.bf16.mxu0 %v5169_v12  ;;  %5065 = vmatprep.subr.bf16.mxu1 %v5169_v12  ;;  %v5198_v19 = vld [vmem:[#allocation7 + $0x8] sm:$0xff]   ;;  %v5899_v59 = vld [vmem:[%s8029_s2] ss:$0 sm:$0xff] }
  0x83   : > { %4928 = vmatpush3.bf16.msra.mxu0 %v5169_v12  ;;  %5073 = vmatpush3.bf16.msra.mxu1 %v5169_v12  ;;  %v5191_v12 = vld [vmem:[#allocation7 + $0xd0] sm:$0xff]  }
  0x84   : > { %4929 = vmatprep.subr.bf16.mxu0 %v5170_v13  ;;  %5066 = vmatprep.subr.bf16.mxu1 %v5170_v13 }
  0x87   : > { %4930 = vmatpush3.bf16.msra.mxu0 %v5170_v13  ;;  %5074 = vmatpush3.bf16.msra.mxu1 %v5170_v13  ;;  %v5193_v13 = vld [vmem:[#allocation7 + $0x90] sm:$0xff]  }
  0x88   : > { %4531 = vmatprep.subr.bf16.mxu0 %v5171_v20  ;;  %4419 = vmatprep.subr.bf16.mxu1 %v5172_v23  ;;  %v5199_v20 = vld [vmem:[#allocation7 + $0xc0] sm:$0xff]  }
  0x89   : > { %v5202_v23 = vld [vmem:[#allocation7] sm:$0xff]  }
  0x8a   : > { %4932 = vmatmul.mubr.bf16.vlgmr.msra.gmra.mxu0 %v404_v24  ;;  %4948 = vmatmul.mubr.bf16.vlgmr.msra.gmra.mxu1 %v412_v27  ;;  %v5203_v24 = vld [vmem:[#allocation7 + $0x178] sm:$0xff]  }
  0x8b   : > { %4935 = vmatprep.mubr.bf16.mxu0 %v405_v26  ;;  %4951 = vmatprep.mubr.bf16.mxu1 %v413_v30  ;;  %v5211_v26 = vld [vmem:[#allocation7 + $0x1f8] sm:$0xff]  }
  0x8c   : > { %4532 = vmatpush3.bf16.msra.mxu0 %v5173_v25  ;;  %4420 = vmatpush3.bf16.msra.mxu1 %v5174_v28  ;;  %v848_v25 = vlaneseq }
  0x8d   : > { %4533 = vmatprep.subr.bf16.mxu0 %v5175_v29  ;;  %4421 = vmatprep.subr.bf16.mxu1 %v5176_v31 }
  0x8e   : > { %v5715_v27 = vshrl.u32 %v848_v25, 7 }
  0x90   : > { %4534 = vmatpush3.bf16.msra.mxu0 %v5177_v38  ;;  %4422 = vmatpush3.bf16.msra.mxu1 %v5178_v41  ;;  %8123 = vst [vmem:[#allocation15_spill] sm:$0xff] %v5715_v27  ;;  %v850_v28 = vadd.s32 8, %v5715_v27  ;;  %v852_v29 = vadd.s32 24, %v5715_v27  ;;  %v854_v30 = vadd.s32 40, %v5715_v27  ;;  %v856_v35 = vadd.s32 56, %v5715_v27 }
  0x91   : > { %4535 = vmatprep.subr.bf16.mxu0 %v5179_v0  ;;  %4423 = vmatprep.subr.bf16.mxu1 %v5180_v2  ;;  %v858_v38 = vadd.s32 72, %v5715_v27  ;;  %v885_v40 = vand.u32 15, %v5715_v27  ;;  %v860_v41 = vadd.s32 88, %v5715_v27  ;;  %v862_v48 = vadd.s32 104, %v5715_v27 }
  0x92   : > { %4936 = vmatmul.mubr.bf16.gmra.mxu0 %v406_v42  ;;  %4952 = vmatmul.mubr.bf16.gmra.mxu1 %v414_v44  ;;  %v892_v31 = vand.u32 15, %v850_v28  ;;  %v906_v32 = vand.u32 15, %v852_v29  ;;  %v920_v33 = vand.u32 15, %v854_v30  ;;  %v934_v39 = vand.u32 15, %v856_v35 }
  0x93   : > { %4939 = vmatprep.mubr.bf16.mxu0 %v407_v43  ;;  %4955 = vmatprep.mubr.bf16.mxu1 %v415_v45  ;;  %v8040_v42 = vmov 0   ;;  %v851_v45 = vadd.s32 16, %v5715_v27  ;;  %v948_v47 = vand.u32 15, %v858_v38  ;;  %v864_v51 = vadd.s32 120, %v5715_v27 }
  0x94   : > { %4536 = vmatpush3.bf16.msra.mxu0 %v5181_v1  ;;  %4424 = vmatpush3.bf16.msra.mxu1 %v5182_v3  ;;  %vm5720_vm0 = vcmp.le.s32.totalorder %v892_v31, 14  ;;  %vm5725_vm1 = vcmp.le.s32.totalorder %v906_v32, 14  ;;  %vm5729_vm4 = vcmp.le.s32.totalorder %v920_v33, 14  ;;  %v5746_v43 = vsel %vm1394_vm3, 65537, %v8040_v42 }
  0x95   : > { %4537 = vmatprep.subr.bf16.mxu0 %v5183_v4  ;;  %4425 = vmatprep.subr.bf16.mxu1 %v5184_v6  ;;  %vm1593_vm5 = vmpackc.low %vm5720_vm0, %vm5720_vm0  ;;  %vm5753_vm8 = vcmp.le.s32.totalorder %v934_v39, 14  ;;  %vm5758_vm9 = vcmp.ge.s32.totalorder %v885_v40, 1  ;;  %vm5769_vm11 = vcmp.le.s32.totalorder %v948_v47, 14  ;;  %v976_v60 = vand.u32 15, %v862_v48 }
  0x96   : > { %vm1595_vm6 = vmpackc.low %vm5725_vm1, %vm5725_vm1  ;;  %v1625_v44 = vsel %vm1593_vm5, 65537, %v8040_v42  ;;  %v990_v61 = vand.u32 15, %v864_v51  ;;  %v859_v25 = vadd.s32 80, %v5715_v27  ;;  %v872_v31 = vadd.s32 184, %v5715_v27 }
  0x97   : > { %vm1597_vm7 = vmpackc.low %vm5729_vm4, %vm5729_vm4  ;;  %v1627_v46 = vsel %vm1595_vm6, 65537, %v8040_v42  ;;  %v4241_v53 = vcombine.low %v5746_v43, %v1625_v44  ;;  %vm5796_vm1 = vcmp.le.s32.totalorder %v976_v60, 14  ;;  %v874_v35 = vadd.s32 200, %v5715_v27 }
  0x98   : > { %4538 = vmatpush3.bf16.msra.mxu0 %v5185_v5  ;;  %4426 = vmatpush3.bf16.msra.mxu1 %v5186_v7  ;;  %v1629_v49 = vsel %vm1597_vm7, 65537, %v8040_v42  ;;  %vm1599_vm10 = vmpackc.low %vm5753_vm8, %vm5753_vm8  ;;  %v868_v5 = vadd.s32 152, %v5715_v27  ;;  %vm5803_vm3 = vcmp.le.s32.totalorder %v990_v61, 14  ;;  %v861_v38 = vadd.s32 96, %v5715_v27 }
  0x99   : > { %4539 = vmatprep.subr.bf16.mxu0 %v5187_v8  ;;  %4427 = vmatprep.subr.bf16.mxu1 %v5188_v10  ;;  %v4243_v58 = vcombine.low %v5746_v43, %v1629_v49  ;;  %vm1767_vm13 = vmpackc.low %vm5758_vm9, %vm5758_vm9  ;;  %v1631_v4 = vsel %vm1599_vm10, 65537, %v8040_v42  ;;  %v855_v8 = vadd.s32 48, %v5715_v27  ;;  %v955_v40 = vand.u32 15, %v859_v25 }
  0x9a   : > { %4940 = vmatmul.mubr.bf16.gmra.mxu0 %v408_v54  ;;  %4956 = vmatmul.mubr.bf16.gmra.mxu1 %v416_v56  ;;  %v962_v54 = vand.u32 15, %v860_v41  ;;  %v4242_v56 = vcombine.low %v5746_v43, %v1627_v46  ;;  %vm1601_vm0 = vmpackc.low %vm5769_vm11, %vm5769_vm11  ;;  %v5793_v6 = vsel %vm1767_vm13, 65537, %v8040_v42  ;;  %v863_v44 = vadd.s32 112, %v5715_v27 }
  0x9b   : > { %4943 = vmatprep.mubr.bf16.mxu0 %v409_v55  ;;  %4959 = vmatprep.mubr.bf16.mxu1 %v417_v57  ;;  %v866_v55 = vadd.s32 136, %v5715_v27  ;;  %v899_v57 = vand.u32 15, %v851_v45  ;;  %v1707_v7 = vrot.slane %v4243_v58, 7  ;;  %vm1605_vm6 = vmpackc.low %vm5796_vm1, %vm5796_vm1  ;;  %v5871_v46 = vrot.slane %v8040_v42, 1 }
  0x9c   : > { %4540 = vmatpush3.bf16.msra.mxu0 %v5189_v9  ;;  %4428 = vmatpush3.bf16.msra.mxu1 %v5190_v11  ;;  %vm5779_vm14 = vcmp.le.s32.totalorder %v962_v54, 14  ;;  %v1705_v2 = vrot.slane %v4242_v56, 7  ;;  %v870_v11 = vadd.s32 168, %v5715_v27  ;;  %vm1607_vm7 = vmpackc.low %vm5803_vm3, %vm5803_vm3  ;;  %v1637_v30 = vsel %vm1605_vm6, 65537, %v8040_v42 }
  0x9d   : > { %4541 = vmatprep.subr.bf16.mxu0 %v5191_v12  ;;  %4429 = vmatprep.subr.bf16.mxu1 %v5192_v14  ;;  %v1004_v1 = vand.u32 15, %v866_v55  ;;  %vm5783_vm15 = vcmp.ge.s32.totalorder %v899_v57, 1  ;;  %vm1603_vm2 = vmpackc.low %vm5779_vm14, %vm5779_vm14  ;;  %v1633_v14 = vsel %vm1601_vm0, 65537, %v8040_v42  ;;  %v1639_v33 = vsel %vm1607_vm7, 65537, %v8040_v42  ;;  %8157 = vst [vmem:[#allocation19_spill] sm:$0xff] %v5871_v46 }
  0x9e   : > { %vm1393_vm4 = vmpackc.low %vm5783_vm15, %vm5783_vm15  ;;  %v4247_v41 = vcombine.low %v5746_v43, %v1637_v30  ;;  %v4248_v48 = vcombine.low %v5746_v43, %v1639_v33  ;;  %v1046_v49 = vand.u32 15, %v872_v31  ;;  %v969_v57 = vand.u32 15, %v861_v38 }
  0x9f   : > { %vm5813_vm5 = vcmp.le.s32.totalorder %v1004_v1, 14  ;;  %vm5901_vm3 = vcmp.ge.s32.totalorder %v955_v40, 1  ;;  %v876_v34 = vadd.s32 216, %v5715_v27  ;;  %v867_v10 = vadd.s32 144, %v5715_v27 }
  0xa0   : > { %4542 = vmatpush3.bf16.msra.mxu0 %v5193_v13  ;;  %4430 = vmatpush3.bf16.msra.mxu1 %v5194_v15  ;;  %v4244_v13 = vcombine.low %v5746_v43, %v1631_v4  ;;  %vm1609_vm8 = vmpackc.low %vm5813_vm5, %vm5813_vm5  ;;  %v1715_v61 = vrot.slane %v4247_v41, 7  ;;  %v1717_v3 = vrot.slane %v4248_v48, 7 }
  0xa1   : > { %4543 = vmatprep.subr.bf16.mxu0 %v5195_v16  ;;  %4431 = vmatprep.subr.bf16.mxu1 %v5196_v18  ;;  %v4257_v16 = vcombine.low %v5793_v6, %v5746_v43  ;;  %v1018_v18 = vand.u32 15, %v868_v5  ;;  %v1641_v39 = vsel %vm1609_vm8, 65537, %v8040_v42  ;;  %vm1401_vm7 = vmpackc.low %vm5901_vm3, %vm5901_vm3  ;;  %vm5940_vm8 = vcmp.ge.s32.totalorder %v969_v57, 1 }
  0xa2   : > { %4944 = vmatmul.mubr.bf16.gmra.mxu0 %v410_v62  ;;  %4960 = vmatmul.mubr.bf16.gmra.mxu1 %v418_v63  ;;  %v5776_v62 = vrot.slane %v4241_v53, 7  ;;  %v853_v63 = vadd.s32 32, %v5715_v27  ;;  %v1709_v29 = vrot.slane %v4244_v13, 7  ;;  %v4249_v52 = vcombine.low %v5746_v43, %v1641_v39 }
  0xa3   : > { %vm5850_vm10 = vcmp.le.s32.totalorder %v1018_v18, 14  ;;  %v1060_v53 = vand.u32 15, %v874_v35  ;;  %v5963_v28 = vsel %vm844_vm12, %v1715_v61, %v1717_v3  ;;  %v8170_v57 = vmov 0 }
  0xa4   : > { %4544 = vmatpush3.bf16.msra.mxu0 %v5197_v17  ;;  %4432 = vmatpush3.bf16.msra.mxu1 %v5198_v19  ;;  %8136 = vst [vmem:[#allocation16_spill] sm:$0xff] %v5776_v62  ;;  %v913_v12 = vand.u32 15, %v853_v63  ;;  %v5821_v17 = vsel %vm844_vm12, %v5776_v62, %v1705_v2  ;;  %v5827_v19 = vsel %vm844_vm12, %v1705_v2, %v1707_v7  ;;  %vm1611_vm15 = vmpackc.low %vm5850_vm10, %vm5850_vm10  ;;  %v983_v63 = vand.u32 15, %v863_v44 }
  0xa5   : > { %4545 = vmatprep.subr.bf16.mxu0 %v5199_v20  ;;  %4433 = vmatprep.subr.bf16.mxu1 %v5200_v22  ;;  %8147 = vst [vmem:[#allocation17_spill] sm:$0xff] %v5821_v17  ;;  %8148 = vst [vmem:[#allocation18_spill] sm:$0xff] %v5827_v19  ;;  %v927_v20 = vand.u32 15, %v855_v8  ;;  %v1635_v22 = vsel %vm1603_vm2, 65537, %v8040_v42  ;;  %v5880_v51 = vsel %vm844_vm12, %v1707_v7, %v1709_v29  ;;  %v1643_v0 = vsel %vm1611_vm15, 65537, %v8040_v42 }
  0xa6   : > { %vm5842_vm9 = vcmp.ge.s32.totalorder %v913_v12, 1  ;;  %v4246_v32 = vcombine.low %v5746_v43, %v1635_v22  ;;  %v5926_v8 = vrot.slane %v4249_v52, 7  ;;  %vm5929_vm6 = vcmp.le.s32.totalorder %v1060_v53, 14 }
  0xa7   : > { %vm5855_vm11 = vcmp.ge.s32.totalorder %v927_v20, 1  ;;  %vm1395_vm13 = vmpackc.low %vm5842_vm9, %vm5842_vm9  ;;  %vm5952_vm9 = vcmp.ge.s32.totalorder %v983_v63, 1  ;;  %v1074_v6 = vand.u32 15, %v876_v34  ;;  %v5204_v20 = vld [vmem:[#allocation7 + $0x138] sm:$0xff]  }
  0xa8   : > { %4546 = vmatpush3.bf16.msra.mxu0 %v5201_v21  ;;  %4434 = vmatpush3.bf16.msra.mxu1 %v5202_v23  ;;  %v857_v21 = vadd.s32 64, %v5715_v27  ;;  %v5835_v23 = vsel %vm1393_vm4, 65537, %v8040_v42  ;;  %vm1397_vm0 = vmpackc.low %vm5855_vm11, %vm5855_vm11  ;;  %v5887_v54 = vsel %vm1395_vm13, 65537, %v8040_v42  ;;  %v1713_v56 = vrot.slane %v4246_v32, 7 }
  0xa9   : > { %4643 = vmatprep.subr.bf16.mxu1 %v5203_v24  ;;  %4755 = vmatprep.subr.bf16.mxu0 %v5211_v26  ;;  %v4245_v24 = vcombine.low %v5746_v43, %v1633_v14  ;;  %v1032_v26 = vand.u32 15, %v870_v11  ;;  %v4226_v50 = vcombine.low %v5835_v23, %v5746_v43  ;;  %v5912_v1 = vsel %vm1397_vm0, 65537, %v8040_v42  ;;  %vm1617_vm13 = vmpackc.low %vm5929_vm6, %vm5929_vm6 }
  0xaa   : > { %v941_v37 = vand.u32 15, %v857_v21  ;;  %vm5917_vm4 = vcmp.le.s32.totalorder %v1046_v49, 14  ;;  %v4227_v7 = vcombine.low %v5887_v54, %v5746_v43  ;;  %v4250_v14 = vcombine.low %v5746_v43, %v1643_v0  ;;  %vm1405_vm15 = vmpackc.low %vm5952_vm9, %vm5952_vm9  ;;  %v5205_v54 = vld [vmem:[#allocation7 + $0x170] sm:$0xff]  }
  0xab   : > { %vm5866_vm14 = vcmp.le.s32.totalorder %v1032_v26, 14  ;;  %v1711_v47 = vrot.slane %v4245_v24, 7  ;;  %v5950_v21 = vsel %vm844_vm12, %v1713_v56, %v1715_v61  ;;  %v865_v24 = vadd.s32 128, %v5715_v27  ;;  %vm1615_vm10 = vmpackc.low %vm5917_vm4, %vm5917_vm4 }
  0xac   : > { %vm5889_vm1 = vcmp.ge.s32.totalorder %v941_v37, 1  ;;  %vm1613_vm2 = vmpackc.low %vm5866_vm14, %vm5866_vm14  ;;  %vm8065_vm11 = vsmask.f32 256  ;;  %v5983_v32 = vsel %vm1401_vm7, 65537, %v8040_v42  ;;  %v5990_v33 = vsel %vm844_vm12, %v1717_v3, %v5926_v8 }
  0xad   : > { %v5915_v2 = vsel %vm844_vm12, %v1709_v29, %v1711_v47  ;;  %vm1399_vm5 = vmpackc.low %vm5889_vm1, %vm5889_vm1  ;;  %v1645_v9 = vsel %vm1613_vm2, 65537, %v8040_v42  ;;  %v5935_v12 = vsel %vm844_vm12, %v1711_v47, %v1713_v56  ;;  %v1721_v38 = vrot.slane %v4250_v14, 7 }
  0xae   : > { %v4251_v29 = vcombine.low %v5746_v43, %v1645_v9  ;;  %v5975_v31 = vsel %vm1399_vm5, 65537, %v8040_v42  ;;  %vm1403_vm14 = vmpackc.low %vm5940_vm8, %vm5940_vm8  ;;  %v997_v41 = vand.u32 15, %v865_v24  ;;  %v1647_v44 = vsel %vm1615_vm10, 65537, %v8040_v42 }
  0xaf   : > { %v1649_v45 = vsel %vm1617_vm13, 65537, %v8040_v42  ;;  %v878_v47 = vadd.s32 232, %v5715_v27  ;;  %vm6018_vm0 = vcmp.ne.s16.totalorder %v4257_v16, 0  ;;  %v6036_v60 = vsel %vm1405_vm15, 65537, %v8040_v42  ;;  %vm6060_vm6 = vmand %vm844_vm12, %vm8065_vm11 }
  0xb0   : > { %v6012_v53 = vrot.slane %v4251_v29, 7  ;;  %v8171_v57 = vsel %vm6018_vm0, 4294967295, %v8170_v57  ;;  %8173 = vst [vmem:[#allocation21_spill] sm:$0xff] %v6036_v60  ;;  %v4252_v63 = vcombine.low %v5746_v43, %v1647_v44  ;;  %v4253_v0 = vcombine.low %v5746_v43, %v1649_v45 }
  0xb1   : > { %8172 = vst [vmem:[#allocation20_spill] sm:$0xff] %v8171_v57  ;;  %vm6043_vm1 = vcmp.ge.s32.totalorder %v997_v41, 1  ;;  %vm8059_vm2 = vcmp.ne.s16.totalorder %v5821_v17, 0  ;;  %vm6052_vm3 = vcmp.le.s32.totalorder %v1074_v6, 14  ;;  %vm8090_vm4 = vcmask 1046528   ;;  %v5212_v57 = vld [vmem:[#allocation7 + $0x1b8] sm:$0xff]  }
  0xb2   : > { %vm8088_vm5 = vsmask.f32 7424  ;;  %v8178_v41 = vmov 0  ;;  %vm6075_vm7 = vcmp.ne.s16.totalorder %v4226_v50, 0  ;;  %vm1407_vm8 = vmpackc.low %vm6043_vm1, %vm6043_vm1  ;;  %v6084_v6 = vsel %vm844_vm12, %v5926_v8, %v1721_v38 }
  0xb3   : > { %v8179_v41 = vsel %vm6060_vm6, 4294967295, %v8178_v41  ;;  %vm8064_vm9 = vcmp.ne.s16.totalorder %v5827_v19, 0  ;;  %vm1619_vm10 = vmpackc.low %vm6052_vm3, %vm6052_vm3  ;;  %v6137_v9 = vadd.s32 160, %v5715_v27  ;;  %vm8060_vm1 = vcmp.ne.s16.totalorder %v5880_v51, 0 }
  0xb4   : > { %8180 = vst [vmem:[#allocation22_spill] sm:$0xff] %v8179_v41  ;;  %vm6182_vm3 = vcmp.ne.s16.totalorder %v4227_v7, 0 }
 0x14a   : > { %v4933_v58 = vpop.f32.mrf.mxu0  ;;  %v5945_v18 = vpop.f32.mrf.mxu1 }
 0x14b   : > { %v533_v11 = vadd.f32 %v4933_v58, %v5899_v59  ;;  %v6028_v58 = vsel %vm1403_vm14, 65537, %v8040_v42 }
 0x14c   : > { %v524_v5 = vpop.f32.mrf.mxu0  ;;  %v5997_v40 = vpop.f32.mrf.mxu1 }
 0x14d   : > { %v525_v25 = vadd.f32 %v5899_v59, %v524_v5  ;;  %v653_v35 = vmax.f32 %v533_v11, 0.0  ;;  %v1088_v11 = vand.u32 15, %v878_v47  ;;  %v6164_v47 = vadd.s32 176, %v5715_v27 }
 0x14e   : > { %v4934_v15 = vpop.f32.mrf.mxu0  ;;  %v6041_v5 = vpop.f32.mrf.mxu1 }
 0x14f   : > { %v536_v26 = vadd.f32 %v4934_v15, %v5899_v59  ;;  %v651_v48 = vmax.f32 %v525_v25, 0.0  ;;  %vm6102_vm13 = vcmp.le.s32.totalorder %v1088_v11, 14  ;;  %v6122_v11 = vsel %vm1407_vm8, 65537, %v8040_v42 }
 0x150   : > { %v527_v30 = vpop.f32.mrf.mxu0  ;;  %v6064_v44 = vpop.f32.mrf.mxu1  ;;  %8188 = vst [vmem:[#allocation26_spill] sm:$0xff] %v6122_v11  ;;  %vm1621_vm15 = vmpackc.low %vm6102_vm13, %vm6102_vm13 }
 0x151   : > { %v654_v36 = vmax.f32 %v536_v26, 0.0  ;;  %v528_v37 = vadd.f32 %v5899_v59, %v527_v30 }
 0x152   : > { %v4937_v39 = vpop.f32.mrf.mxu0  ;;  %v6093_v23 = vpop.f32.mrf.mxu1 }
 0x153   : > { %v684_v49 = vpack.c.bf16 %v654_v36, %v653_v35  ;;  %v652_v52 = vmax.f32 %v528_v37, 0.0  ;;  %v549_v55 = vadd.f32 %v4937_v39, %v5899_v59 }
 0x154   : > { %v540_v56 = vpop.f32.mrf.mxu0 }
 0x155   : > { %v708_v16 = vshrl.u32 %v684_v49, 16  ;;  %v683_v61 = vpack.c.bf16 %v652_v52, %v651_v48  ;;  %v541_v3 = vadd.f32 %v5899_v59, %v540_v56  ;;  %v711_v14 = vshll.u32 %v684_v49, 16 }
 0x156   : > { %v4938_v4 = vpop.f32.mrf.mxu0  ;;  %v657_v25 = vmax.f32 %v549_v55, 0.0  ;;  %v1011_v48 = vand.u32 15, %v867_v10  ;;  %v6070_v49 = vrot.slane %v4252_v63, 7  ;;  %v8181_v56 = vmov 0 }
 0x157   : > { %v6048_v13 = vrot.slane %v708_v16, 7  ;;  %v701_v15 = vshrl.u32 %v683_v61, 16  ;;  %v552_v22 = vadd.f32 %v4938_v4, %v5899_v59  ;;  %v704_v24 = vshll.u32 %v683_v61, 16 }
 0x158   : > { %v655_v26 = vmax.f32 %v541_v3, 0.0  ;;  %v543_v29 = vpop.f32.mrf.mxu0  ;;  %v8182_v56 = vsel %vm6075_vm7, 4294967295, %v8181_v56  ;;  %v6088_v16 = vsel %vm844_vm12, %v1721_v38, %v6012_v53  ;;  %vm6124_vm14 = vcmp.ge.s32.totalorder %v1011_v48, 1 }
 0x159   : > { %v713_v34 = vor.u32 %v711_v14, %v6048_v13  ;;  %v703_v35 = vrot.slane %v701_v15, 7  ;;  %v658_v36 = vmax.f32 %v552_v22, 0.0  ;;  %v544_v37 = vadd.f32 %v5899_v59, %v543_v29  ;;  %8183 = vst [vmem:[#allocation23_spill] sm:$0xff] %v8182_v56  ;;  %8184 = vst [vmem:[#allocation24_spill] sm:$0xff] %v6088_v16 }
 0x15a   : > { %v4941_v39 = vpop.f32.mrf.mxu0  ;;  %v6110_v14 = vrot.slane %v4253_v0, 7  ;;  %v6131_v0 = vsel %vm844_vm12, %v6012_v53, %v6070_v49  ;;  %v6140_v29 = vsel %vm1619_vm10, 65537, %v8040_v42  ;;  %vm1409_vm8 = vmpackc.low %vm6124_vm14, %vm6124_vm14  ;;  %vm8077_vm10 = vcmp.ne.s16.totalorder %v5915_v2, 0 }
 0x15b   : > { %v706_v52 = vor.u32 %v704_v24, %v703_v35  ;;  %v656_v55 = vmax.f32 %v544_v37, 0.0  ;;  %v6090_v61 = vpack.c.bf16 %v658_v36, %v657_v25  ;;  %v6107_v38 = vsel %vm8065_vm11, %v703_v35, %v713_v34  ;;  %8191 = vst [vmem:[#allocation27_spill] sm:$0xff] %v6131_v0  ;;  %v6153_v37 = vpop.f32.mrf.mxu1 }
 0x15c   : > { %v556_v63 = vpop.f32.mrf.mxu0  ;;  %8187 = vst [vmem:[#allocation25_spill] sm:$0xff] %v6107_v38  ;;  %v1858_v36 = vshll.u32 %v6107_v38, 16 }
 0x15d   : > { %v685_v4 = vpack.c.bf16 %v656_v55, %v655_v26  ;;  %v557_v10 = vadd.f32 %v5899_v59, %v556_v63  ;;  %v6114_v22 = vsel %vm6060_vm6, 0, %v706_v52  ;;  %v724_v30 = vshrl.u32 %v6090_v61, 16  ;;  %v6195_v7 = vpop.f32.mrf.mxu1 }
 0x15e   : > { %v4942_v15 = vpop.f32.mrf.mxu0  ;;  %4346 = vmatprep.mubr.msk.bf16.mxu0 %vm6018_vm0, %v6114_v22  ;;  %v6149_v34 = vsel %vm8059_vm2, %v6114_v22, 0  ;;  %v1850_v35 = vshll.u32 %v6114_v22, 16  ;;  %v1854_v50 = vshrl.u32 %v6114_v22, 16  ;;  %v8192_v63 = vmov 0 }
 0x15f   : > { %v716_v25 = vshrl.u32 %v685_v4, 16  ;;  %v719_v26 = vshll.u32 %v685_v4, 16  ;;  %v659_v52 = vmax.f32 %v557_v10, 0.0  ;;  %v6172_v10 = vsel %vm1621_vm15, 65537, %v8040_v42 }
 0x160   : > { %v559_v53 = vpop.f32.mrf.mxu0  ;;  %v1852_v3 = vrot.slane %v1850_v35, 1  ;;  %v6177_v35 = vadd.f32 %v4941_v39, %v5899_v59  ;;  %v8193_v63 = vsel %vm6182_vm3, 4294967295, %v8192_v63  ;;  %v1860_v42 = vrot.slane %v1858_v36, 1 }
 0x161   : > { %v6155_v48 = vrot.slane %v716_v25, 7  ;;  %v560_v55 = vadd.f32 %v5899_v59, %v559_v53  ;;  %v727_v25 = vshll.u32 %v6090_v61, 16  ;;  %8194 = vst [vmem:[#allocation28_spill] sm:$0xff] %v8193_v63  ;;  %v8195_v61 = vrot.slane %v6149_v34, 1 }
 0x162   : > { %v6159_v4 = vpop.f32.mrf.mxu0  ;;  %v1853_v39 = vsel %vm8088_vm5, %v5871_v46, %v1852_v3  ;;  %v6197_v17 = vrot.slane %v724_v30, 7  ;;  %v568_v62 = vadd.f32 %v4942_v15, %v5899_v59  ;;  %v6228_v15 = vsel %vm844_vm12, %v6070_v49, %v6110_v14 }
 0x163   : > { %v721_v53 = vor.u32 %v719_v26, %v6155_v48  ;;  %v660_v45 = vmax.f32 %v560_v55, 0.0  ;;  %v2010_v8 = vsel %vm8090_vm4, %v5871_v46, %v8195_v61  ;;  %v1856_v55 = vor.u32 %v1854_v50, %v1852_v3  ;;  %2816 = vmatprep.mubr.bf16.mxu1 %v1853_v39  ;;  %v5215_v61 = vld [vmem:[#allocation7 + $0x1f0] sm:$0xff]   ;;  %8198 = vst [vmem:[#allocation30_spill] sm:$0xff] %v6228_v15 }
 0x164   : > { %v572_v26 = vpop.f32.mrf.mxu0  ;;  %2978 = vmatmul.mubr.bf16.vlgmr.msra.gmra.mxu0 %v2010_v8  ;;  %v8196_v50 = vmov 0   ;;  %v1039_v46 = vand.u32 15, %v6164_v47  ;;  %v729_v15 = vor.u32 %v727_v25, %v6197_v17  ;;  %v661_v24 = vmax.f32 %v6177_v35, 0.0 }
 0x165   : > { %v6201_v0 = vsel %vm8065_vm11, %v6048_v13, %v721_v53  ;;  %v6204_v16 = vpack.c.bf16 %v660_v45, %v659_v52  ;;  %4347 = vmatprep.mubr.msk.bf16.mxu0 %vm6075_vm7, %v6107_v38  ;;  %2817 = vmatmul.mubr.bf16.vlgmr.msra.gmra.mxu1 %v8196_v50  ;;  %v6211_v3 = vsel %vm8088_vm5, %v1856_v55, %v1860_v42  ;;  %v6223_v45 = vsel %vm1409_vm8, 65537, %v8196_v50  ;;  %v5206_v53 = vld [vmem:[#allocation7 + $0x130] sm:$0xff]   ;;  %v5207_v55 = vld [vmem:[#allocation7 + $0x168] sm:$0xff]  }
 0x166   : > { %8197 = vst [vmem:[#allocation29_spill] sm:$0xff] %v6211_v3  ;;  %v6213_v30 = vpop.f32.mrf.mxu0  ;;  %4644 = vmatpush3.bf16.msra.mxu1 %v5204_v20  ;;  %2824 = vmatprep.mubr.bf16.mxu1 %v6211_v3  ;;  %v6235_v52 = vsel %vm8064_vm9, %v6107_v38, 0  ;;  %v1866_v49 = vshll.u32 %v6201_v0, 16  ;;  %v6242_v20 = vpop.f32.mrf.mxu1  ;;  %v1025_v13 = vand.u32 15, %v6137_v9  ;;  %v880_v3 = vadd.s32 248, %v5715_v27 }
 0x167   : > { %v732_v36 = vshrl.u32 %v6204_v16, 16  ;;  %4645 = vmatprep.subr.bf16.mxu1 %v5205_v54  ;;  %4756 = vmatpush3.bf16.msra.mxu0 %v5212_v57  ;;  %v662_v19 = vmax.f32 %v568_v62, 0.0  ;;  %v6251_v8 = vadd.f32 %v5899_v59, %v5997_v40  ;;  %v8058_v54 = vrot.slane %v6235_v52, 1 }
 0x168   : > { %v575_v39 = vpop.f32.mrf.mxu0  ;;  %4757 = vmatprep.subr.bf16.mxu0 %v5215_v61  ;;  %v1862_v57 = vshrl.u32 %v6107_v38, 16  ;;  %v1868_v11 = vrot.slane %v1866_v49, 1  ;;  %v592_v47 = vadd.f32 %v5899_v59, %v6064_v44  ;;  %v6258_v9 = vpop.f32.mrf.mxu1  ;;  %v735_v62 = vshll.u32 %v6204_v16, 16  ;;  %v5208_v44 = vld [vmem:[#allocation7 + $0x128] sm:$0xff]  }
 0x169   : > { %v6260_v25 = vrot.slane %v732_v36, 7  ;;  %v573_v40 = vadd.f32 %v5899_v59, %v572_v26  ;;  %v576_v35 = vadd.f32 %v5899_v59, %v575_v39  ;;  %v8199_v61 = vcombine.low %v5912_v1, %v5746_v43  ;;  %v5209_v26 = vld [vmem:[#allocation7 + $0x160] sm:$0xff]   ;;  %v5216_v1 = vld [vmem:[#allocation7 + $0x1b0] sm:$0xff]  }
 0x16a   : > { %v8200_v49 = vmov 0  ;;  %4646 = vmatpush3.bf16.msra.mxu1 %v5206_v53  ;;  %v8203_v36 = vrot.slane %v6149_v34, 1  ;;  %v1864_v16 = vor.u32 %v1862_v57, %v1860_v42  ;;  %vm6277_vm14 = vcmp.ge.s32.totalorder %v1025_v13, 1  ;;  %v5219_v13 = vld [vmem:[#allocation7 + $0x1e8] sm:$0xff]  }
 0x16b   : > { %vm6268_vm13 = vcmp.ne.s16.totalorder %v8199_v61, 0  ;;  %4647 = vmatprep.subr.bf16.mxu1 %v5207_v55  ;;  %v1102_v61 = vand.u32 15, %v880_v3  ;;  %v6283_v60 = vsel %vm8065_vm11, %v6155_v48, %v729_v15  ;;  %v6285_v53 = vpack.c.bf16 %v662_v19, %v661_v24  ;;  %v6310_v3 = vpop.f32.mrf.mxu1  ;;  %4758 = vmatpush3.bf16.msra.mxu0 %v5216_v1  ;;  %vm1411_vm8 = vmpackc.low %vm6277_vm14, %vm6277_vm14 }
 0x16c   : > { %v8201_v49 = vsel %vm6268_vm13, 4294967295, %v8200_v49  ;;  %v2012_v41 = vsel %vm8090_vm4, %v8203_v36, %v8058_v54  ;;  %v6290_v34 = vsel %vm8060_vm1, %v6201_v0, 0  ;;  %vm6292_vm15 = vcmp.ge.s32.totalorder %v1039_v46, 1  ;;  %v5210_v36 = vld [vmem:[#allocation7 + $0x120] sm:$0xff]   ;;  %v5213_v54 = vld [vmem:[#allocation7 + $0x158] sm:$0xff]   ;;  %4759 = vmatprep.subr.bf16.mxu0 %v5219_v13 }
 0x16d   : > { %8202 = vst [vmem:[#allocation31_spill] sm:$0xff] %v8201_v49  ;;  %2986 = vmatmul.mubr.bf16.gmra.mxu0 %v2012_v41  ;;  %4331 = vmatmul.mubr.msk.bf16.gmra.mxu1 %vm6075_vm7, %v6114_v22  ;;  %v6303_v19 = vsel %vm8088_vm5, %v1864_v16, %v1868_v11  ;;  %v597_v41 = vadd.f32 %v5945_v18, %v5899_v59  ;;  %v667_v46 = vmax.f32 %v6251_v8, 0.0  ;;  %v663_v24 = vmax.f32 %v573_v40, 0.0  ;;  %v6334_v56 = vpop.f32.mrf.mxu1  ;;  %vm1413_vm1 = vmpackc.low %vm6292_vm15, %vm6292_vm15 }
 0x16e   : > { %4348 = vmatprep.mubr.msk.bf16.mxu0 %vm6182_vm3, %v6201_v0  ;;  %8208 = vst [vmem:[#allocation32_spill] sm:$0xff] %v6303_v19  ;;  %v600_v48 = vadd.f32 %v6041_v5, %v5899_v59  ;;  %v737_v15 = vor.u32 %v735_v62, %v6260_v25  ;;  %v664_v55 = vmax.f32 %v576_v35, 0.0  ;;  %2832 = vmatprep.mubr.bf16.mxu1 %v6303_v19  ;;  %v668_v57 = vmax.f32 %v592_v47, 0.0  ;;  %v5220_v62 = vld [vmem:[#allocation7 + $0x1a8] sm:$0xff]  }
 0x16f   : > { %4648 = vmatpush3.bf16.msra.mxu1 %v5208_v44  ;;  %v6316_v16 = vadd.f32 %v6159_v4, %v5899_v59  ;;  %v1870_v8 = vshrl.u32 %v6201_v0, 16  ;;  %v1874_v5 = vshll.u32 %v6283_v60, 16  ;;  %v740_v40 = vshrl.u32 %v6285_v53, 16  ;;  %v5223_v4 = vld [vmem:[#allocation7 + $0x1e0] sm:$0xff]   ;;  %4760 = vmatpush3.bf16.msra.mxu0 %v5220_v62 }
 0x170   : > { %4649 = vmatprep.subr.bf16.mxu1 %v5209_v26  ;;  %v584_v47 = vadd.f32 %v6213_v30, %v5899_v59  ;;  %vm6329_vm2 = vcmp.le.s32.totalorder %v1102_v61, 14  ;;  %v669_v26 = vmax.f32 %v597_v41, 0.0  ;;  %v670_v1 = vmax.f32 %v600_v48, 0.0  ;;  %v5214_v48 = vld [vmem:[#allocation7 + $0x118] sm:$0xff]   ;;  %4761 = vmatprep.subr.bf16.mxu0 %v5223_v4 }
 0x171   : > { %v1872_v18 = vor.u32 %v1870_v8, %v1868_v11  ;;  %v8211_v30 = vcombine.low %v5746_v43, %v6140_v29  ;;  %v6341_v19 = vsel %vm8065_vm11, %v6197_v17, %v737_v15  ;;  %v6343_v13 = vpack.c.bf16 %v664_v55, %v663_v24  ;;  %vm1623_vm11 = vmpackc.low %vm6329_vm2, %vm6329_vm2  ;;  %v5225_v8 = vld [vmem:[#allocation7 + $0x1d8] sm:$0xff]  }
 0x172   : > { %v6345_v61 = vpack.c.bf16 %v668_v57, %v667_v46  ;;  %v8212_v41 = vcombine.low %v5975_v31, %v5746_v43  ;;  %v8213_v11 = vmov 0  ;;  %v8216_v17 = vcombine.low %v5746_v43, %v6172_v10  ;;  %v5217_v10 = vld [vmem:[#allocation7 + $0x150] sm:$0xff]  }
 0x173   : > { %v1729_v35 = vrot.slane %v8211_v30, 7  ;;  %4650 = vmatpush3.bf16.msra.mxu1 %v5210_v36  ;;  %v665_v46 = vmax.f32 %v6316_v16, 0.0  ;;  %v8217_v15 = vrot.slane %v6290_v34, 1  ;;  %v8218_v31 = vrot.slane %v6235_v52, 1  ;;  %v5224_v36 = vld [vmem:[#allocation7 + $0x1a0] sm:$0xff]  }
 0x174   : > { %vm6350_vm9 = vcmp.ne.s16.totalorder %v8212_v41, 0  ;;  %v6360_v29 = vrot.slane %v8216_v17, 7  ;;  %v1876_v55 = vrot.slane %v1874_v5, 1  ;;  %4651 = vmatprep.subr.bf16.mxu1 %v5213_v54  ;;  %v6374_v57 = vsel %vm1411_vm8, 65537, %v8196_v50  ;;  %4762 = vmatpush3.bf16.msra.mxu0 %v5224_v36 }
 0x175   : > { %v8214_v11 = vsel %vm6350_vm9, 4294967295, %v8213_v11  ;;  %v2014_v24 = vsel %vm8090_vm4, %v8218_v31, %v8217_v15  ;;  %v6379_v52 = vrot.slane %v740_v40, 7  ;;  %v743_v16 = vshll.u32 %v6285_v53, 16  ;;  %4332 = vmatmul.mubr.msk.bf16.gmra.mxu1 %vm6182_vm3, %v6107_v38  ;;  %v6399_v40 = vpop.f32.mrf.mxu1  ;;  %v5221_v15 = vld [vmem:[#allocation7 + $0x148] sm:$0xff]   ;;  %v5227_v31 = vld [vmem:[#allocation7 + $0x198] sm:$0xff]   ;;  %4763 = vmatprep.subr.bf16.mxu0 %v5225_v8 }
 0x176   : > { %8215 = vst [vmem:[#allocation33_spill] sm:$0xff] %v8214_v11  ;;  %v666_v54 = vmax.f32 %v584_v47, 0.0  ;;  %2994 = vmatmul.mubr.bf16.gmra.mxu0 %v2014_v24  ;;  %v6385_v39 = vsel %vm8077_vm10, %v6283_v60, 0  ;;  %v6390_v5 = vpack.c.bf16 %v670_v1, %v669_v26  ;;  %v6396_v53 = vsel %vm8088_vm5, %v1872_v18, %v1876_v55  ;;  %v5218_v18 = vld [vmem:[#allocation7 + $0x110] sm:$0xff]  }
 0x177   : > { %4349 = vmatprep.mubr.msk.bf16.mxu0 %vm6268_vm13, %v6283_v60  ;;  %8219 = vst [vmem:[#allocation34_spill] sm:$0xff] %v6396_v53  ;;  %v1882_v62 = vshll.u32 %v6341_v19, 16  ;;  %v6407_v47 = vsel %vm1413_vm1, 65537, %v8196_v50  ;;  %v748_v4 = vshrl.u32 %v6343_v13, 16  ;;  %2840 = vmatprep.mubr.bf16.mxu1 %v6396_v53  ;;  %v764_v26 = vshrl.u32 %v6345_v61, 16  ;;  %v4961_v17 = vpop.f32.mrf.mxu1 }
 0x178   : > { %8220 = vst [vmem:[#allocation35_spill] sm:$0xff] %v6407_v47  ;;  %4652 = vmatpush3.bf16.msra.mxu1 %v5214_v48  ;;  %v6414_v1 = vsel %vm844_vm12, %v6110_v14, %v1729_v35  ;;  %v6422_v42 = vsel %vm1623_vm11, 65537, %v8196_v50  ;;  %v1878_v41 = vshrl.u32 %v6283_v60, 16  ;;  %v6430_v14 = vsel %vm844_vm12, %v1729_v35, %v6360_v29  ;;  %4764 = vmatpush3.bf16.msra.mxu0 %v5227_v31  ;;  %v5231_v31 = vld [vmem:[#allocation7 + $0x1c8] sm:$0xff]  }
 0x179   : > { %4653 = vmatprep.subr.bf16.mxu1 %v5217_v10  ;;  %v745_v44 = vor.u32 %v743_v16, %v6379_v52  ;;  %v6433_v24 = vpack.c.bf16 %v666_v54, %v665_v46  ;;  %vm8076_vm11 = vcmp.ne.s16.totalorder %v5950_v21, 0  ;;  %v6439_v63 = vadd.s32 192, %v5715_v27  ;;  %v5229_v10 = vld [vmem:[#allocation7 + $0x1d0] sm:$0xff]   ;;  %v636_v50 = vpop.f32.mrf.mxu1 }
 0x17a   : > { %v772_v48 = vshrl.u32 %v6390_v5, 16  ;;  %v1884_v35 = vrot.slane %v1882_v62, 1  ;;  %v6444_v36 = vadd.f32 %v6093_v23, %v5899_v59  ;;  %v6448_v16 = vrot.slane %v748_v4, 7  ;;  %v5222_v23 = vld [vmem:[#allocation7 + $0x108] sm:$0xff]   ;;  %4765 = vmatprep.subr.bf16.mxu0 %v5229_v10 }
 0x17b   : > { %v751_v54 = vshll.u32 %v6343_v13, 16  ;;  %v6451_v30 = vrot.slane %v764_v26, 7  ;;  %v767_v53 = vshll.u32 %v6345_v61, 16  ;;  %v8221_v8 = vcombine.low %v5983_v32, %v5746_v43  ;;  %v5226_v32 = vld [vmem:[#allocation7 + $0x140] sm:$0xff]  }
 0x17c   : > { %v8222_v62 = vmov 0  ;;  %4654 = vmatpush3.bf16.msra.mxu1 %v5218_v18  ;;  %v8225_v4 = vrot.slane %v6385_v39, 1  ;;  %v8226_v46 = vrot.slane %v6290_v34, 1  ;;  %v1880_v26 = vor.u32 %v1878_v41, %v1876_v55 }
 0x17d   : > { %vm6457_vm2 = vcmp.ne.s16.totalorder %v8221_v8, 0  ;;  %v616_v61 = vadd.f32 %v6195_v7, %v5899_v59  ;;  %4655 = vmatprep.subr.bf16.mxu1 %v5221_v15  ;;  %vm8227_vm1 = vsmask.f32 256  ;;  %v756_v8 = vshrl.u32 %v6433_v24, 16  ;;  %v5230_v7 = vld [vmem:[#allocation7 + $0x190] sm:$0xff]   ;;  %4333 = vmatmul.mubr.msk.bf16.gmra.mxu1 %vm6268_vm13, %v6201_v0 }
 0x17e   : > { %v8223_v62 = vsel %vm6457_vm2, 4294967295, %v8222_v62  ;;  %v2016_v13 = vsel %vm8090_vm4, %v8226_v46, %v8225_v4  ;;  %v6471_v18 = vsel %vm8227_vm1, %v6260_v25, %v745_v44  ;;  %v6476_v34 = vadd.f32 %v5899_v59, %v6153_v37  ;;  %v5228_v4 = vld [vmem:[#allocation7 + $0x100] sm:$0xff]   ;;  %4766 = vmatpush3.bf16.msra.mxu0 %v5230_v7  ;;  %vm8231_vm8 = vmmov %vm8227_vm1 }
 0x17f   : > { %8224 = vst [vmem:[#allocation36_spill] sm:$0xff] %v8223_v62  ;;  %3002 = vmatmul.mubr.bf16.gmra.mxu0 %v2016_v13  ;;  %vm8228_vm14 = vcmp.ne.s16.totalorder %v5935_v12, 0  ;;  %v6483_v41 = vrot.slane %v772_v48, 7  ;;  %v6492_v37 = vsel %vm8088_vm5, %v1880_v26, %v1884_v35  ;;  %v673_v25 = vmax.f32 %v6444_v36, 0.0  ;;  %4767 = vmatprep.subr.bf16.mxu0 %v5231_v31 }
 0x180   : > { %v6481_v55 = vsel %vm8228_vm14, %v6341_v19, 0  ;;  %4350 = vmatprep.mubr.msk.bf16.mxu0 %vm6350_vm9, %v6341_v19  ;;  %8229 = vst [vmem:[#allocation37_spill] sm:$0xff] %v6492_v37  ;;  %v1890_v15 = vshll.u32 %v6471_v18, 16  ;;  %v759_v44 = vshll.u32 %v6433_v24, 16  ;;  %v753_v48 = vor.u32 %v751_v54, %v6448_v16  ;;  %2848 = vmatprep.mubr.bf16.mxu1 %v6492_v37  ;;  %v4962_v54 = vpop.f32.mrf.mxu1 }
 0x181   : > { %v6499_v10 = vor.u32 %v767_v53, %v6451_v30  ;;  %v608_v46 = vadd.f32 %v5899_v59, %v6242_v20  ;;  %4656 = vmatpush3.bf16.msra.mxu1 %v5222_v23  ;;  %v674_v36 = vmax.f32 %v616_v61, 0.0  ;;  %v1886_v26 = vshrl.u32 %v6341_v19, 16  ;;  %v6508_v53 = vld [vmem:[#allocation7 + $0x238] sm:$0xff]  }
 0x182   : > { %vm8087_vm15 = vcmp.ne.s16.totalorder %v5963_v28, 0  ;;  %v645_v24 = vadd.f32 %v4961_v17, %v5899_v59  ;;  %4657 = vmatprep.subr.bf16.mxu1 %v5226_v32  ;;  %8230 = vst [vmem:[#allocation38_spill] sm:$0xff] %v6508_v53  ;;  %v758_v38 = vrot.slane %v756_v8, 7  ;;  %v671_v49 = vmax.f32 %v6476_v34, 0.0 }
 0x183   : > { %v629_v20 = vadd.f32 %v6258_v9, %v5899_v59  ;;  %v632_v23 = vadd.f32 %v6334_v56, %v5899_v59  ;;  %v1888_v61 = vor.u32 %v1886_v26, %v1884_v35  ;;  %v1892_v13 = vrot.slane %v1890_v15, 1 }
 0x184   : > { %v621_v37 = vadd.f32 %v5899_v59, %v6310_v3  ;;  %v624_v17 = vadd.f32 %v5899_v59, %v6399_v40  ;;  %v6521_v32 = vsel %vm8231_vm8, %v6379_v52, %v753_v48  ;;  %v672_v8 = vmax.f32 %v608_v46, 0.0  ;;  %v5232_v3 = vld [vmem:[#allocation7 + $0x188] sm:$0xff]   ;;  %v639_v48 = vpop.f32.mrf.mxu1  ;;  %v5233_v46 = vld [vmem:[#allocation7 + $0x1c0] sm:$0xff]  }
 0x185   : > { %v8232_v9 = vcombine.low %v6028_v58, %v5746_v43  ;;  %v8233_v56 = vmov 0  ;;  %v681_v35 = vmax.f32 %v645_v24, 0.0  ;;  %v648_v34 = vadd.f32 %v4962_v54, %v5899_v59  ;;  %4658 = vmatpush3.bf16.msra.mxu1 %v5228_v4  ;;  %4768 = vmatpush3.bf16.msra.mxu0 %v5232_v3 }
 0x186   : > { %v8236_v40 = vrot.slane %v6481_v55, 1  ;;  %v8237_v7 = vrot.slane %v6385_v39, 1  ;;  %v6536_v15 = vpack.c.bf16 %v674_v36, %v673_v25  ;;  %v6541_v58 = vsel %vm8076_vm11, %v6471_v18, 0  ;;  %4963 = vmatprep.subr.bf16.mxu1 %v6508_v53  ;;  %4334 = vmatmul.mubr.msk.bf16.gmra.mxu1 %vm6350_vm9, %v6283_v60  ;;  %vm8241_vm11 = vmmov %vm8231_vm8 }
 0x187   : > { %vm6526_vm1 = vcmp.ne.s16.totalorder %v8232_v9, 0  ;;  %v637_v31 = vadd.f32 %v5899_v59, %v636_v50  ;;  %v1894_v4 = vshrl.u32 %v6471_v18, 16  ;;  %v677_v26 = vmax.f32 %v629_v20, 0.0  ;;  %4769 = vmatprep.subr.bf16.mxu0 %v5233_v46  ;;  %v8242_v46 = vld [vmem:[#allocation21_spill] sm:$0xff] }
 0x188   : > { %v8234_v56 = vsel %vm6526_vm1, 4294967295, %v8233_v56  ;;  %v2018_v52 = vsel %vm8090_vm4, %v8237_v7, %v8236_v40  ;;  %v678_v39 = vmax.f32 %v632_v23, 0.0  ;;  %vm8086_vm14 = vcmp.ne.s16.totalorder %v5990_v33, 0  ;;  %v5234_v40 = vld [vmem:[#allocation7 + $0x180] sm:$0xff]  }
 0x189   : > { %8235 = vst [vmem:[#allocation39_spill] sm:$0xff] %v8234_v56  ;;  %3010 = vmatmul.mubr.bf16.gmra.mxu0 %v2018_v52  ;;  %v682_v25 = vmax.f32 %v648_v34, 0.0  ;;  %v6554_v50 = vsel %vm8088_vm5, %v1888_v61, %v1892_v13  ;;  %v1898_v36 = vshll.u32 %v6521_v32, 16  ;;  %v675_v24 = vmax.f32 %v621_v37, 0.0 }
 0x18a   : > { %4351 = vmatprep.mubr.msk.bf16.mxu0 %vm6457_vm2, %v6471_v18  ;;  %8238 = vst [vmem:[#allocation40_spill] sm:$0xff] %v6554_v50  ;;  %v676_v54 = vmax.f32 %v624_v17, 0.0  ;;  %2856 = vmatprep.mubr.bf16.mxu1 %v6554_v50  ;;  %v693_v20 = vpack.c.bf16 %v672_v8, %v671_v49  ;;  %v640_v9 = vadd.f32 %v5899_v59, %v639_v48  ;;  %v2019_v52 = vrot.slane %v6541_v58, 1  ;;  %v8253_v50 = vld [vmem:[#allocation26_spill] sm:$0xff] }
 0x18b   : > { %v6558_v23 = vpack.c.bf16 %v682_v25, %v681_v35  ;;  %v761_v7 = vor.u32 %v759_v44, %v758_v38  ;;  %v679_v61 = vmax.f32 %v637_v31, 0.0  ;;  %v8239_v11 = vcombine.low %v5746_v43, %v6422_v42  ;;  %4770 = vmatpush3.bf16.msra.mxu0 %v5234_v40 }
 0x18c   : > { %v788_v49 = vshrl.u32 %v6536_v15, 16  ;;  %v696_v17 = vpack.c.bf16 %v678_v39, %v677_v26  ;;  %v680_v59 = vmax.f32 %v640_v9, 0.0  ;;  %v8240_v35 = vshll.u32 %v6390_v5, 16 }
 0x18d   : > { %v6566_v37 = vrot.slane %v8239_v11, 7  ;;  %v820_v8 = vshrl.u32 %v6558_v23, 16  ;;  %v1896_v44 = vor.u32 %v1894_v4, %v1892_v13  ;;  %v1900_v48 = vrot.slane %v1898_v36, 1 }
 0x18e   : > { %v777_v3 = vor.u32 %v8240_v35, %v6483_v41  ;;  %v695_v58 = vpack.c.bf16 %v676_v54, %v675_v24  ;;  %v6576_v11 = vsel %vm8241_vm11, %v758_v38, %v6499_v10  ;;  %v780_v42 = vshrl.u32 %v693_v20, 16  ;;  %4335 = vmatmul.mubr.msk.bf16.gmra.mxu1 %vm6457_vm2, %v6341_v19  ;;  %vm8261_vm11 = vmmov %vm8231_vm8 }
 0x18f   : > { %v6581_v31 = vsel %vm8087_vm15, %v6521_v32, 0  ;;  %v8243_v26 = vcombine.low %v8242_v46, %v5746_v43  ;;  %v8244_v5 = vmov 0  ;;  %v6590_v13 = vrot.slane %v820_v8, 7 }
 0x190   : > { %v6594_v38 = vsel %vm8231_vm8, %v6448_v16, %v761_v7  ;;  %v791_v10 = vshll.u32 %v6536_v15, 16  ;;  %v8247_v4 = vrot.slane %v6481_v55, 1  ;;  %v697_v25 = vpack.c.bf16 %v680_v59, %v679_v61  ;;  %v8251_v7 = vld [vmem:[#allocation24_spill] sm:$0xff] }
 0x191   : > { %vm6586_vm10 = vcmp.ne.s16.totalorder %v8243_v26, 0  ;;  %v6600_v36 = vrot.slane %v788_v49, 7  ;;  %v804_v24 = vshrl.u32 %v696_v17, 16  ;;  %v1906_v54 = vshll.u32 %v6594_v38, 16  ;;  %v8252_v49 = vld [vmem:[#allocation16_spill] sm:$0xff] }
 0x192   : > { %v8245_v5 = vsel %vm6586_vm10, 4294967295, %v8244_v5  ;;  %v2020_v39 = vsel %vm8090_vm4, %v8247_v4, %v2019_v52  ;;  %v6606_v40 = vsel %vm6060_vm6, %v6590_v13, 0  ;;  %v6615_v16 = vsel %vm8088_vm5, %v1896_v44, %v1900_v48 }
 0x193   : > { %8246 = vst [vmem:[#allocation21_spill] sm:$0xff] %v8245_v5  ;;  %3018 = vmatmul.mubr.bf16.gmra.mxu0 %v2020_v39  ;;  %8249 = vst [vmem:[#allocation22_spill] sm:$0xff] %v6606_v40  ;;  %v2021_v55 = vrot.slane %v6581_v31, 1  ;;  %v796_v15 = vshrl.u32 %v695_v58, 16  ;;  %v6622_v61 = vsel %vm844_vm12, %v6360_v29, %v6566_v37  ;;  %vm8089_vm6 = vcmp.ne.s16.totalorder %v8252_v49, 0  ;;  %2864 = vmatprep.mubr.bf16.mxu1 %v6615_v16 }
 0x194   : > { %4352 = vmatprep.mubr.msk.bf16.mxu0 %vm6526_vm1, %v6521_v32  ;;  %8250 = vst [vmem:[#allocation41_spill] sm:$0xff] %v6615_v16  ;;  %v782_v8 = vrot.slane %v780_v42, 7  ;;  %v783_v59 = vshll.u32 %v693_v20, 16  ;;  %v1910_v35 = vshrl.u32 %v6594_v38, 16  ;;  %v1914_v44 = vshll.u32 %v6576_v11, 16 }
 0x195   : > { %v6630_v31 = vsel %vm8231_vm8, %v6451_v30, %v777_v3  ;;  %v1902_v46 = vshrl.u32 %v6521_v32, 16  ;;  %v6636_v29 = vsel %vm8086_vm14, %v6594_v38, 0  ;;  %v812_v26 = vshrl.u32 %v697_v25, 16 }
 0x196   : > { %v793_v20 = vor.u32 %v791_v10, %v6600_v36  ;;  %v806_v42 = vrot.slane %v804_v24, 7  ;;  %v807_v4 = vshll.u32 %v696_v17, 16  ;;  %v1908_v39 = vrot.slane %v1906_v54, 1  ;;  %v8257_v54 = vld [vmem:[#allocation27_spill] sm:$0xff]  ;;  %4336 = vmatmul.mubr.msk.bf16.gmra.mxu1 %vm6526_vm1, %v6471_v18 }
 0x197   : > { %v2022_v9 = vsel %vm8090_vm4, %v2019_v52, %v2021_v55  ;;  %v1904_v34 = vor.u32 %v1902_v46, %v1900_v48  ;;  %v798_v62 = vrot.slane %v796_v15, 7  ;;  %v799_v16 = vshll.u32 %v695_v58, 16  ;;  %v8258_v58 = vld [vmem:[#allocation18_spill] sm:$0xff] }
 0x198   : > { %v785_v30 = vor.u32 %v783_v59, %v782_v8  ;;  %v8091_v3 = vrot.slane %v6636_v29, 1  ;;  %v8254_v53 = vcombine.low %v8253_v50, %v5746_v43  ;;  %v8255_v47 = vmov 0 }
 0x199   : > { %v1912_v40 = vor.u32 %v1910_v35, %v1908_v39  ;;  %v1916_v10 = vrot.slane %v1914_v44, 1  ;;  %v823_v17 = vshll.u32 %v6558_v23, 16  ;;  %v1918_v24 = vshrl.u32 %v6576_v11, 16 }
 0x19a   : > { %vm6644_vm12 = vcmp.ne.s16.totalorder %v8254_v53, 0  ;;  %v814_v52 = vrot.slane %v812_v26, 7  ;;  %v815_v48 = vshll.u32 %v697_v25, 16  ;;  %vm8259_vm14 = vcmp.ne.s16.totalorder %v8258_v58, 0 }
 0x19b   : > { %v8256_v47 = vsel %vm6644_vm12, 4294967295, %v8255_v47  ;;  %v6654_v15 = vsel %vm8259_vm14, %v6283_v60, 0  ;;  %3026 = vmatmul.mubr.bf16.gmra.mxu0 %v2022_v9  ;;  %v809_v53 = vor.u32 %v807_v4, %v806_v42  ;;  %vm8260_vm15 = vcmp.ne.s16.totalorder %v6084_v6, 0  ;;  %vm8263_vm14 = vmmov %vm8231_vm8 }
 0x19c   : > { %v6659_v50 = vsel %vm8260_vm15, %v6576_v11, 0  ;;  %v6662_v23 = vadd.s32 208, %v5715_v27  ;;  %v6665_v59 = vsel %vm8261_vm11, %v782_v8, %v793_v20  ;;  %4353 = vmatprep.mubr.msk.bf16.mxu0 %vm6586_vm10, %v6594_v38  ;;  %v6674_v25 = vsel %vm8088_vm5, %v1904_v34, %v1908_v39  ;;  %v8265_v39 = vld [vmem:[#allocation30_spill] sm:$0xff]  ;;  %vm8266_vm15 = vmmov %vm8231_vm8 }
 0x19d   : > { %8262 = vst [vmem:[#allocation24_spill] sm:$0xff] %v6674_v25  ;;  %v801_v35 = vor.u32 %v799_v16, %v798_v62  ;;  %v1922_v44 = vshll.u32 %v6630_v31, 16  ;;  %v6680_v8 = vsel %vm8263_vm14, %v6483_v41, %v785_v30  ;;  %2872 = vmatprep.mubr.bf16.mxu1 %v6674_v25  ;;  %v2024_v46 = vsel %vm8090_vm4, %v2021_v55, %v8091_v3 }
 0x19e   : > { %v6687_v26 = vsel %vm8088_vm5, %v1912_v40, %v1916_v10  ;;  %v6692_v34 = vsel %vm8089_vm6, %v6114_v22, 0  ;;  %v825_v20 = vor.u32 %v823_v17, %v6590_v13  ;;  %v6696_v41 = vor.u32 %v1918_v24, %v1916_v10  ;;  %vm8276_vm6 = vmmov %vm8263_vm14  ;;  %4337 = vmatmul.mubr.msk.bf16.gmra.mxu1 %vm6586_vm10, %v6521_v32 }
 0x19f   : > { %8264 = vst [vmem:[#allocation26_spill] sm:$0xff] %v6687_v26  ;;  %v817_v4 = vor.u32 %v815_v48, %v814_v52  ;;  %v6701_v55 = vsel %vm8266_vm15, %v798_v62, %v809_v53  ;;  %vm8267_vm5 = vcmp.ne.s16.totalorder %v8251_v7, 0  ;;  %vm8268_vm8 = vcmp.ne.s16.totalorder %v8258_v58, 0  ;;  %2880 = vmatprep.mubr.bf16.mxu1 %v6687_v26 }
 0x1a0   : > { %v6706_v40 = vsel %vm8267_vm5, %v6630_v31, 0  ;;  %v6712_v22 = vsel %vm8268_vm8, %v6201_v0, 0  ;;  %vm8269_vm11 = vcmp.ne.s16.totalorder %v5880_v51, 0  ;;  %v6719_v62 = vsel %vm8263_vm14, %v6600_v36, %v801_v35 }
 0x1a1   : > { %v1795_v13 = vsel %vm8269_vm11, %v6283_v60, 0  ;;  %v1924_v9 = vrot.slane %v1922_v44, 1  ;;  %v1926_v30 = vshrl.u32 %v6630_v31, 16  ;;  %v8092_v10 = vrot.slane %v6712_v22, 1 }
 0x1a2   : > { %v8270_v17 = vcombine.low %v6223_v45, %v5746_v43  ;;  %v2088_v48 = vrot.slane %v1795_v13, 1  ;;  %vm8273_vm8 = vcmp.ne.s16.totalorder %v5915_v2, 0  ;;  %vm8274_vm15 = vcmp.ne.s16.totalorder %v5935_v12, 0 }
 0x1a3   : > { %v1796_v58 = vsel %vm8273_vm8, %v6341_v19, 0  ;;  %v1797_v36 = vsel %vm8274_vm15, %v6471_v18, 0  ;;  %vm8275_vm11 = vcmp.ne.s16.totalorder %v5950_v21, 0  ;;  %v6740_v35 = vsel %vm8263_vm14, %v806_v42, %v817_v4  ;;  %3034 = vmatmul.mubr.bf16.gmra.mxu0 %v2024_v46 }
 0x1a4   : > { %vm6726_vm5 = vcmp.ne.s16.totalorder %v8270_v17, 0  ;;  %v1798_v53 = vsel %vm8275_vm11, %v6521_v32, 0  ;;  %v6743_v45 = vsel %vm8276_vm6, %v814_v52, %v825_v20  ;;  %v2090_v44 = vrot.slane %v1796_v58, 1  ;;  %4354 = vmatprep.mubr.msk.bf16.mxu0 %vm6644_vm12, %v6576_v11 }
 0x1a5   : > { %v2092_v13 = vrot.slane %v1797_v36, 1  ;;  %vm8277_vm8 = vcmask 1046528   ;;  %v2094_v3 = vrot.slane %v1798_v53, 1  ;;  %vm8278_vm15 = vcmp.ne.s16.totalorder %v5963_v28, 0 }
 0x1a6   : > { %v6749_v17 = vsel %vm8277_vm8, %v8092_v10, %v2088_v48  ;;  %v1799_v16 = vsel %vm8278_vm15, %v6594_v38, 0  ;;  %vm8279_vm11 = vcmp.ne.s16.totalorder %v5990_v33, 0  ;;  %vm8280_vm6 = vmmov %vm8277_vm8  ;;  %vm8284_vm15 = vcmp.ne.s16.totalorder %v6084_v6, 0  ;;  %4338 = vmatmul.mubr.msk.bf16.gmra.mxu1 %vm6644_vm12, %v6594_v38 }
 0x1a7   : > { %v1800_v42 = vsel %vm8279_vm11, %v6576_v11, 0  ;;  %v6764_v52 = vsel %vm8280_vm6, %v2088_v48, %v2090_v44  ;;  %vm8281_vm14 = vmmov %vm8280_vm6  ;;  %v2096_v20 = vrot.slane %v1799_v16, 1  ;;  %v1801_v36 = vsel %vm8284_vm15, %v6630_v31, 0 }
 0x1a8   : > { %v6767_v46 = vsel %vm8281_vm14, %v2090_v44, %v2092_v13  ;;  %v2098_v4 = vrot.slane %v1800_v42, 1  ;;  %vm8282_vm8 = vmmov %vm8280_vm6  ;;  %vm8285_vm11 = vcmp.ne.s16.totalorder %v8251_v7, 0  ;;  %vm8286_vm6 = vcmp.ne.s16.totalorder %v8257_v54, 0 }
 0x1a9   : > { %v6771_v58 = vsel %vm8282_vm8, %v2092_v13, %v2094_v3  ;;  %v1802_v53 = vsel %vm8285_vm11, %v6680_v8, 0  ;;  %v1803_v48 = vsel %vm8286_vm6, %v6665_v59, 0  ;;  %vm8287_vm14 = vmmov %vm8282_vm8  ;;  %v2100_v13 = vrot.slane %v1801_v36, 1 }
 0x1aa   : > { %8283 = vst [vmem:[#allocation27_spill] sm:$0xff] %v6771_v58  ;;  %v6783_v16 = vsel %vm8287_vm14, %v2094_v3, %v2096_v20  ;;  %vm8289_vm4 = vmmov %vm8282_vm8  ;;  %v2102_v42 = vrot.slane %v1802_v53, 1  ;;  %v2104_v10 = vrot.slane %v1803_v48, 1  ;;  %vm8291_vm8 = vcmp.ne.s16.totalorder %v8265_v39, 0 }
 0x1ab   : > { %8288 = vst [vmem:[#allocation18_spill] sm:$0xff] %v6783_v16  ;;  %v6786_v44 = vsel %vm8289_vm4, %v2096_v20, %v2098_v4  ;;  %v1804_v49 = vsel %vm8291_vm8, %v6719_v62, 0  ;;  %vm8292_vm15 = vcmp.ne.s16.totalorder %v6414_v1, 0  ;;  %vm8293_vm11 = vcmp.ne.s16.totalorder %v6430_v14, 0  ;;  %vm8294_vm6 = vmmov %vm8289_vm4 }
 0x1ac   : > { %8290 = vst [vmem:[#allocation30_spill] sm:$0xff] %v6786_v44  ;;  %v1805_v5 = vsel %vm8292_vm15, %v6701_v55, 0  ;;  %v1806_v56 = vsel %vm8293_vm11, %v6740_v35, 0  ;;  %v6798_v3 = vsel %vm8294_vm6, %v2098_v4, %v2100_v13  ;;  %v6801_v20 = vsel %vm8289_vm4, %v2100_v13, %v2102_v42  ;;  %vm8297_vm14 = vmmov %vm8289_vm4 }
 0x1ad   : > { %v2106_v36 = vrot.slane %v1804_v49, 1  ;;  %v2108_v53 = vrot.slane %v1805_v5, 1  ;;  %v8295_v48 = vrot.slane %v6659_v50, 1  ;;  %v8296_v44 = vrot.slane %v6636_v29, 1  ;;  %vm8301_vm15 = vmmov %vm8289_vm4 }
 0x1ae   : > { %v8298_v58 = vcombine.low %v6374_v57, %v5746_v43  ;;  %v6817_v4 = vsel %vm8301_vm15, %v2102_v42, %v2104_v10  ;;  %v2110_v49 = vrot.slane %v1806_v56, 1  ;;  %v1930_v5 = vshll.u32 %v6680_v8, 16  ;;  %vm8303_vm11 = vmmov %vm8289_vm4 }
 0x1af   : > { %v2026_v16 = vsel %vm8297_vm14, %v8296_v44, %v8295_v48  ;;  %8302 = vst [vmem:[#allocation42_spill] sm:$0xff] %v6817_v4  ;;  %v6821_v13 = vsel %vm8303_vm11, %v2104_v10, %v2106_v36  ;;  %vm8305_vm6 = vmmov %vm8289_vm4  ;;  %vm8307_vm4 = vcmp.ne.s16.totalorder %v6622_v61, 0  ;;  %vm8308_vm14 = vcmp.ne.s16.totalorder %v8257_v54, 0  ;;  %v8350_v48 = vld [vmem:[#allocation35_spill] sm:$0xff] }
 0x1b0   : > { %vm6812_vm8 = vcmp.ne.s16.totalorder %v8298_v58, 0  ;;  %8304 = vst [vmem:[#allocation43_spill] sm:$0xff] %v6821_v13  ;;  %v6824_v29 = vsel %vm8305_vm6, %v2106_v36, %v2108_v53  ;;  %v1807_v57 = vsel %vm8307_vm4, %v6743_v45, 0  ;;  %3042 = vmatmul.mubr.bf16.gmra.mxu0 %v2026_v16  ;;  %v6832_v58 = vsel %vm8308_vm14, %v6680_v8, 0  ;;  %vm8309_vm15 = vmmov %vm8305_vm6 }
 0x1b1   : > { %8306 = vst [vmem:[#allocation44_spill] sm:$0xff] %v6824_v29  ;;  %v6836_v44 = vsel %vm8309_vm15, %v2108_v53, %v2110_v49  ;;  %v2112_v10 = vrot.slane %v1807_v57, 1  ;;  %4355 = vmatprep.mubr.msk.bf16.mxu0 %vm6726_vm5, %v6630_v31  ;;  %vm8311_vm11 = vsmask.f32 7424  ;;  %v1928_v42 = vor.u32 %v1926_v30, %v1924_v9  ;;  %v8315_v53 = vld [vmem:[#allocation22_spill] sm:$0xff] }
 0x1b2   : > { %8310 = vst [vmem:[#allocation45_spill] sm:$0xff] %v6836_v44  ;;  %v6846_v16 = vsel %vm8311_vm11, %v6696_v41, %v1924_v9  ;;  %v8312_v36 = vand.u32 15, %v6439_v63  ;;  %vm8316_vm4 = vcmp.ne.s16.totalorder %v6566_v37, 0  ;;  %vm8317_vm14 = vcmp.ne.s16.totalorder %v5880_v51, 0  ;;  %vm8320_vm11 = vmmov %vm8309_vm15 }
 0x1b3   : > { %v1808_v57 = vsel %vm8316_vm4, %v8315_v53, 0  ;;  %v1828_v56 = vsel %vm8317_vm14, %v6341_v19, 0  ;;  %2888 = vmatprep.mubr.bf16.mxu1 %v6846_v16  ;;  %v8318_v41 = vrot.slane %v6706_v40, 1  ;;  %v8319_v63 = vrot.slane %v6659_v50, 1  ;;  %vm8322_vm14 = vmmov %vm8320_vm11 }
 0x1b4   : > { %vm6850_vm6 = vcmp.ge.s32.totalorder %v8312_v36, 1  ;;  %v6868_v30 = vsel %vm8320_vm11, %v2110_v49, %v2112_v10  ;;  %v2114_v36 = vrot.slane %v1808_v57, 1  ;;  %v1932_v44 = vrot.slane %v1930_v5, 1  ;;  %vm8326_vm12 = vmmov %vm8322_vm14  ;;  %4339 = vmatmul.mubr.msk.bf16.gmra.mxu1 %vm6726_vm5, %v6576_v11 }
 0x1b5   : > { %v2028_v9 = vsel %vm8309_vm15, %v8319_v63, %v8318_v41  ;;  %v2158_v13 = vrot.slane %v1828_v56, 1  ;;  %vm8321_vm4 = vcmp.ne.s16.totalorder %v5915_v2, 0  ;;  %v1934_v26 = vshrl.u32 %v6680_v8, 16 }
 0x1b6   : > { %v1829_v51 = vsel %vm8321_vm4, %v6471_v18, 0  ;;  %v6876_v4 = vsel %vm8322_vm14, %v2112_v10, %v2114_v36  ;;  %vm8323_vm15 = vcmp.ne.s16.totalorder %v5935_v12, 0  ;;  %vm8324_vm11 = vsmask.f32 7424  ;;  %vm8327_vm4 = vmmov %vm8326_vm12 }
 0x1b7   : > { %v2160_v50 = vrot.slane %v1829_v51, 1  ;;  %v1830_v49 = vsel %vm8323_vm15, %v6521_v32, 0  ;;  %v6882_v57 = vsel %vm8324_vm11, %v1928_v42, %v1932_v44  ;;  %v1938_v5 = vshll.u32 %v6665_v59, 16  ;;  %vm8331_vm10 = vmmov %vm8327_vm4 }
 0x1b8   : > { %v8325_v56 = vrot.slane %v6654_v15, 1  ;;  %v2162_v41 = vrot.slane %v1830_v49, 1  ;;  %vm8328_vm14 = vcmp.ne.s16.totalorder %v5950_v21, 0  ;;  %vm8329_vm15 = vcmp.ne.s16.totalorder %v5963_v28, 0  ;;  %3050 = vmatmul.mubr.bf16.gmra.mxu0 %v2028_v9  ;;  %2896 = vmatprep.mubr.bf16.mxu1 %v6882_v57 }
 0x1b9   : > { %v6891_v63 = vsel %vm8327_vm4, %v2158_v13, %v2160_v50  ;;  %v1831_v10 = vsel %vm8328_vm14, %v6594_v38, 0  ;;  %v1832_v12 = vsel %vm8329_vm15, %v6576_v11, 0  ;;  %vm8330_vm11 = vcmp.ne.s16.totalorder %v5990_v33, 0  ;;  %4356 = vmatprep.mubr.msk.bf16.mxu0 %vm6812_vm8, %v6680_v8 }
 0x1ba   : > { %v6888_v2 = vsel %vm8326_vm12, %v8325_v56, %v2158_v13  ;;  %v1833_v42 = vsel %vm8330_vm11, %v6630_v31, 0  ;;  %v6903_v36 = vsel %vm8331_vm10, %v2160_v50, %v2162_v41  ;;  %v2164_v51 = vrot.slane %v1831_v10, 1 }
 0x1bb   : > { %v2166_v49 = vrot.slane %v1832_v12, 1  ;;  %v2168_v56 = vrot.slane %v1833_v42, 1  ;;  %vm8332_vm12 = vcmp.ne.s16.totalorder %v6084_v6, 0  ;;  %vm8333_vm4 = vcmp.ne.s16.totalorder %v8251_v7, 0 }
 0x1bc   : > { %v1834_v21 = vsel %vm8332_vm12, %v6680_v8, 0  ;;  %v1835_v28 = vsel %vm8333_vm4, %v6665_v59, 0  ;;  %vm8334_vm14 = vcmp.ne.s16.totalorder %v8257_v54, 0  ;;  %vm8335_vm10 = vcmp.ne.s16.totalorder %v8265_v39, 0  ;;  %4340 = vmatmul.mubr.msk.bf16.gmra.mxu1 %vm6812_vm8, %v6630_v31 }
 0x1bd   : > { %v1836_v33 = vsel %vm8334_vm14, %v6719_v62, 0  ;;  %v1837_v13 = vsel %vm8335_vm10, %v6701_v55, 0  ;;  %vm8336_vm15 = vcmask 1046528   ;;  %v2170_v9 = vrot.slane %v1834_v21, 1 }
 0x1be   : > { %v6924_v6 = vsel %vm8336_vm15, %v2162_v41, %v2164_v51  ;;  %vm8337_vm11 = vmmov %vm8336_vm15  ;;  %v2172_v50 = vrot.slane %v1835_v28, 1  ;;  %v2174_v10 = vrot.slane %v1836_v33, 1  ;;  %v2176_v12 = vrot.slane %v1837_v13, 1 }
 0x1bf   : > { %v6927_v7 = vsel %vm8337_vm11, %v2164_v51, %v2166_v49  ;;  %vm8339_vm12 = vmmov %vm8337_vm11  ;;  %vm8341_vm4 = vcmp.ne.s16.totalorder %v6414_v1, 0  ;;  %vm8344_vm10 = vcmp.ne.s16.totalorder %v6430_v14, 0  ;;  %vm8345_vm15 = vcmp.ne.s16.totalorder %v6622_v61, 0 }
 0x1c0   : > { %8338 = vst [vmem:[#allocation22_spill] sm:$0xff] %v6927_v7  ;;  %v6930_v54 = vsel %vm8339_vm12, %v2166_v49, %v2168_v56  ;;  %v1838_v42 = vsel %vm8341_vm4, %v6740_v35, 0  ;;  %vm8342_vm14 = vmmov %vm8337_vm11  ;;  %v1839_v51 = vsel %vm8344_vm10, %v6743_v45, 0  ;;  %v6945_v49 = vsel %vm8345_vm15, %v8315_v53, 0 }
 0x1c1   : > { %8340 = vst [vmem:[#allocation46_spill] sm:$0xff] %v6930_v54  ;;  %v6937_v29 = vsel %vm8342_vm14, %v2168_v56, %v2170_v9  ;;  %v2178_v41 = vrot.slane %v1838_v42, 1  ;;  %8346 = vst [vmem:[#allocation48_spill] sm:$0xff] %v6945_v49  ;;  %v6951_v21 = vsel %vm8339_vm12, %v2170_v9, %v2172_v50  ;;  %v2180_v33 = vrot.slane %v1839_v51, 1 }
 0x1c2   : > { %8343 = vst [vmem:[#allocation47_spill] sm:$0xff] %v6937_v29  ;;  %vm1415_vm11 = vmpackc.low %vm6850_vm6, %vm6850_vm6  ;;  %v1936_v13 = vor.u32 %v1934_v26, %v1932_v44  ;;  %v1940_v42 = vrot.slane %v1938_v5, 1  ;;  %v8102_v54 = vrot.slane %v6945_v49, 1  ;;  %v8351_v7 = vcombine.low %v8350_v48, %v5746_v43 }
 0x1c3   : > { %vm8347_vm4 = vmmov %vm8339_vm12  ;;  %v8356_v26 = vrot.slane %v6706_v40, 1  ;;  %v8358_v5 = vmov 0   ;;  %v8362_v48 = vand.u32 15, %v6662_v23  ;;  %v8363_v49 = vmov 0 }
 0x1c4   : > { %v6954_v56 = vsel %vm8347_vm4, %v2172_v50, %v2174_v10  ;;  %vm8348_vm14 = vmmov %vm8347_vm4  ;;  %vm6966_vm6 = vcmp.ne.s16.totalorder %v8351_v7, 0  ;;  %v6982_v51 = vsel %vm8347_vm4, %v2180_v33, %v8102_v54 }
 0x1c5   : > { %v6957_v28 = vsel %vm8348_vm14, %v2174_v10, %v2176_v12  ;;  %vm8349_vm10 = vmmov %vm8347_vm4  ;;  %v8355_v10 = vrot.slane %v6832_v58, 1  ;;  %8359 = vst [vmem:[#allocation35_spill] sm:$0xff] %v6982_v51  ;;  %vm8360_vm14 = vcmp.ne.s16.totalorder %v8265_v39, 0 }
 0x1c6   : > { %v6960_v29 = vsel %vm8349_vm10, %v2176_v12, %v2178_v41  ;;  %vm8354_vm15 = vmmov %vm8347_vm4  ;;  %v1445_v12 = vsel %vm1415_vm11, 65537, %v8358_v5  ;;  %v1762_v7 = vsel %vm8360_vm14, %v6665_v59, 0  ;;  %vm8361_vm11 = vsmask.f32 7424 }
 0x1c7   : > { %v6971_v50 = vsel %vm8354_vm15, %v2178_v41, %v2180_v33  ;;  %vm8357_vm12 = vmmov %vm8347_vm4  ;;  %v877_v41 = vadd.s32 224, %v5715_v27  ;;  %v6995_v40 = vsel %vm8361_vm11, %v1936_v13, %v1940_v42  ;;  %v1942_v33 = vshrl.u32 %v6665_v59, 16 }
 0x1c8   : > { %v2030_v44 = vsel %vm8357_vm12, %v8356_v26, %v8355_v10  ;;  %vm1291_vm10 = vcmp.ge.s32.totalorder %v8362_v48, 1  ;;  %2904 = vmatprep.mubr.bf16.mxu1 %v6995_v40  ;;  %v4237_v39 = vcombine.low %v1445_v12, %v5746_v43  ;;  %v2031_v10 = vrot.slane %v1762_v7, 1 }
 0x1c9   : > { %3058 = vmatmul.mubr.bf16.gmra.mxu0 %v2030_v44  ;;  %v1946_v26 = vshll.u32 %v6719_v62, 16  ;;  %vm1417_vm15 = vmpackc.low %vm1291_vm10, %vm1291_vm10  ;;  %v1081_v44 = vand.u32 15, %v877_v41  ;;  %v1944_v54 = vor.u32 %v1942_v33, %v1940_v42  ;;  %v8365_v13 = vrot.slane %v6832_v58, 1  ;;  %4341 = vmatmul.mubr.msk.bf16.gmra.mxu1 %vm6966_vm6, %v6680_v8 }
 0x1ca   : > { %4357 = vmatprep.mubr.msk.bf16.mxu0 %vm6966_vm6, %v6665_v59  ;;  %vm7003_vm12 = vcmp.ne.s16.totalorder %v4237_v39, 0  ;;  %v1447_v48 = vsel %vm1417_vm15, 65537, %v8358_v5  ;;  %vm8366_vm14 = vcmp.ne.s16.totalorder %v6414_v1, 0  ;;  %vm8369_vm10 = vsmask.f32 7424 }
 0x1cb   : > { %v8364_v49 = vsel %vm7003_vm12, 4294967295, %v8363_v49  ;;  %v2032_v51 = vsel %vm8347_vm4, %v8365_v13, %v2031_v10  ;;  %v1948_v23 = vrot.slane %v1946_v26, 1  ;;  %v1763_v12 = vsel %vm8366_vm14, %v6719_v62, 0 }
 0x1cc   : > { %vm7014_vm11 = vcmp.ge.s32.totalorder %v1081_v44, 1  ;;  %v1950_v42 = vshrl.u32 %v6719_v62, 16  ;;  %v1954_v1 = vshll.u32 %v6701_v55, 16  ;;  %v4238_v41 = vcombine.low %v1447_v48, %v5746_v43 }
 0x1cd   : > { %v7025_v58 = vsel %vm8369_vm10, %v1944_v54, %v1948_v23  ;;  %v2033_v33 = vrot.slane %v1763_v12, 1  ;;  %vm1419_vm15 = vmpackc.low %vm7014_vm11, %vm7014_vm11  ;;  %vm8372_vm14 = vcmask 1046528   ;;  %vm8373_vm10 = vcmp.ne.s16.totalorder %v6430_v14, 0 }
 0x1ce   : > { %2912 = vmatprep.mubr.bf16.mxu1 %v7025_v58  ;;  %v1952_v39 = vor.u32 %v1950_v42, %v1948_v23  ;;  %v1956_v26 = vrot.slane %v1954_v1, 1  ;;  %vm7035_vm4 = vcmp.ne.s16.totalorder %v4238_v41, 0  ;;  %v1764_v48 = vsel %vm8373_vm10, %v6701_v55, 0 }
 0x1cf   : > { %v2034_v13 = vsel %vm8372_vm14, %v2031_v10, %v2033_v33  ;;  %vm8374_vm11 = vsmask.f32 7424  ;;  %v1958_v10 = vshrl.u32 %v6701_v55, 16  ;;  %v2035_v14 = vrot.slane %v1764_v48, 1 }
 0x1d0   : > { %v7051_v23 = vsel %vm8374_vm11, %v1952_v39, %v1956_v26  ;;  %v1962_v7 = vshll.u32 %v6740_v35, 16  ;;  %vm8378_vm11 = vcmp.ne.s16.totalorder %v6622_v61, 0 }
 0x1d1   : > { %3066 = vmatmul.mubr.bf16.gmra.mxu0 %v2032_v51  ;;  %v879_v51 = vadd.s32 240, %v5715_v27  ;;  %v1449_v27 = vsel %vm1419_vm15, 65537, %v8358_v5  ;;  %4342 = vmatmul.mubr.msk.bf16.gmra.mxu1 %vm7003_vm12, %v6665_v59  ;;  %v1960_v42 = vor.u32 %v1958_v10, %v1956_v26 }
 0x1d2   : > { %4358 = vmatprep.mubr.msk.bf16.mxu0 %vm7003_vm12, %v6719_v62  ;;  %2920 = vmatprep.mubr.bf16.mxu1 %v7051_v23  ;;  %v4239_v12 = vcombine.low %v1449_v27, %v5746_v43  ;;  %vm8377_vm12 = vcmask 1046528   ;;  %v1964_v41 = vrot.slane %v1962_v7, 1 }
 0x1d3   : > { %v1095_v44 = vand.u32 15, %v879_v51  ;;  %v2036_v51 = vsel %vm8377_vm12, %v2033_v33, %v2035_v14  ;;  %v1966_v33 = vshrl.u32 %v6740_v35, 16 }
 0x1d4   : > { %vm7057_vm10 = vcmp.ne.s16.totalorder %v4239_v12, 0 }
 0x1d5   : > { %vm1295_vm14 = vcmp.ge.s32.totalorder %v1095_v44, 1  ;;  %v1765_v44 = vsel %vm8378_vm11, %v6740_v35, 0  ;;  %vm8383_vm11 = vcmp.ne.s16.totalorder %v6566_v37, 0 }
 0x1d6   : > { %vm1421_vm15 = vmpackc.low %vm1295_vm14, %vm1295_vm14  ;;  %vm8379_vm14 = vsmask.f32 7424  ;;  %v2037_v26 = vrot.slane %v1765_v44, 1  ;;  %v1766_v7 = vsel %vm8383_vm11, %v6743_v45, 0  ;;  %vm8387_vm11 = vcmask 1046528  }
 0x1d7   : > { %v1451_v39 = vsel %vm1421_vm15, 65537, %v8358_v5  ;;  %v7073_v27 = vsel %vm8379_vm14, %v1960_v42, %v1964_v41  ;;  %v1970_v5 = vshll.u32 %v6743_v45, 16  ;;  %vm8382_vm15 = vcmask 1046528   ;;  %v8384_v42 = vld [vmem:[#allocation25_spill] sm:$0xff] }
 0x1d8   : > { %v4240_v61 = vcombine.low %v1451_v39, %v5746_v43  ;;  %v2038_v12 = vsel %vm8382_vm15, %v2035_v14, %v2037_v26  ;;  %v2039_v14 = vrot.slane %v1766_v7, 1 }
 0x1d9   : > { %3074 = vmatmul.mubr.bf16.gmra.mxu0 %v2034_v13  ;;  %4343 = vmatmul.mubr.msk.bf16.gmra.mxu1 %vm7035_vm4, %v6719_v62  ;;  %v1968_v13 = vor.u32 %v1966_v33, %v1964_v41  ;;  %v7079_v48 = vrot.slane %v1970_v5, 1  ;;  %v2083_v41 = vrot.slane %v6692_v34, 1  ;;  %v8388_v33 = vld [vmem:[#allocation32_spill] sm:$0xff]  ;;  %v8392_v34 = vld [vmem:[#allocation29_spill] sm:$0xff] }
 0x1da   : > { %4359 = vmatprep.mubr.msk.bf16.mxu0 %vm7035_vm4, %v6701_v55  ;;  %2928 = vmatprep.mubr.bf16.mxu1 %v7073_v27  ;;  %vm7081_vm12 = vcmp.ne.s16.totalorder %v4240_v61, 0  ;;  %v2040_v39 = vsel %vm8387_vm11, %v2037_v26, %v2039_v14  ;;  %v5236_v61 = vld [vmem:[#allocation7 + $0x230] sm:$0xff]   ;;  %v8393_v26 = vrot.slane %v6712_v22, 1  ;;  %v8395_v14 = vld [vmem:[#allocation38_spill] sm:$0xff] }
 0x1db   : > { %v7097_v43 = vsel %vm8379_vm14, %v1968_v13, %v7079_v48  ;;  %vm8389_vm14 = vmmov %vm8387_vm11  ;;  %v5239_v22 = vld [vmem:[#allocation7 + $0x218] sm:$0xff]   ;;  %v8399_v13 = vld [vmem:[#allocation40_spill] sm:$0xff] }
 0x1e1   : > { %3082 = vmatmul.mubr.bf16.gmra.mxu0 %v2036_v51  ;;  %4344 = vmatmul.mubr.msk.bf16.gmra.mxu1 %vm7057_vm10, %v6701_v55  ;;  %v8385_v51 = vld [vmem:[#allocation17_spill] sm:$0xff] }
 0x1e2   : > { %4360 = vmatprep.mubr.msk.bf16.mxu0 %vm7057_vm10, %v6740_v35  ;;  %2936 = vmatprep.mubr.bf16.mxu1 %v7097_v43  ;;  %vm8386_vm15 = vcmp.ne.s16.totalorder %v8385_v51, 0 }
 0x1e3   : > { %v1793_v37 = vsel %vm8386_vm15, %v8384_v42, 0  ;;  %vm8394_vm15 = vmmov %vm8387_vm11 }
 0x1e4   : > { %v2084_v44 = vrot.slane %v1793_v37, 1  ;;  %v5237_v37 = vld [vmem:[#allocation7 + $0x228] sm:$0xff]  }
 0x1e6   : > { %v2085_v5 = vsel %vm8389_vm14, %v2083_v41, %v2084_v44  ;;  %v2087_v7 = vsel %vm8394_vm15, %v2084_v44, %v8393_v26  ;;  %v5238_v41 = vld [vmem:[#allocation7 + $0x220] sm:$0xff]   ;;  %v5240_v44 = vld [vmem:[#allocation7 + $0x210] sm:$0xff]  }
 0x1e7   : > { %v8401_v26 = vld [vmem:[#allocation41_spill] sm:$0xff] }
 0x1e9   : > { %3090 = vmatmul.mubr.bf16.gmra.mxu0 %v2038_v12  ;;  %4345 = vmatmul.mubr.msk.bf16.gmra.mxu1 %vm7081_vm12, %v6740_v35  ;;  %v8391_v12 = vld [vmem:[#allocation34_spill] sm:$0xff] }
 0x1ea   : > { %4361 = vmatprep.mubr.msk.bf16.mxu0 %vm7081_vm12, %v6743_v45  ;;  %3138 = vmatprep.mubr.bf16.mxu1 %v2085_v5  ;;  %v8397_v5 = vld [vmem:[#allocation37_spill] sm:$0xff] }
 0x1f1   : > { %3098 = vmatmul.mubr.bf16.gmra.mxu0 %v2040_v39  ;;  %3139 = vmatmul.mubr.bf16.vlgmr.msra.gmra.mxu1 %v8392_v34  ;;  %v7170_v39 = vld [vmem:[%s8031_s4] ss:$0 sm:$0xff] }
 0x1f2   : > { %3299 = vmatprep.mubr.bf16.mxu0 %v8388_v33  ;;  %4964 = vmatpush3.bf16.msra.mxu1 %v8395_v14 }
 0x1f3   : > { %3146 = vmatprep.mubr.bf16.mxu1 %v2087_v7  ;;  %4965 = vmatprep.subr.bf16.mxu1 %v5236_v61  ;;  %v8406_v7 = vld [vmem:[#allocation26_spill] sm:$0xff] }
 0x1f6   : > { %4966 = vmatpush3.bf16.msra.mxu1 %v5236_v61 }
 0x1f7   : > { %4967 = vmatprep.subr.bf16.mxu1 %v5237_v37 }
 0x1f9   : > { %4362 = vmatmul.mubr.msk.bf16.vlgmr.msra.gmra.mxu0 %vm6018_vm0, %v8384_v42  ;;  %3147 = vmatmul.mubr.bf16.gmra.mxu1 %v8388_v33  ;;  %v5241_v33 = vld [vmem:[#allocation7 + $0x208] sm:$0xff]  }
 0x1fa   : > { %3307 = vmatprep.mubr.bf16.mxu0 %v8391_v12  ;;  %3154 = vmatprep.mubr.bf16.mxu1 %v6749_v17  ;;  %v5242_v17 = vld [vmem:[#allocation7 + $0x200] sm:$0xff]  }
 0x1fb   : > { %4968 = vmatpush3.bf16.msra.mxu1 %v5237_v37  ;;  %v8410_v37 = vld [vmem:[#allocation21_spill] sm:$0xff] }
 0x1fc   : > { %4969 = vmatprep.subr.bf16.mxu1 %v5238_v41  ;;  %vm8411_vm0 = vnez %v8410_v37 }
 0x1ff   : > { %4970 = vmatpush3.bf16.msra.mxu1 %v5238_v41 }
 0x200   : > { %4971 = vmatprep.subr.bf16.mxu1 %v5239_v22 }
 0x201   : > { %4363 = vmatmul.mubr.msk.bf16.gmra.mxu0 %vm6075_vm7, %v6201_v0  ;;  %3155 = vmatmul.mubr.bf16.gmra.mxu1 %v8391_v12  ;;  %v8404_v12 = vld [vmem:[#allocation27_spill] sm:$0xff]  ;;  %vm8412_vm7 = vnez %v8256_v47 }
 0x202   : > { %3315 = vmatprep.mubr.bf16.mxu0 %v8397_v5  ;;  %3162 = vmatprep.mubr.bf16.mxu1 %v6764_v52  ;;  %v8403_v52 = vld [vmem:[#allocation24_spill] sm:$0xff] }
 0x203   : > { %4972 = vmatpush3.bf16.msra.mxu1 %v5239_v22 }
 0x204   : > { %4973 = vmatprep.subr.bf16.mxu1 %v5240_v44 }
 0x207   : > { %4974 = vmatpush3.bf16.msra.mxu1 %v5240_v44 }
 0x208   : > { %4975 = vmatprep.subr.bf16.mxu1 %v5241_v33 }
 0x209   : > { %4364 = vmatmul.mubr.msk.bf16.gmra.mxu0 %vm6182_vm3, %v6283_v60  ;;  %3163 = vmatmul.mubr.bf16.gmra.mxu1 %v8397_v5  ;;  %v8413_v60 = vld [vmem:[#allocation42_spill] sm:$0xff]  ;;  %vm8418_vm3 = vsmask.f32 7424 }
 0x20a   : > { %3323 = vmatprep.mubr.bf16.mxu0 %v8399_v13  ;;  %3170 = vmatprep.mubr.bf16.mxu1 %v6767_v46  ;;  %v8407_v46 = vld [vmem:[#allocation18_spill] sm:$0xff] }
 0x20b   : > { %4976 = vmatpush3.bf16.msra.mxu1 %v5241_v33 }
 0x20c   : > { %4977 = vmatprep.subr.bf16.mxu1 %v5242_v17 }
 0x20f   : > { %4978 = vmatpush3.bf16.msra.mxu1 %v5242_v17 }
 0x211   : > { %4365 = vmatmul.mubr.msk.bf16.gmra.mxu0 %vm6268_vm13, %v6341_v19  ;;  %3171 = vmatmul.mubr.bf16.gmra.mxu1 %v8399_v13  ;;  %vm8420_vm13 = vmmov %vm8418_vm3 }
 0x212   : > { %3331 = vmatprep.mubr.bf16.mxu0 %v8401_v26  ;;  %3178 = vmatprep.mubr.bf16.mxu1 %v8404_v12 }
 0x219   : > { %4366 = vmatmul.mubr.msk.bf16.gmra.mxu0 %vm6350_vm9, %v6471_v18  ;;  %3179 = vmatmul.mubr.bf16.gmra.mxu1 %v8401_v26  ;;  %v8409_v18 = vld [vmem:[#allocation30_spill] sm:$0xff]  ;;  %vm8416_vm9 = vnez %v8364_v49 }
 0x21a   : > { %3339 = vmatprep.mubr.bf16.mxu0 %v8403_v52  ;;  %3186 = vmatprep.mubr.bf16.mxu1 %v8407_v46 }
 0x221   : > { %4367 = vmatmul.mubr.msk.bf16.gmra.mxu0 %vm6457_vm2, %v6521_v32  ;;  %3187 = vmatmul.mubr.bf16.gmra.mxu1 %v8403_v52  ;;  %vm8421_vm2 = vcmp.ne.s16.totalorder %v8385_v51, 0 }
 0x222   : > { %3347 = vmatprep.mubr.bf16.mxu0 %v8406_v7  ;;  %3194 = vmatprep.mubr.bf16.mxu1 %v8409_v18  ;;  %v1826_v1 = vsel %vm8421_vm2, %v6201_v0, 0 }
 0x224   : > { %v4547_v32 = vpop.f32.mrf.mxu0 }
 0x226   : > { %v4548_v41 = vpop.f32.mrf.mxu0 }
 0x228   : > { %v4550_v22 = vpop.f32.mrf.mxu0 }
 0x229   : > { %4368 = vmatmul.mubr.msk.bf16.gmra.mxu0 %vm6526_vm1, %v6594_v38  ;;  %3195 = vmatmul.mubr.bf16.gmra.mxu1 %v8406_v7  ;;  %v4435_v38 = vpop.f32.mrf.mxu1 }
 0x22a   : > { %3355 = vmatprep.mubr.bf16.mxu0 %v6846_v16  ;;  %3202 = vmatprep.mubr.bf16.mxu1 %v6798_v3 }
 0x22b   : > { %v4436_v3 = vpop.f32.mrf.mxu1 }
 0x22c   : > { %v4437_v5 = vadd.f32 %v4436_v3, %v4435_v38 }
 0x22d   : > { %v4438_v44 = vpop.f32.mrf.mxu1 }
 0x22e   : > { %v2819_v47 = vadd.f32 %v4437_v5, %v7170_v39 }
 0x22f   : > { %v4439_v13 = vpop.f32.mrf.mxu1 }
 0x230   : > { %v4440_v33 = vadd.f32 %v4439_v13, %v4438_v44 }
 0x231   : > { %4369 = vmatmul.mubr.msk.bf16.gmra.mxu0 %vm8411_vm0, %v6576_v11  ;;  %3203 = vmatmul.mubr.bf16.gmra.mxu1 %v6846_v16  ;;  %v4549_v11 = vadd.f32 %v4548_v41, %v4547_v32  ;;  %v4441_v17 = vpop.f32.mrf.mxu1  ;;  %v5243_v32 = vld [vmem:[#allocation8 + $0x38] sm:$0xff]  }
 0x232   : > { %3363 = vmatprep.mubr.bf16.mxu0 %v6882_v57  ;;  %3210 = vmatprep.mubr.bf16.mxu1 %v6801_v20  ;;  %v2822_v34 = vadd.f32 %v4440_v33, %v7170_v39 }
 0x233   : > { %v7176_v20 = vadd.f32 %v4549_v11, %v2819_v47  ;;  %v4442_v12 = vpop.f32.mrf.mxu1  ;;  %5011 = vmatprep.subr.bf16.mxu0 %v5243_v32 }
 0x234   : > { %v4443_v19 = vadd.f32 %v4442_v12, %v4441_v17  ;;  %5012 = vmatpush3.bf16.msra.mxu0 %v5243_v32 }
 0x235   : > { %v4444_v24 = vpop.f32.mrf.mxu1 }
 0x237   : > { %v4445_v37 = vpop.f32.mrf.mxu1 }
 0x238   : > { %v4446_v38 = vadd.f32 %v4445_v37, %v4444_v24 }
 0x239   : > { %4370 = vmatmul.mubr.msk.bf16.gmra.mxu0 %vm8412_vm7, %v6630_v31  ;;  %v4551_v31 = vpop.f32.mrf.mxu0  ;;  %3211 = vmatmul.mubr.bf16.gmra.mxu1 %v6882_v57  ;;  %v4447_v11 = vpop.f32.mrf.mxu1 }
 0x23a   : > { %3371 = vmatprep.mubr.bf16.mxu0 %v6995_v40  ;;  %v4552_v61 = vadd.f32 %v4551_v31, %v4550_v22  ;;  %3218 = vmatprep.mubr.bf16.mxu1 %v8413_v60  ;;  %v2830_v3 = vadd.f32 %v4446_v38, %v7170_v39  ;;  %v8414_v22 = vld [vmem:[#allocation43_spill] sm:$0xff] }
 0x23b   : > { %v4553_v16 = vpop.f32.mrf.mxu0  ;;  %v4448_v47 = vpop.f32.mrf.mxu1 }
 0x23c   : > { %v7182_v46 = vadd.f32 %v4552_v61, %v2822_v34  ;;  %v4449_v31 = vadd.f32 %v4448_v47, %v4447_v11 }
 0x23d   : > { %v4554_v26 = vpop.f32.mrf.mxu0 }
 0x23e   : > { %v4555_v52 = vadd.f32 %v4554_v26, %v4553_v16  ;;  %v2835_v13 = vadd.f32 %v4449_v31, %v7170_v39  ;;  %v8417_v31 = vld [vmem:[#allocation45_spill] sm:$0xff] }
 0x23f   : > { %v4556_v7 = vpop.f32.mrf.mxu0 }
 0x241   : > { %4371 = vmatmul.mubr.msk.bf16.gmra.mxu0 %vm6726_vm5, %v6680_v8  ;;  %v2827_v8 = vadd.f32 %v4443_v19, %v7170_v39  ;;  %v4557_v14 = vpop.f32.mrf.mxu0  ;;  %3219 = vmatmul.mubr.bf16.gmra.mxu1 %v6995_v40  ;;  %v8415_v19 = vld [vmem:[#allocation44_spill] sm:$0xff]  ;;  %vm8424_vm5 = vmmov %vm8387_vm11 }
 0x242   : > { %3379 = vmatprep.mubr.bf16.mxu0 %v7025_v58  ;;  %v4558_v18 = vadd.f32 %v4557_v14, %v4556_v7  ;;  %3226 = vmatprep.mubr.bf16.mxu1 %v8414_v22 }
 0x243   : > { %v4559_v57 = vpop.f32.mrf.mxu0  ;;  %v7188_v41 = vadd.f32 %v4555_v52, %v2827_v8 }
 0x244   : > { %v7194_v25 = vadd.f32 %v4558_v18, %v2830_v3  ;;  %v2057_v3 = vshrl.u32 %v6743_v45, 16 }
 0x245   : > { %v4560_v5 = vpop.f32.mrf.mxu0 }
 0x246   : > { %v4561_v44 = vadd.f32 %v4560_v5, %v4559_v57  ;;  %v5244_v57 = vld [vmem:[#allocation8 + $0x30] sm:$0xff]  }
 0x247   : > { %v4562_v61 = vpop.f32.mrf.mxu0  ;;  %5013 = vmatprep.subr.bf16.mxu0 %v5244_v57 }
 0x248   : > { %v7200_v26 = vadd.f32 %v4561_v44, %v2835_v13  ;;  %5014 = vmatpush3.bf16.msra.mxu0 %v5244_v57 }
 0x249   : > { %4372 = vmatmul.mubr.msk.bf16.gmra.mxu0 %vm6812_vm8, %v6665_v59  ;;  %v4450_v59 = vpop.f32.mrf.mxu1  ;;  %v4563_v33 = vpop.f32.mrf.mxu0  ;;  %3227 = vmatmul.mubr.bf16.gmra.mxu1 %v7025_v58  ;;  %vm8426_vm8 = vmmov %vm8424_vm5 }
 0x24a   : > { %3387 = vmatprep.mubr.bf16.mxu0 %v7051_v23  ;;  %v4564_v16 = vadd.f32 %v4563_v33, %v4562_v61  ;;  %3234 = vmatprep.mubr.bf16.mxu1 %v8415_v19  ;;  %v2061_v61 = vshll.u32 %v8315_v53, 16  ;;  %v2059_v33 = vor.u32 %v2057_v3, %v7079_v48 }
 0x24b   : > { %v4451_v17 = vpop.f32.mrf.mxu1  ;;  %v4565_v34 = vpop.f32.mrf.mxu0 }
 0x24c   : > { %v4452_v40 = vadd.f32 %v4451_v17, %v4450_v59 }
 0x24d   : > { %v4453_v60 = vpop.f32.mrf.mxu1  ;;  %v4566_v12 = vpop.f32.mrf.mxu0 }
 0x24e   : > { %v2838_v52 = vadd.f32 %v4452_v40, %v7170_v39  ;;  %v4567_v7 = vadd.f32 %v4566_v12, %v4565_v34  ;;  %v2063_v34 = vrot.slane %v2061_v61, 1 }
 0x24f   : > { %v4454_v24 = vpop.f32.mrf.mxu1  ;;  %v4568_v14 = vpop.f32.mrf.mxu0 }
 0x250   : > { %v4455_v8 = vadd.f32 %v4454_v24, %v4453_v60  ;;  %v7206_v18 = vadd.f32 %v4564_v16, %v2838_v52  ;;  %v2064_v19 = vsel %vm8418_vm3, %v2059_v33, %v2063_v34 }
 0x251   : > { %4373 = vmatmul.mubr.msk.bf16.gmra.mxu0 %vm6966_vm6, %v6719_v62  ;;  %v4456_v9 = vpop.f32.mrf.mxu1  ;;  %v4569_v37 = vpop.f32.mrf.mxu0  ;;  %3235 = vmatmul.mubr.bf16.gmra.mxu1 %v7051_v23  ;;  %vm8433_vm6 = vmmov %vm8424_vm5 }
 0x252   : > { %3395 = vmatprep.mubr.bf16.mxu0 %v7073_v27  ;;  %v2843_v62 = vadd.f32 %v4455_v8, %v7170_v39  ;;  %v4570_v32 = vadd.f32 %v4569_v37, %v4568_v14  ;;  %3242 = vmatprep.mubr.bf16.mxu1 %v8417_v31 }
 0x253   : > { %v4457_v38 = vpop.f32.mrf.mxu1  ;;  %v4571_v58 = vpop.f32.mrf.mxu0 }
 0x254   : > { %v4458_v11 = vadd.f32 %v4457_v38, %v4456_v9  ;;  %v7213_v5 = vadd.f32 %v4567_v7, %v2843_v62  ;;  %v2132_v7 = vshrl.u32 %v8315_v53, 16 }
 0x255   : > { %v4459_v22 = vpop.f32.mrf.mxu1  ;;  %v4572_v47 = vpop.f32.mrf.mxu0 }
 0x256   : > { %v2846_v44 = vadd.f32 %v4458_v11, %v7170_v39  ;;  %v4573_v59 = vadd.f32 %v4572_v47, %v4571_v58 }
 0x257   : > { %v4460_v49 = vpop.f32.mrf.mxu1  ;;  %v4574_v13 = vpop.f32.mrf.mxu0 }
 0x258   : > { %v7221_v16 = vadd.f32 %v4570_v32, %v2846_v44  ;;  %v2134_v32 = vor.u32 %v2132_v7, %v2063_v34 }
 0x259   : > { %4374 = vmatmul.mubr.msk.bf16.gmra.mxu0 %vm8416_vm9, %v6701_v55  ;;  %v4461_v55 = vadd.f32 %v4460_v49, %v4459_v22  ;;  %v4462_v17 = vpop.f32.mrf.mxu1  ;;  %v4575_v40 = vpop.f32.mrf.mxu0  ;;  %3243 = vmatmul.mubr.bf16.gmra.mxu1 %v7073_v27  ;;  %v5245_v22 = vld [vmem:[#allocation8 + $0x28] sm:$0xff]  }
 0x25a   : > { %3403 = vmatprep.mubr.bf16.mxu0 %v7097_v43  ;;  %v4576_v8 = vadd.f32 %v4575_v40, %v4574_v13  ;;  %3250 = vmatprep.mubr.bf16.mxu1 %v6868_v30  ;;  %v8419_v30 = vld [vmem:[#allocation19_spill] sm:$0xff] }
 0x25b   : > { %v2851_v23 = vadd.f32 %v4461_v55, %v7170_v39  ;;  %v4463_v60 = vpop.f32.mrf.mxu1  ;;  %v4577_v12 = vpop.f32.mrf.mxu0  ;;  %v2135_v47 = vsel %vm8420_vm13, %v2134_v32, %v8419_v30  ;;  %5015 = vmatprep.subr.bf16.mxu0 %v5245_v22 }
 0x25c   : > { %v4464_v52 = vadd.f32 %v4463_v60, %v4462_v17  ;;  %5016 = vmatpush3.bf16.msra.mxu0 %v5245_v22  ;;  %v2154_v60 = vrot.slane %v1826_v1, 1 }
 0x25d   : > { %v7229_v24 = vadd.f32 %v4573_v59, %v2851_v23  ;;  %v4465_v48 = vpop.f32.mrf.mxu1  ;;  %v4578_v9 = vpop.f32.mrf.mxu0  ;;  %v8422_v23 = vld [vmem:[#allocation16_spill] sm:$0xff] }
 0x25e   : > { %v2854_v14 = vadd.f32 %v4464_v52, %v7170_v39  ;;  %v4579_v62 = vadd.f32 %v4578_v9, %v4577_v12  ;;  %vm8423_vm1 = vcmp.ne.s16.totalorder %v8422_v23, 0 }
 0x25f   : > { %v4466_v37 = vpop.f32.mrf.mxu1 }
 0x260   : > { %v4467_v54 = vadd.f32 %v4466_v37, %v4465_v48  ;;  %v7234_v38 = vadd.f32 %v4576_v8, %v2854_v14 }
 0x261   : > { %4375 = vmatmul.mubr.msk.bf16.gmra.mxu0 %vm7035_vm4, %v6740_v35  ;;  %v4580_v35 = vpop.f32.mrf.mxu0  ;;  %v4468_v57 = vpop.f32.mrf.mxu1  ;;  %3251 = vmatmul.mubr.bf16.gmra.mxu1 %v7097_v43  ;;  %v1825_v43 = vsel %vm8423_vm1, %v8384_v42, 0  ;;  %vm3912_vm4 = vcmask 7168  }
 0x262   : > { %3411 = vmatprep.mubr.bf16.mxu0 %v2064_v19  ;;  %v2859_v11 = vadd.f32 %v4467_v54, %v7170_v39  ;;  %3258 = vmatprep.mubr.bf16.mxu1 %v6876_v4  ;;  %v2153_v51 = vrot.slane %v1825_v43, 1 }
 0x263   : > { %v4581_v58 = vpop.f32.mrf.mxu0  ;;  %v4469_v3 = vpop.f32.mrf.mxu1 }
 0x264   : > { %v4470_v27 = vadd.f32 %v4469_v3, %v4468_v57  ;;  %v7242_v31 = vadd.f32 %v4579_v62, %v2859_v11  ;;  %v4582_v59 = vadd.f32 %v4581_v58, %v4580_v35  ;;  %v2155_v42 = vsel %vm8424_vm5, %v2153_v51, %v2154_v60  ;;  %v5246_v3 = vld [vmem:[#allocation8 + $0x20] sm:$0xff]  }
 0x265   : > { %v4583_v44 = vpop.f32.mrf.mxu0  ;;  %v4471_v61 = vpop.f32.mrf.mxu1  ;;  %5017 = vmatprep.subr.bf16.mxu0 %v5246_v3 }
 0x266   : > { %v2862_v49 = vadd.f32 %v4470_v27, %v7170_v39  ;;  %v8425_v27 = vrot.slane %v6654_v15, 1  ;;  %5018 = vmatpush3.bf16.msra.mxu0 %v5246_v3 }
 0x267   : > { %v4584_v55 = vpop.f32.mrf.mxu0  ;;  %v4472_v13 = vpop.f32.mrf.mxu1 }
 0x268   : > { %v4473_v33 = vadd.f32 %v4472_v13, %v4471_v61  ;;  %v7253_v40 = vadd.f32 %v4582_v59, %v2862_v49 }
 0x269   : > { %4376 = vmatmul.mubr.msk.bf16.gmra.mxu0 %vm7057_vm10, %v6743_v45  ;;  %v4585_v45 = vadd.f32 %v4584_v55, %v4583_v44  ;;  %v4586_v17 = vpop.f32.mrf.mxu0  ;;  %v4474_v34 = vpop.f32.mrf.mxu1  ;;  %3259 = vmatmul.mubr.bf16.gmra.mxu1 %v2064_v19  ;;  %v2157_v44 = vsel %vm8426_vm8, %v2154_v60, %v8425_v27  ;;  %vm3926_vm10 = vcmask 1039360  }
 0x26a   : > { %3419 = vmatprep.mubr.bf16.mxu0 %v2135_v47  ;;  %v2867_v4 = vadd.f32 %v4473_v33, %v7170_v39  ;;  %4979 = vmatprep.mubr.bf16.mxu1 %v2155_v42 }
 0x26b   : > { %v4587_v52 = vpop.f32.mrf.mxu0  ;;  %v4475_v12 = vpop.f32.mrf.mxu1 }
 0x26c   : > { %v4476_v0 = vadd.f32 %v4475_v12, %v4474_v34  ;;  %v7259_v48 = vadd.f32 %v4585_v45, %v2867_v4  ;;  %v4588_v14 = vadd.f32 %v4587_v52, %v4586_v17 }
 0x26d   : > { %v4589_v7 = vpop.f32.mrf.mxu0  ;;  %v4477_v8 = vpop.f32.mrf.mxu1 }
 0x26e   : > { %v2870_v9 = vadd.f32 %v4476_v0, %v7170_v39 }
 0x26f   : > { %v4590_v62 = vpop.f32.mrf.mxu0  ;;  %v4478_v54 = vpop.f32.mrf.mxu1 }
 0x270   : > { %v4591_v37 = vadd.f32 %v4590_v62, %v4589_v7  ;;  %v4479_v35 = vadd.f32 %v4478_v54, %v4477_v8  ;;  %v7263_v57 = vadd.f32 %v4588_v14, %v2870_v9 }
 0x271   : > { %4377 = vmatmul.mubr.msk.bf16.gmra.mxu0 %vm7081_vm12, %v8315_v53  ;;  %v4592_v32 = vpop.f32.mrf.mxu0  ;;  %v4480_v11 = vpop.f32.mrf.mxu1  ;;  %4980 = vmatmul.mubr.bf16.vlgmr.msra.gmra.mxu1 %v2157_v44  ;;  %vm3940_vm12 = vcmask 1031168  }
 0x272   : > { %v2875_v53 = vadd.f32 %v4479_v35, %v7170_v39  ;;  %4983 = vmatprep.mubr.bf16.mxu1 %v6888_v2 }
 0x273   : > { %v4593_v10 = vpop.f32.mrf.mxu0  ;;  %v4481_v58 = vpop.f32.mrf.mxu1 }
 0x274   : > { %v4482_v19 = vadd.f32 %v4481_v58, %v4480_v11  ;;  %v7269_v47 = vadd.f32 %v4591_v37, %v2875_v53  ;;  %v4594_v59 = vadd.f32 %v4593_v10, %v4592_v32  ;;  %v5247_v32 = vld [vmem:[#allocation8 + $0x18] sm:$0xff]  }
 0x275   : > { %v4595_v22 = vpop.f32.mrf.mxu0  ;;  %v4483_v61 = vpop.f32.mrf.mxu1  ;;  %5019 = vmatprep.subr.bf16.mxu0 %v5247_v32 }
 0x276   : > { %v2878_v49 = vadd.f32 %v4482_v19, %v7170_v39  ;;  %v8427_v19 = vld [vmem:[#allocation22_spill] sm:$0xff]  ;;  %5020 = vmatpush3.bf16.msra.mxu0 %v5247_v32 }
 0x277   : > { %v4596_v55 = vpop.f32.mrf.mxu0  ;;  %v4484_v45 = vpop.f32.mrf.mxu1 }
 0x278   : > { %v4597_v1 = vadd.f32 %v4596_v55, %v4595_v22  ;;  %v4485_v13 = vadd.f32 %v4484_v45, %v4483_v61  ;;  %v7273_v17 = vadd.f32 %v4594_v59, %v2878_v49 }
 0x279   : > { %v4598_v33 = vpop.f32.mrf.mxu0  ;;  %v4486_v15 = vpop.f32.mrf.mxu1  ;;  %4984 = vmatmul.mubr.bf16.gmra.mxu1 %v6891_v63 }
 0x27a   : > { %v2883_v23 = vadd.f32 %v4485_v13, %v7170_v39  ;;  %4987 = vmatprep.mubr.bf16.mxu1 %v6903_v36 }
 0x27b   : > { %v4599_v43 = vpop.f32.mrf.mxu0  ;;  %v4487_v34 = vpop.f32.mrf.mxu1 }
 0x27c   : > { %v4488_v60 = vadd.f32 %v4487_v34, %v4486_v15  ;;  %v7276_v52 = vadd.f32 %v4597_v1, %v2883_v23  ;;  %v4600_v2 = vadd.f32 %v4599_v43, %v4598_v33  ;;  %v8428_v23 = vld [vmem:[#allocation46_spill] sm:$0xff] }
 0x27d   : > { %v4601_v4 = vpop.f32.mrf.mxu0  ;;  %v4489_v12 = vpop.f32.mrf.mxu1 }
 0x27e   : > { %v2886_v51 = vadd.f32 %v4488_v60, %v7170_v39 }
 0x27f   : > { %v4602_v0 = vpop.f32.mrf.mxu0  ;;  %v4490_v8 = vpop.f32.mrf.mxu1 }
 0x280   : > { %v4603_v7 = vadd.f32 %v4602_v0, %v4601_v4  ;;  %v4491_v42 = vadd.f32 %v4490_v8, %v4489_v12  ;;  %v7281_v9 = vadd.f32 %v4600_v2, %v2886_v51  ;;  %v8429_v4 = vld [vmem:[#allocation47_spill] sm:$0xff] }
 0x281   : > { %v4604_v14 = vpop.f32.mrf.mxu0  ;;  %v4492_v62 = vpop.f32.mrf.mxu1  ;;  %4988 = vmatmul.mubr.bf16.gmra.mxu1 %v6924_v6 }
 0x282   : > { %v2891_v37 = vadd.f32 %v4491_v42, %v7170_v39  ;;  %4991 = vmatprep.mubr.bf16.mxu1 %v8427_v19 }
 0x283   : > { %v4605_v54 = vpop.f32.mrf.mxu0  ;;  %v4493_v35 = vpop.f32.mrf.mxu1 }
 0x284   : > { %v4494_v11 = vadd.f32 %v4493_v35, %v4492_v62  ;;  %v7284_v53 = vadd.f32 %v4603_v7, %v2891_v37  ;;  %v4606_v36 = vadd.f32 %v4605_v54, %v4604_v14  ;;  %v5248_v37 = vld [vmem:[#allocation8 + $0x10] sm:$0xff]  }
 0x285   : > { %v4495_v10 = vpop.f32.mrf.mxu1  ;;  %5021 = vmatprep.subr.bf16.mxu0 %v5248_v37 }
 0x286   : > { %v2894_v58 = vadd.f32 %v4494_v11, %v7170_v39  ;;  %5022 = vmatpush3.bf16.msra.mxu0 %v5248_v37 }
 0x287   : > { %v4496_v27 = vpop.f32.mrf.mxu1 }
 0x288   : > { %v4497_v44 = vadd.f32 %v4496_v27, %v4495_v10  ;;  %v7289_v59 = vadd.f32 %v4606_v36, %v2894_v58 }
 0x289   : > { %v4607_v63 = vpop.f32.mrf.mxu0  ;;  %v4498_v49 = vpop.f32.mrf.mxu1  ;;  %4992 = vmatmul.mubr.bf16.gmra.mxu1 %v8428_v23 }
 0x28a   : > { %v2899_v55 = vadd.f32 %v4497_v44, %v7170_v39  ;;  %4995 = vmatprep.mubr.bf16.mxu1 %v8429_v4 }
 0x28b   : > { %v4608_v3 = vpop.f32.mrf.mxu0  ;;  %v4499_v45 = vpop.f32.mrf.mxu1 }
 0x28c   : > { %v4609_v22 = vadd.f32 %v4608_v3, %v4607_v63  ;;  %v4500_v6 = vadd.f32 %v4499_v45, %v4498_v49 }
 0x28d   : > { %v4610_v61 = vpop.f32.mrf.mxu0  ;;  %v4501_v15 = vpop.f32.mrf.mxu1 }
 0x28e   : > { %v7292_v33 = vadd.f32 %v4609_v22, %v2899_v55  ;;  %v2902_v34 = vadd.f32 %v4500_v6, %v7170_v39 }
 0x28f   : > { %v4611_v1 = vpop.f32.mrf.mxu0  ;;  %v4502_v2 = vpop.f32.mrf.mxu1 }
 0x290   : > { %v4612_v43 = vadd.f32 %v4611_v1, %v4610_v61  ;;  %v4503_v51 = vadd.f32 %v4502_v2, %v4501_v15 }
 0x291   : > { %v4613_v13 = vpop.f32.mrf.mxu0  ;;  %v4504_v8 = vpop.f32.mrf.mxu1  ;;  %4996 = vmatmul.mubr.bf16.gmra.mxu1 %v6951_v21 }
 0x292   : > { %v7297_v7 = vadd.f32 %v4612_v43, %v2902_v34  ;;  %v2907_v42 = vadd.f32 %v4503_v51, %v7170_v39  ;;  %4999 = vmatprep.mubr.bf16.mxu1 %v6954_v56 }
 0x293   : > { %v4614_v60 = vpop.f32.mrf.mxu0  ;;  %v4505_v62 = vpop.f32.mrf.mxu1 }
 0x294   : > { %v4615_v12 = vadd.f32 %v4614_v60, %v4613_v13  ;;  %v4506_v54 = vadd.f32 %v4505_v62, %v4504_v8 }
 0x295   : > { %v4616_v0 = vpop.f32.mrf.mxu0  ;;  %v4507_v11 = vpop.f32.mrf.mxu1 }
 0x296   : > { %v7300_v32 = vadd.f32 %v4615_v12, %v2907_v42  ;;  %v2910_v10 = vadd.f32 %v4506_v54, %v7170_v39  ;;  %v5249_v42 = vld [vmem:[#allocation8 + $0x8] sm:$0xff]  }
 0x297   : > { %v4617_v14 = vpop.f32.mrf.mxu0  ;;  %v4508_v3 = vpop.f32.mrf.mxu1  ;;  %5023 = vmatprep.subr.bf16.mxu0 %v5249_v42 }
 0x298   : > { %v4618_v63 = vadd.f32 %v4617_v14, %v4616_v0  ;;  %v4509_v19 = vadd.f32 %v4508_v3, %v4507_v11  ;;  %5024 = vmatpush3.bf16.msra.mxu0 %v5249_v42 }
 0x299   : > { %v4619_v35 = vpop.f32.mrf.mxu0  ;;  %v4510_v44 = vpop.f32.mrf.mxu1  ;;  %5000 = vmatmul.mubr.bf16.gmra.mxu1 %v6957_v28 }
 0x29a   : > { %v7305_v27 = vadd.f32 %v4618_v63, %v2910_v10  ;;  %v2915_v61 = vadd.f32 %v4509_v19, %v7170_v39  ;;  %5003 = vmatprep.mubr.bf16.mxu1 %v6960_v29 }
 0x29b   : > { %v4620_v36 = vpop.f32.mrf.mxu0  ;;  %v4511_v21 = vpop.f32.mrf.mxu1 }
 0x29c   : > { %v4621_v58 = vadd.f32 %v4620_v36, %v4619_v35  ;;  %v4512_v1 = vadd.f32 %v4511_v21, %v4510_v44  ;;  %v8430_v35 = vld [vmem:[#allocation35_spill] sm:$0xff] }
 0x29d   : > { %v4622_v22 = vpop.f32.mrf.mxu0  ;;  %v4513_v13 = vpop.f32.mrf.mxu1 }
 0x29e   : > { %v7308_v6 = vadd.f32 %v4621_v58, %v2915_v61  ;;  %v2918_v56 = vadd.f32 %v4512_v1, %v7170_v39 }
 0x29f   : > { %v4623_v49 = vpop.f32.mrf.mxu0  ;;  %v4514_v43 = vpop.f32.mrf.mxu1 }
 0x2a0   : > { %v4624_v55 = vadd.f32 %v4623_v49, %v4622_v22  ;;  %v4515_v34 = vadd.f32 %v4514_v43, %v4513_v13 }
 0x2a1   : > { %v4625_v45 = vpop.f32.mrf.mxu0  ;;  %v4516_v12 = vpop.f32.mrf.mxu1  ;;  %5004 = vmatmul.mubr.bf16.gmra.mxu1 %v6971_v50 }
 0x2a2   : > { %v7313_v4 = vadd.f32 %v4624_v55, %v2918_v56  ;;  %v2923_v2 = vadd.f32 %v4515_v34, %v7170_v39  ;;  %5007 = vmatprep.mubr.bf16.mxu1 %v8430_v35  ;;  %v8431_v55 = vld [vmem:[#allocation48_spill] sm:$0xff] }
 0x2a3   : > { %v4626_v15 = vpop.f32.mrf.mxu0  ;;  %v4517_v8 = vpop.f32.mrf.mxu1  ;;  %v8432_v21 = vrot.slane %v8431_v55, 1 }
 0x2a4   : > { %v4627_v23 = vadd.f32 %v4626_v15, %v4625_v45  ;;  %v4518_v14 = vadd.f32 %v4517_v8, %v4516_v12 }
 0x2a5   : > { %v4628_v60 = vpop.f32.mrf.mxu0  ;;  %v4519_v37 = vpop.f32.mrf.mxu1  ;;  %v2184_v1 = vsel %vm8433_vm6, %v8432_v21, %v8419_v30  ;;  %v5250_v30 = vld [vmem:[#allocation8] sm:$0xff]  }
 0x2a6   : > { %v7316_v62 = vadd.f32 %v4627_v23, %v2923_v2  ;;  %v2926_v29 = vadd.f32 %v4518_v14, %v7170_v39  ;;  %5025 = vmatprep.subr.bf16.mxu0 %v5250_v30 }
 0x2a7   : > { %v4629_v51 = vpop.f32.mrf.mxu0  ;;  %v4520_v63 = vpop.f32.mrf.mxu1  ;;  %5026 = vmatpush3.bf16.msra.mxu0 %v5250_v30 }
 0x2a8   : > { %v4630_v0 = vadd.f32 %v4629_v51, %v4628_v60  ;;  %v4521_v10 = vadd.f32 %v4520_v63, %v4519_v37 }
 0x2a9   : > { %v4631_v28 = vpop.f32.mrf.mxu0  ;;  %v4522_v3 = vpop.f32.mrf.mxu1  ;;  %5008 = vmatmul.mubr.bf16.gmra.mxu1 %v2184_v1 }
 0x2aa   : > { %v7321_v58 = vadd.f32 %v4630_v0, %v2926_v29  ;;  %v2931_v19 = vadd.f32 %v4521_v10, %v7170_v39 }
 0x2ab   : > { %v4632_v54 = vpop.f32.mrf.mxu0  ;;  %v4523_v61 = vpop.f32.mrf.mxu1 }
 0x2ac   : > { %v4633_v11 = vadd.f32 %v4632_v54, %v4631_v28  ;;  %v4524_v50 = vadd.f32 %v4523_v61, %v4522_v3 }
 0x2ad   : > { %v4634_v36 = vpop.f32.mrf.mxu0  ;;  %v4525_v13 = vpop.f32.mrf.mxu1 }
 0x2ae   : > { %v7328_v45 = vadd.f32 %v4633_v11, %v2931_v19  ;;  %v2934_v56 = vadd.f32 %v4524_v50, %v7170_v39 }
 0x2af   : > { %v4635_v22 = vpop.f32.mrf.mxu0  ;;  %v4526_v43 = vpop.f32.mrf.mxu1 }
 0x2b0   : > { %v4636_v44 = vadd.f32 %v4635_v22, %v4634_v36  ;;  %v4527_v34 = vadd.f32 %v4526_v43, %v4525_v13 }
 0x2b1   : > { %v4637_v49 = vpop.f32.mrf.mxu0  ;;  %v4528_v2 = vpop.f32.mrf.mxu1 }
 0x2b2   : > { %v7331_v12 = vadd.f32 %v4636_v44, %v2934_v56  ;;  %v2939_v51 = vadd.f32 %v4527_v34, %v7170_v39 }
 0x2b3   : > { %v4638_v15 = vpop.f32.mrf.mxu0  ;;  %v4529_v42 = vpop.f32.mrf.mxu1 }
 0x2b4   : > { %v4639_v23 = vadd.f32 %v4638_v15, %v4637_v49  ;;  %v4530_v14 = vadd.f32 %v4529_v42, %v4528_v2 }
 0x2b5   : > { %v4640_v60 = vpop.f32.mrf.mxu0  ;;  %v4659_v29 = vpop.f32.mrf.mxu1 }
 0x2b6   : > { %v7334_v37 = vadd.f32 %v4639_v23, %v2939_v51  ;;  %v2942_v54 = vadd.f32 %v4530_v14, %v7170_v39 }
 0x2b7   : > { %v4641_v0 = vpop.f32.mrf.mxu0  ;;  %v4660_v63 = vpop.f32.mrf.mxu1 }
 0x2b8   : > { %v4642_v8 = vadd.f32 %v4641_v0, %v4640_v60  ;;  %v4661_v10 = vadd.f32 %v4660_v63, %v4659_v29 }
 0x2b9   : > { %v4771_v28 = vpop.f32.mrf.mxu0  ;;  %v4662_v19 = vpop.f32.mrf.mxu1 }
 0x2ba   : > { %v7337_v3 = vadd.f32 %v4642_v8, %v2942_v54  ;;  %v3141_v22 = vadd.f32 %v4661_v10, %v7176_v20 }
 0x2bb   : > { %v4772_v35 = vpop.f32.mrf.mxu0  ;;  %v4663_v61 = vpop.f32.mrf.mxu1 }
 0x2bc   : > { %v4773_v11 = vadd.f32 %v4772_v35, %v4771_v28  ;;  %8434 = vst [vmem:[#allocation25_spill] sm:$0xff] %v7337_v3  ;;  %v4664_v50 = vadd.f32 %v4663_v61, %v4662_v19 }
 0x2bd   : > { %v4774_v36 = vpop.f32.mrf.mxu0  ;;  %v4665_v21 = vpop.f32.mrf.mxu1 }
 0x2be   : > { %v7342_v55 = vadd.f32 %v4773_v11, %v3141_v22  ;;  %v3144_v1 = vadd.f32 %v4664_v50, %v7182_v46 }
 0x2bf   : > { %v4775_v44 = vpop.f32.mrf.mxu0  ;;  %v4666_v56 = vpop.f32.mrf.mxu1 }
 0x2c0   : > { %v4776_v39 = vadd.f32 %v4775_v44, %v4774_v36  ;;  %v4667_v15 = vadd.f32 %v4666_v56, %v4665_v21 }
 0x2c1   : > { %v7340_v49 = vpop.f32.mrf.mxu0  ;;  %v4668_v20 = vpop.f32.mrf.mxu1 }
 0x2c2   : > { %v7349_v43 = vadd.f32 %v4776_v39, %v3144_v1  ;;  %v7352_v34 = vadd.f32 %v4667_v15, %v7188_v41 }
 0x2c3   : > { %v7345_v13 = vpop.f32.mrf.mxu0  ;;  %v4669_v2 = vpop.f32.mrf.mxu1 }
 0x2c4   : > { %v4670_v51 = vadd.f32 %v4669_v2, %v4668_v20 }
 0x2c5   : > { %v7347_v23 = vpop.f32.mrf.mxu0  ;;  %v4671_v8 = vpop.f32.mrf.mxu1 }
 0x2c6   : > { %v7359_v46 = vadd.f32 %v4670_v51, %v7194_v25 }
 0x2c7   : > { %v7354_v60 = vpop.f32.mrf.mxu0  ;;  %v4672_v30 = vpop.f32.mrf.mxu1 }
 0x2c8   : > { %v4673_v14 = vadd.f32 %v4672_v30, %v4671_v8 }
 0x2c9   : > { %v7356_v0 = vpop.f32.mrf.mxu0  ;;  %v4674_v29 = vpop.f32.mrf.mxu1 }
 0x2ca   : > { %v7366_v41 = vadd.f32 %v4673_v14, %v7200_v26 }
 0x2cb   : > { %v7361_v42 = vpop.f32.mrf.mxu0  ;;  %v4675_v35 = vpop.f32.mrf.mxu1 }
 0x2cc   : > { %v4676_v11 = vadd.f32 %v4675_v35, %v4674_v29 }
 0x2cd   : > { %v7363_v28 = vpop.f32.mrf.mxu0  ;;  %v4677_v10 = vpop.f32.mrf.mxu1 }
 0x2ce   : > { %v7373_v25 = vadd.f32 %v4676_v11, %v7206_v18 }
 0x2cf   : > { %v7368_v54 = vpop.f32.mrf.mxu0  ;;  %v4678_v19 = vpop.f32.mrf.mxu1 }
 0x2d0   : > { %v4679_v22 = vadd.f32 %v4678_v19, %v4677_v10 }
 0x2d1   : > { %v7370_v63 = vpop.f32.mrf.mxu0  ;;  %v4680_v61 = vpop.f32.mrf.mxu1 }
 0x2d2   : > { %v7380_v26 = vadd.f32 %v4679_v22, %v7213_v5 }
 0x2d3   : > { %v7375_v36 = vpop.f32.mrf.mxu0  ;;  %v4681_v21 = vpop.f32.mrf.mxu1 }
 0x2d4   : > { %v4682_v39 = vadd.f32 %v4681_v21, %v4680_v61 }
 0x2d5   : > { %v7377_v44 = vpop.f32.mrf.mxu0  ;;  %v4683_v56 = vpop.f32.mrf.mxu1 }
 0x2d6   : > { %v7387_v18 = vadd.f32 %v4682_v39, %v7221_v16 }
 0x2d7   : > { %v7382_v50 = vpop.f32.mrf.mxu0  ;;  %v4684_v20 = vpop.f32.mrf.mxu1 }
 0x2d8   : > { %v4685_v2 = vadd.f32 %v4684_v20, %v4683_v56 }
 0x2d9   : > { %v7384_v1 = vpop.f32.mrf.mxu0  ;;  %v4686_v8 = vpop.f32.mrf.mxu1 }
 0x2da   : > { %v7394_v5 = vadd.f32 %v4685_v2, %v7229_v24 }
 0x2db   : > { %v7389_v15 = vpop.f32.mrf.mxu0  ;;  %v4687_v14 = vpop.f32.mrf.mxu1 }
 0x2dc   : > { %v4688_v29 = vadd.f32 %v4687_v14, %v4686_v8 }
 0x2dd   : > { %v7391_v51 = vpop.f32.mrf.mxu0  ;;  %v4689_v11 = vpop.f32.mrf.mxu1 }
 0x2de   : > { %v7401_v16 = vadd.f32 %v4688_v29, %v7234_v38 }
 0x2df   : > { %v7396_v30 = vpop.f32.mrf.mxu0  ;;  %v4690_v19 = vpop.f32.mrf.mxu1 }
 0x2e0   : > { %8435 = vst [vmem:[#allocation17_spill] sm:$0xff] %v7401_v16  ;;  %v4691_v22 = vadd.f32 %v4690_v19, %v4689_v11 }
 0x2e1   : > { %v7398_v35 = vpop.f32.mrf.mxu0  ;;  %v4692_v21 = vpop.f32.mrf.mxu1 }
 0x2e2   : > { %v7408_v24 = vadd.f32 %v4691_v22, %v7242_v31 }
 0x2e3   : > { %v7403_v10 = vpop.f32.mrf.mxu0  ;;  %v4693_v56 = vpop.f32.mrf.mxu1 }
 0x2e4   : > { %v4694_v20 = vadd.f32 %v4693_v56, %v4692_v21 }
 0x2e5   : > { %v7405_v61 = vpop.f32.mrf.mxu0  ;;  %v4695_v8 = vpop.f32.mrf.mxu1 }
 0x2e6   : > { %v7415_v38 = vadd.f32 %v4694_v20, %v7253_v40 }
 0x2e7   : > { %v7410_v39 = vpop.f32.mrf.mxu0  ;;  %v4696_v29 = vpop.f32.mrf.mxu1 }
 0x2e8   : > { %v4697_v11 = vadd.f32 %v4696_v29, %v4695_v8 }
 0x2e9   : > { %v7412_v2 = vpop.f32.mrf.mxu0  ;;  %v4698_v3 = vpop.f32.mrf.mxu1 }
 0x2ea   : > { %8436 = vst [vmem:[#allocation32_spill] sm:$0xff] %v7412_v2  ;;  %v7422_v31 = vadd.f32 %v4697_v11, %v7259_v48 }
 0x2eb   : > { %v7417_v14 = vpop.f32.mrf.mxu0  ;;  %v4699_v16 = vpop.f32.mrf.mxu1 }
 0x2ec   : > { %8437 = vst [vmem:[#allocation20_spill] sm:$0xff] %v7417_v14  ;;  %8439 = vst [vmem:[#allocation29_spill] sm:$0xff] %v7422_v31  ;;  %v4700_v21 = vadd.f32 %v4699_v16, %v4698_v3 }
 0x2ed   : > { %v7419_v19 = vpop.f32.mrf.mxu0  ;;  %v4701_v2 = vpop.f32.mrf.mxu1 }
 0x2ee   : > { %8438 = vst [vmem:[#allocation34_spill] sm:$0xff] %v7419_v19  ;;  %v7429_v40 = vadd.f32 %v4700_v21, %v7263_v57 }
 0x2ef   : > { %v7424_v22 = vpop.f32.mrf.mxu0  ;;  %v4702_v14 = vpop.f32.mrf.mxu1 }
 0x2f0   : > { %8440 = vst [vmem:[#allocation38_spill] sm:$0xff] %v7424_v22  ;;  %8441 = vst [vmem:[#allocation23_spill] sm:$0xff] %v7429_v40  ;;  %v4703_v8 = vadd.f32 %v4702_v14, %v4701_v2 }
 0x2f1   : > { %v7426_v56 = vpop.f32.mrf.mxu0  ;;  %v4704_v19 = vpop.f32.mrf.mxu1 }
 0x2f2   : > { %v7436_v48 = vadd.f32 %v4703_v8, %v7269_v47 }
 0x2f3   : > { %v7431_v20 = vpop.f32.mrf.mxu0  ;;  %v4705_v31 = vpop.f32.mrf.mxu1 }
 0x2f4   : > { %8443 = vst [vmem:[#allocation28_spill] sm:$0xff] %v7436_v48  ;;  %v4706_v3 = vadd.f32 %v4705_v31, %v4704_v19 }
 0x2f5   : > { %v7433_v29 = vpop.f32.mrf.mxu0  ;;  %v4707_v22 = vpop.f32.mrf.mxu1 }
 0x2f6   : > { %8442 = vst [vmem:[#allocation37_spill] sm:$0xff] %v7433_v29  ;;  %v7443_v57 = vadd.f32 %v4706_v3, %v7273_v17 }
 0x2f7   : > { %v7438_v11 = vpop.f32.mrf.mxu0  ;;  %v4708_v40 = vpop.f32.mrf.mxu1 }
 0x2f8   : > { %8445 = vst [vmem:[#allocation31_spill] sm:$0xff] %v7443_v57  ;;  %v4709_v2 = vadd.f32 %v4708_v40, %v4707_v22 }
 0x2f9   : > { %v7440_v16 = vpop.f32.mrf.mxu0  ;;  %v4710_v29 = vpop.f32.mrf.mxu1 }
 0x2fa   : > { %8444 = vst [vmem:[#allocation40_spill] sm:$0xff] %v7440_v16  ;;  %v7450_v47 = vadd.f32 %v4709_v2, %v7276_v52 }
 0x2fb   : > { %v7445_v21 = vpop.f32.mrf.mxu0  ;;  %v4711_v48 = vpop.f32.mrf.mxu1 }
 0x2fc   : > { %8446 = vst [vmem:[#allocation41_spill] sm:$0xff] %v7445_v21  ;;  %8448 = vst [vmem:[#allocation24_spill] sm:$0xff] %v7450_v47  ;;  %v4712_v19 = vadd.f32 %v4711_v48, %v4710_v29 }
 0x2fd   : > { %v7447_v14 = vpop.f32.mrf.mxu0  ;;  %v4713_v31 = vpop.f32.mrf.mxu1 }
 0x2fe   : > { %8447 = vst [vmem:[#allocation33_spill] sm:$0xff] %v7447_v14  ;;  %v7455_v16 = vadd.f32 %v4712_v19, %v7281_v9 }
 0x2ff   : > { %v7452_v8 = vpop.f32.mrf.mxu0  ;;  %v4714_v3 = vpop.f32.mrf.mxu1 }
 0x300   : > { %8449 = vst [vmem:[#allocation27_spill] sm:$0xff] %v7452_v8  ;;  %8450 = vst [vmem:[#allocation36_spill] sm:$0xff] %v7455_v16  ;;  %v4715_v21 = vadd.f32 %v4714_v3, %v4713_v31 }
 0x301   : > { %v7457_v17 = vpop.f32.mrf.mxu0  ;;  %v4716_v57 = vpop.f32.mrf.mxu1 }
 0x302   : > { %v7462_v40 = vadd.f32 %v4715_v21, %v7284_v53 }
 0x303   : > { %v7459_v22 = vpop.f32.mrf.mxu0  ;;  %v4717_v52 = vpop.f32.mrf.mxu1 }
 0x304   : > { %8451 = vst [vmem:[#allocation26_spill] sm:$0xff] %v7462_v40  ;;  %v4718_v2 = vadd.f32 %v4717_v52, %v4716_v57 }
 0x305   : > { %v4719_v47 = vpop.f32.mrf.mxu1  ;;  %v7464_v8 = vpop.f32.mrf.mxu0 }
 0x306   : > { %v7467_v29 = vadd.f32 %v4718_v2, %v7289_v59 }
 0x307   : > { %v4720_v9 = vpop.f32.mrf.mxu1  ;;  %v7469_v16 = vpop.f32.mrf.mxu0 }
 0x308   : > { %8452 = vst [vmem:[#allocation18_spill] sm:$0xff] %v7467_v29  ;;  %v4721_v48 = vadd.f32 %v4720_v9, %v4719_v47 }
 0x309   : > { %v4722_v19 = vpop.f32.mrf.mxu1  ;;  %v7474_v21 = vpop.f32.mrf.mxu0 }
 0x30a   : > { %v7472_v31 = vadd.f32 %v4721_v48, %v7292_v33 }
 0x30b   : > { %v4723_v3 = vpop.f32.mrf.mxu1  ;;  %v7479_v2 = vpop.f32.mrf.mxu0 }
 0x30c   : > { %8453 = vst [vmem:[#allocation39_spill] sm:$0xff] %v7472_v31  ;;  %v4724_v14 = vadd.f32 %v4723_v3, %v4722_v19 }
 0x30d   : > { %v4725_v53 = vpop.f32.mrf.mxu1  ;;  %v7484_v48 = vpop.f32.mrf.mxu0 }
 0x30e   : > { %v7477_v57 = vadd.f32 %v4724_v14, %v7297_v7  ;;  %8455 = vst [vmem:[#allocation21_spill] sm:$0xff] %v7484_v48 }
 0x30f   : > { %v4726_v52 = vpop.f32.mrf.mxu1  ;;  %v7489_v14 = vpop.f32.mrf.mxu0 }
 0x310   : > { %8454 = vst [vmem:[#allocation30_spill] sm:$0xff] %v7477_v57  ;;  %v4727_v40 = vadd.f32 %v4726_v52, %v4725_v53 }
 0x311   : > { %v4728_v59 = vpop.f32.mrf.mxu1 }
 0x312   : > { %v7482_v47 = vadd.f32 %v4727_v40, %v7300_v32  ;;  %v7494_v40 = vpop.f32.mrf.mxu0 }
 0x313   : > { %v4729_v9 = vpop.f32.mrf.mxu1 }
 0x314   : > { %v4730_v29 = vadd.f32 %v4729_v9, %v4728_v59 }
 0x315   : > { %v4731_v33 = vpop.f32.mrf.mxu1 }
 0x316   : > { %v7487_v19 = vadd.f32 %v4730_v29, %v7305_v27  ;;  %v7499_v29 = vpop.f32.mrf.mxu0 }
 0x317   : > { %v4732_v3 = vpop.f32.mrf.mxu1 }
 0x318   : > { %8456 = vst [vmem:[#allocation42_spill] sm:$0xff] %v7487_v19  ;;  %v4733_v31 = vadd.f32 %v4732_v3, %v4731_v33 }
 0x319   : > { %v4734_v7 = vpop.f32.mrf.mxu1 }
 0x31a   : > { %v7492_v53 = vadd.f32 %v4733_v31, %v7308_v6  ;;  %v7504_v31 = vpop.f32.mrf.mxu0 }
 0x31b   : > { %v4735_v52 = vpop.f32.mrf.mxu1 }
 0x31c   : > { %8457 = vst [vmem:[#allocation43_spill] sm:$0xff] %v7492_v53  ;;  %v4736_v57 = vadd.f32 %v4735_v52, %v4734_v7 }
 0x31d   : > { %v4737_v32 = vpop.f32.mrf.mxu1 }
 0x31e   : > { %v7497_v59 = vadd.f32 %v4736_v57, %v7313_v4  ;;  %v7509_v57 = vpop.f32.mrf.mxu0 }
 0x31f   : > { %v4738_v9 = vpop.f32.mrf.mxu1 }
 0x320   : > { %8458 = vst [vmem:[#allocation44_spill] sm:$0xff] %v7497_v59  ;;  %v4739_v48 = vadd.f32 %v4738_v9, %v4737_v32 }
 0x321   : > { %v4740_v27 = vpop.f32.mrf.mxu1 }
 0x322   : > { %v7502_v33 = vadd.f32 %v4739_v48, %v7316_v62  ;;  %v7514_v48 = vpop.f32.mrf.mxu0 }
 0x323   : > { %v4741_v3 = vpop.f32.mrf.mxu1 }
 0x324   : > { %8459 = vst [vmem:[#allocation45_spill] sm:$0xff] %v7502_v33  ;;  %v4742_v19 = vadd.f32 %v4741_v3, %v4740_v27 }
 0x325   : > { %v4743_v6 = vpop.f32.mrf.mxu1 }
 0x326   : > { %v7507_v7 = vadd.f32 %v4742_v19, %v7321_v58  ;;  %v7521_v19 = vpop.f32.mrf.mxu0 }
 0x327   : > { %v4744_v52 = vpop.f32.mrf.mxu1 }
 0x328   : > { %v4745_v53 = vadd.f32 %v4744_v52, %v4743_v6 }
 0x329   : > { %v4746_v4 = vpop.f32.mrf.mxu1 }
 0x32a   : > { %v7512_v32 = vadd.f32 %v4745_v53, %v7328_v45  ;;  %v4779_v45 = vadd.f32 %v7345_v13, %v7340_v49  ;;  %v4791_v49 = vadd.f32 %v7375_v36, %v7370_v63  ;;  %v4788_v63 = vadd.f32 %v7368_v54, %v7363_v28 }
 0x32b   : > { %v4747_v9 = vpop.f32.mrf.mxu1  ;;  %v4803_v28 = vadd.f32 %v7403_v10, %v7398_v35  ;;  %v4800_v35 = vadd.f32 %v7396_v30, %v7391_v51  ;;  %v4815_v51 = vadd.f32 %v7431_v20, %v7426_v56 }
 0x32c   : > { %8460 = vst [vmem:[#allocation19_spill] sm:$0xff] %v7512_v32  ;;  %v4748_v59 = vadd.f32 %v4747_v9, %v4746_v4  ;;  %v4782_v4 = vadd.f32 %v7354_v60, %v7347_v23 }
 0x32d   : > { %v4749_v62 = vpop.f32.mrf.mxu1 }
 0x32e   : > { %v7517_v27 = vadd.f32 %v4748_v59, %v7331_v12  ;;  %v7532_v12 = vpop.f32.mrf.mxu0  ;;  %v3310_v59 = vadd.f32 %v4779_v45, %v7352_v34  ;;  %v4785_v34 = vadd.f32 %v7361_v42, %v7356_v0 }
 0x32f   : > { %v4750_v3 = vpop.f32.mrf.mxu1 }
 0x330   : > { %8461 = vst [vmem:[#allocation16_spill] sm:$0xff] %v7517_v27  ;;  %v4751_v33 = vadd.f32 %v4750_v3, %v4749_v62  ;;  %v3313_v3 = vadd.f32 %v4782_v4, %v7359_v46  ;;  %v4794_v46 = vadd.f32 %v7382_v50, %v7377_v44 }
 0x331   : > { %v7519_v58 = vpop.f32.mrf.mxu1 }
 0x332   : > { %v7524_v6 = vadd.f32 %v4751_v33, %v7334_v37  ;;  %v7536_v37 = vpop.f32.mrf.mxu0  ;;  %v3329_v0 = vadd.f32 %v4794_v46, %v7387_v18  ;;  %v4806_v18 = vadd.f32 %v7410_v39, %v7405_v61 }
 0x333   : > { %v7526_v52 = vpop.f32.mrf.mxu1 }
 0x334   : > { %8462 = vst [vmem:[#allocation22_spill] sm:$0xff] %v7524_v6 }
 0x335   : > { %v4981_v53 = vpop.f32.mrf.mxu1 }
 0x336   : > { %v3471_v62 = vadd.f32 %v4981_v53, %v3310_v59  ;;  %v7546_v53 = vpop.f32.mrf.mxu0  ;;  %v3326_v59 = vadd.f32 %v4791_v49, %v7380_v26 }
 0x337   : > { %v3462_v9 = vpop.f32.mrf.mxu1 }
 0x338   : > { %v3463_v33 = vadd.f32 %v3462_v9, %v7342_v55  ;;  %v3591_v13 = vmax.f32 %v3471_v62, 0.0  ;;  %v7553_v44 = vpop.f32.mrf.mxu0  ;;  %v3321_v62 = vadd.f32 %v4788_v63, %v7373_v25 }
 0x339   : > { %v4982_v27 = vpop.f32.mrf.mxu1 }
 0x33a   : > { %v3474_v32 = vadd.f32 %v4982_v27, %v3313_v3  ;;  %v3589_v4 = vmax.f32 %v3463_v33, 0.0 }
 0x33b   : > { %v3465_v6 = vpop.f32.mrf.mxu1 }
 0x33c   : > { %v3592_v23 = vmax.f32 %v3474_v32, 0.0  ;;  %v3466_v60 = vadd.f32 %v3465_v6, %v7349_v43  ;;  %v3318_v6 = vadd.f32 %v4785_v34, %v7366_v41  ;;  %v4797_v41 = vadd.f32 %v7389_v15, %v7384_v1 }
 0x33d   : > { %v4985_v45 = vpop.f32.mrf.mxu1  ;;  %v3342_v34 = vadd.f32 %v4803_v28, %v7408_v24  ;;  %v3345_v1 = vadd.f32 %v4806_v18, %v7415_v38  ;;  %v8466_v38 = vld [vmem:[#allocation37_spill] sm:$0xff] }
 0x33e   : > { %v3622_v55 = vpack.c.bf16 %v3592_v23, %v3591_v13  ;;  %v3590_v27 = vmax.f32 %v3466_v60, 0.0  ;;  %v3487_v43 = vadd.f32 %v4985_v45, %v3326_v59  ;;  %v7562_v13 = vpop.f32.mrf.mxu0  ;;  %v8470_v18 = vld [vmem:[#allocation29_spill] sm:$0xff] }
 0x33f   : > { %v3478_v36 = vpop.f32.mrf.mxu1 }
 0x340   : > { %v3621_v32 = vpack.c.bf16 %v3590_v27, %v3589_v4  ;;  %v3479_v50 = vadd.f32 %v3478_v36, %v3318_v6  ;;  %v3595_v54 = vmax.f32 %v3487_v43, 0.0  ;;  %v3334_v4 = vadd.f32 %v4797_v41, %v7394_v5  ;;  %v7569_v61 = vpop.f32.mrf.mxu0  ;;  %v8463_v27 = vld [vmem:[#allocation17_spill] sm:$0xff]  ;;  %v8465_v5 = vld [vmem:[#allocation20_spill] sm:$0xff] }
 0x341   : > { %v4986_v42 = vpop.f32.mrf.mxu1  ;;  %v3337_v59 = vadd.f32 %v4800_v35, %v8463_v27  ;;  %v4818_v6 = vadd.f32 %v7438_v11, %v8466_v38  ;;  %v8474_v27 = vld [vmem:[#allocation41_spill] sm:$0xff] }
 0x342   : > { %v3490_v9 = vadd.f32 %v4986_v42, %v3329_v0  ;;  %5027 = vmatprep.mubr.bf16.mxu0 %v3621_v32  ;;  %v3593_v23 = vmax.f32 %v3479_v50, 0.0  ;;  %v8464_v32 = vld [vmem:[#allocation32_spill] sm:$0xff]  ;;  %v7578_v42 = vpop.f32.mrf.mxu0  ;;  %v8476_v38 = vld [vmem:[#allocation33_spill] sm:$0xff] }
 0x343   : > { %v3481_v3 = vpop.f32.mrf.mxu1  ;;  %5028 = vmatmul.mubr.bf16.vlgmr.msra.gmra.mxu0 %v3622_v55  ;;  %v4809_v43 = vadd.f32 %v8465_v5, %v8464_v32  ;;  %v8475_v5 = vld [vmem:[#allocation26_spill] sm:$0xff] }
 0x344   : > { %v3596_v26 = vmax.f32 %v3490_v9, 0.0  ;;  %v3482_v33 = vadd.f32 %v3481_v3, %v3321_v62  ;;  %v8467_v3 = vld [vmem:[#allocation28_spill] sm:$0xff]  ;;  %v7585_v11 = vpop.f32.mrf.mxu0 }
 0x345   : > { %v4989_v49 = vpop.f32.mrf.mxu1  ;;  %v3358_v28 = vadd.f32 %v4815_v51, %v8467_v3  ;;  %v8479_v3 = vld [vmem:[#allocation18_spill] sm:$0xff] }
 0x346   : > { %v3624_v60 = vpack.c.bf16 %v3596_v26, %v3595_v54  ;;  %v3594_v25 = vmax.f32 %v3482_v33, 0.0  ;;  %v3503_v45 = vadd.f32 %v4989_v49, %v3342_v34  ;;  %v8468_v54 = vld [vmem:[#allocation34_spill] sm:$0xff]  ;;  %v3350_v49 = vadd.f32 %v4809_v43, %v8470_v18 }
 0x347   : > { %v3494_v10 = vpop.f32.mrf.mxu1  ;;  %v8469_v26 = vld [vmem:[#allocation38_spill] sm:$0xff] }
 0x348   : > { %v3623_v46 = vpack.c.bf16 %v3594_v25, %v3593_v23  ;;  %v3495_v39 = vadd.f32 %v3494_v10, %v3334_v4  ;;  %v3599_v30 = vmax.f32 %v3503_v45, 0.0  ;;  %v4812_v56 = vadd.f32 %v8469_v26, %v8468_v54  ;;  %v8471_v23 = vld [vmem:[#allocation31_spill] sm:$0xff] }
 0x349   : > { %v4990_v15 = vpop.f32.mrf.mxu1  ;;  %v8472_v10 = vld [vmem:[#allocation23_spill] sm:$0xff]  ;;  %v4827_v4 = vadd.f32 %v7459_v22, %v7457_v17 }
 0x34a   : > { %v3506_v55 = vadd.f32 %v4990_v15, %v3345_v1  ;;  %5031 = vmatprep.mubr.bf16.mxu0 %v3623_v46  ;;  %v3597_v50 = vmax.f32 %v3495_v39, 0.0  ;;  %v3353_v46 = vadd.f32 %v4812_v56, %v8472_v10  ;;  %v8480_v56 = vld [vmem:[#allocation36_spill] sm:$0xff] }
 0x34b   : > { %v3497_v63 = vpop.f32.mrf.mxu1  ;;  %5032 = vmatmul.mubr.bf16.gmra.mxu0 %v3624_v60  ;;  %v3361_v60 = vadd.f32 %v4818_v6, %v8471_v23  ;;  %v3374_v43 = vadd.f32 %v4827_v4, %v8475_v5  ;;  %v8477_v6 = vld [vmem:[#allocation27_spill] sm:$0xff] }
 0x34c   : > { %v3600_v24 = vmax.f32 %v3506_v55, 0.0  ;;  %v3498_v36 = vadd.f32 %v3497_v63, %v3337_v59  ;;  %v8473_v55 = vld [vmem:[#allocation40_spill] sm:$0xff]  ;;  %v4830_v63 = vadd.f32 %v7469_v16, %v7464_v8  ;;  %v4824_v17 = vadd.f32 %v8477_v6, %v8476_v38 }
 0x34d   : > { %v4993_v0 = vpop.f32.mrf.mxu1  ;;  %v4821_v59 = vadd.f32 %v8474_v27, %v8473_v55  ;;  %v8482_v55 = vld [vmem:[#allocation39_spill] sm:$0xff]  ;;  %v4854_v38 = vadd.f32 %v7569_v61, %v7562_v13 }
 0x34e   : > { %v3626_v9 = vpack.c.bf16 %v3600_v24, %v3599_v30  ;;  %v3598_v62 = vmax.f32 %v3498_v36, 0.0  ;;  %v3519_v41 = vadd.f32 %v4993_v0, %v3358_v28  ;;  %v7594_v30 = vpop.f32.mrf.mxu0  ;;  %v3377_v28 = vadd.f32 %v4830_v63, %v8479_v3 }
 0x34f   : > { %v3510_v20 = vpop.f32.mrf.mxu1  ;;  %v4848_v3 = vadd.f32 %v7536_v37, %v7532_v12  ;;  %v3409_v13 = vadd.f32 %v4854_v38, %v7507_v7  ;;  %v8488_v12 = vld [vmem:[#allocation25_spill] sm:$0xff] }
 0x350   : > { %v3625_v33 = vpack.c.bf16 %v3598_v62, %v3597_v50  ;;  %v3511_v34 = vadd.f32 %v3510_v20, %v3350_v49  ;;  %v3603_v1 = vmax.f32 %v3519_v41, 0.0  ;;  %v7601_v16 = vpop.f32.mrf.mxu0  ;;  %v3369_v20 = vadd.f32 %v4824_v17, %v8480_v56 }
 0x351   : > { %v4994_v25 = vpop.f32.mrf.mxu1  ;;  %v4839_v41 = vadd.f32 %v7499_v29, %v7494_v40 }
 0x352   : > { %v3522_v35 = vadd.f32 %v4994_v25, %v3361_v60  ;;  %5035 = vmatprep.mubr.bf16.mxu0 %v3625_v33  ;;  %v3601_v24 = vmax.f32 %v3511_v34, 0.0  ;;  %v4833_v60 = vadd.f32 %v7479_v2, %v7474_v21  ;;  %v4842_v25 = vadd.f32 %v7509_v57, %v7504_v31 }
 0x353   : > { %v3513_v45 = vpop.f32.mrf.mxu1  ;;  %5036 = vmatmul.mubr.bf16.gmra.mxu0 %v3626_v9  ;;  %v8478_v9 = vld [vmem:[#allocation24_spill] sm:$0xff]  ;;  %v3390_v4 = vadd.f32 %v4839_v41, %v7482_v47  ;;  %v4851_v47 = vadd.f32 %v7553_v44, %v7546_v53  ;;  %v8486_v53 = vld [vmem:[#allocation43_spill] sm:$0xff] }
 0x354   : > { %v3604_v15 = vmax.f32 %v3522_v35, 0.0  ;;  %v3514_v39 = vadd.f32 %v3513_v45, %v3353_v46  ;;  %v3366_v62 = vadd.f32 %v4821_v59, %v8478_v9  ;;  %v4861_v35 = vpop.f32.mrf.mxu0  ;;  %v3382_v27 = vadd.f32 %v4833_v60, %v8482_v55  ;;  %v8483_v59 = vld [vmem:[#allocation42_spill] sm:$0xff]  ;;  %v8485_v9 = vld [vmem:[#allocation45_spill] sm:$0xff] }
 0x355   : > { %v4997_v51 = vpop.f32.mrf.mxu1  ;;  %v3393_v21 = vadd.f32 %v4842_v25, %v8483_v59 }
 0x356   : > { %v3628_v36 = vpack.c.bf16 %v3604_v15, %v3603_v1  ;;  %v3602_v32 = vmax.f32 %v3514_v39, 0.0  ;;  %v3535_v50 = vadd.f32 %v4997_v51, %v3374_v43  ;;  %v8481_v1 = vld [vmem:[#allocation21_spill] sm:$0xff]  ;;  %v4862_v63 = vpop.f32.mrf.mxu0  ;;  %v8484_v51 = vld [vmem:[#allocation30_spill] sm:$0xff]  ;;  %v4845_v43 = vadd.f32 %v7521_v19, %v7514_v48 }
 0x357   : > { %v3526_v22 = vpop.f32.mrf.mxu1  ;;  %v4836_v15 = vadd.f32 %v7489_v14, %v8481_v1  ;;  %v4863_v41 = vadd.f32 %v4862_v63, %v4861_v35  ;;  %v4860_v35 = vadd.f32 %v7601_v16, %v7594_v30 }
 0x358   : > { %v3627_v0 = vpack.c.bf16 %v3602_v32, %v3601_v24  ;;  %v3527_v8 = vadd.f32 %v3526_v22, %v3366_v62  ;;  %v3607_v18 = vmax.f32 %v3535_v50, 0.0  ;;  %v4864_v17 = vpop.f32.mrf.mxu0  ;;  %v3406_v62 = vadd.f32 %v4851_v47, %v8485_v9 }
 0x359   : > { %v4998_v54 = vpop.f32.mrf.mxu1  ;;  %v3385_v24 = vadd.f32 %v4836_v15, %v8484_v51  ;;  %v3398_v44 = vadd.f32 %v4845_v43, %v8486_v53 }
 0x35a   : > { %v3538_v26 = vadd.f32 %v4998_v54, %v3377_v28  ;;  %5039 = vmatprep.mubr.bf16.mxu0 %v3627_v0  ;;  %v3605_v10 = vmax.f32 %v3527_v8, 0.0  ;;  %v4754_v54 = vadd.f32 %v7526_v52, %v7519_v58  ;;  %v4865_v8 = vpop.f32.mrf.mxu0  ;;  %v4857_v58 = vadd.f32 %v7585_v11, %v7578_v42  ;;  %v8491_v42 = vld [vmem:[#allocation16_spill] sm:$0xff] }
 0x35b   : > { %v3529_v33 = vpop.f32.mrf.mxu1  ;;  %5040 = vmatmul.mubr.bf16.gmra.mxu0 %v3628_v36  ;;  %v4866_v52 = vadd.f32 %v4865_v8, %v4864_v17  ;;  %v3417_v11 = vadd.f32 %v4860_v35, %v8491_v42 }
 0x35c   : > { %v3608_v49 = vmax.f32 %v3538_v26, 0.0  ;;  %v3530_v23 = vadd.f32 %v3529_v33, %v3369_v20  ;;  %v8487_v20 = vld [vmem:[#allocation44_spill] sm:$0xff]  ;;  %v3264_v37 = vadd.f32 %v4754_v54, %v8488_v12 }
 0x35d   : > { %v5001_v34 = vpop.f32.mrf.mxu1  ;;  %v3401_v33 = vadd.f32 %v4848_v3, %v8487_v20 }
 0x35e   : > { %v3630_v46 = vpack.c.bf16 %v3608_v49, %v3607_v18  ;;  %v3606_v45 = vmax.f32 %v3530_v23, 0.0  ;;  %v3551_v39 = vadd.f32 %v5001_v34, %v3390_v4 }
 0x35f   : > { %v3542_v40 = vpop.f32.mrf.mxu1 }
 0x360   : > { %v3629_v29 = vpack.c.bf16 %v3606_v45, %v3605_v10  ;;  %v3543_v31 = vadd.f32 %v3542_v40, %v3382_v27  ;;  %v3611_v14 = vmax.f32 %v3551_v39, 0.0  ;;  %v8490_v40 = vld [vmem:[#allocation19_spill] sm:$0xff]  ;;  %v3425_v39 = vadd.f32 %v4866_v52, %v3264_v37 }
 0x361   : > { %v5002_v2 = vpop.f32.mrf.mxu1 }
 0x362   : > { %v3554_v57 = vadd.f32 %v5002_v2, %v3393_v21  ;;  %5043 = vmatprep.mubr.bf16.mxu0 %v3629_v29  ;;  %v3609_v22 = vmax.f32 %v3543_v31, 0.0  ;;  %v3414_v29 = vadd.f32 %v4857_v58, %v8490_v40 }
 0x363   : > { %v3545_v36 = vpop.f32.mrf.mxu1  ;;  %5044 = vmatmul.mubr.bf16.gmra.mxu0 %v3630_v46  ;;  %v8489_v46 = vld [vmem:[#allocation22_spill] sm:$0xff] }
 0x364   : > { %v3612_v32 = vmax.f32 %v3554_v57, 0.0  ;;  %v3546_v5 = vadd.f32 %v3545_v36, %v3385_v24  ;;  %v3422_v45 = vadd.f32 %v4863_v41, %v8489_v46 }
 0x365   : > { %v5005_v6 = vpop.f32.mrf.mxu1 }
 0x366   : > { %v3632_v0 = vpack.c.bf16 %v3612_v32, %v3611_v14  ;;  %v3610_v50 = vmax.f32 %v3546_v5, 0.0  ;;  %v3567_v19 = vadd.f32 %v5005_v6, %v3406_v62  ;;  %v7641_v14 = vld [vmem:[%s8033_s6] ss:$0 sm:$0xff] }
 0x367   : > { %v3558_v28 = vpop.f32.mrf.mxu1 }
 0x368   : > { %v3631_v48 = vpack.c.bf16 %v3610_v50, %v3609_v22  ;;  %v3559_v26 = vadd.f32 %v3558_v28, %v3398_v44  ;;  %v3615_v49 = vmax.f32 %v3567_v19, 0.0 }
 0x369   : > { %v5006_v61 = vpop.f32.mrf.mxu1 }
 0x36a   : > { %v3570_v56 = vadd.f32 %v5006_v61, %v3409_v13  ;;  %5047 = vmatprep.mubr.bf16.mxu0 %v3631_v48  ;;  %v3613_v25 = vmax.f32 %v3559_v26, 0.0 }
 0x36b   : > { %v3561_v18 = vpop.f32.mrf.mxu1  ;;  %5048 = vmatmul.mubr.bf16.gmra.mxu0 %v3632_v0 }
 0x36c   : > { %v3616_v23 = vmax.f32 %v3570_v56, 0.0  ;;  %v3562_v60 = vadd.f32 %v3561_v18, %v3401_v33 }
 0x36d   : > { %v5009_v7 = vpop.f32.mrf.mxu1 }
 0x36e   : > { %v3634_v34 = vpack.c.bf16 %v3616_v23, %v3615_v49  ;;  %v3614_v10 = vmax.f32 %v3562_v60, 0.0  ;;  %v3583_v15 = vadd.f32 %v5009_v7, %v3422_v45 }
 0x36f   : > { %v3574_v4 = vpop.f32.mrf.mxu1 }
 0x370   : > { %v3633_v1 = vpack.c.bf16 %v3614_v10, %v3613_v25  ;;  %v3575_v27 = vadd.f32 %v3574_v4, %v3414_v29  ;;  %v3619_v2 = vmax.f32 %v3583_v15, 0.0 }
 0x371   : > { %v5010_v55 = vpop.f32.mrf.mxu1 }
 0x372   : > { %v3586_v59 = vadd.f32 %v5010_v55, %v3425_v39  ;;  %5051 = vmatprep.mubr.bf16.mxu0 %v3633_v1  ;;  %v3617_v57 = vmax.f32 %v3575_v27, 0.0 }
 0x373   : > { %v3577_v21 = vpop.f32.mrf.mxu1  ;;  %5052 = vmatmul.mubr.bf16.gmra.mxu0 %v3634_v34 }
 0x374   : > { %v3620_v63 = vmax.f32 %v3586_v59, 0.0  ;;  %v3578_v31 = vadd.f32 %v3577_v21, %v3417_v11 }
 0x376   : > { %v3636_v51 = vpack.c.bf16 %v3620_v63, %v3619_v2  ;;  %v3618_v30 = vmax.f32 %v3578_v31, 0.0 }
 0x378   : > { %v3635_v16 = vpack.c.bf16 %v3618_v30, %v3617_v57 }
 0x37a   : > { %5055 = vmatprep.mubr.bf16.mxu0 %v3635_v16 }
 0x37b   : > { %5056 = vmatmul.mubr.bf16.gmra.mxu0 %v3636_v51 }
 0x403   : > { %v5029_v24 = vpop.f32.mrf.mxu0 }
 0x404   : > { %v7650_v6 = vadd.f32 %v5029_v24, %v7641_v14 }
 0x405   : > { %v3742_v36 = vpop.f32.mrf.mxu0 }
 0x406   : > { %v7644_v5 = vadd.f32 %v7641_v14, %v3742_v36 }
 0x407   : > { %v5030_v47 = vpop.f32.mrf.mxu0 }
 0x408   : > { %v7655_v0 = vadd.f32 %v5030_v47, %v7641_v14 }
 0x409   : > { %v3745_v32 = vpop.f32.mrf.mxu0 }
 0x40a   : > { %v7647_v43 = vadd.f32 %v7641_v14, %v3745_v32 }
 0x40b   : > { %v5033_v38 = vpop.f32.mrf.mxu0 }
 0x40c   : > { %v3869_v17 = vadd.f32 %v7647_v43, %v7644_v5  ;;  %v7667_v48 = vadd.f32 %v5033_v38, %v7641_v14 }
 0x40d   : > { %v3758_v22 = vpop.f32.mrf.mxu0 }
 0x40e   : > { %v3870_v50 = vadd.f32 %v3869_v17, %v7650_v6  ;;  %v7659_v62 = vadd.f32 %v7641_v14, %v3758_v22 }
 0x40f   : > { %v5034_v9 = vpop.f32.mrf.mxu0 }
 0x410   : > { %v3871_v3 = vadd.f32 %v3870_v50, %v7655_v0  ;;  %v7671_v61 = vadd.f32 %v5034_v9, %v7641_v14 }
 0x411   : > { %v3761_v53 = vpop.f32.mrf.mxu0 }
 0x412   : > { %v3872_v44 = vadd.f32 %v3871_v3, %v7659_v62  ;;  %v7664_v28 = vadd.f32 %v7641_v14, %v3761_v53 }
 0x413   : > { %v5037_v54 = vpop.f32.mrf.mxu0 }
 0x414   : > { %v3873_v19 = vadd.f32 %v3872_v44, %v7664_v28  ;;  %v7683_v37 = vadd.f32 %v5037_v54, %v7641_v14 }
 0x415   : > { %v3774_v13 = vpop.f32.mrf.mxu0 }
 0x416   : > { %v3874_v8 = vadd.f32 %v3873_v19, %v7667_v48  ;;  %v7675_v56 = vadd.f32 %v7641_v14, %v3774_v13 }
 0x417   : > { %v5038_v26 = vpop.f32.mrf.mxu0 }
 0x418   : > { %v3875_v20 = vadd.f32 %v3874_v8, %v7671_v61  ;;  %v7687_v60 = vadd.f32 %v5038_v26, %v7641_v14 }
 0x419   : > { %v3777_v33 = vpop.f32.mrf.mxu0 }
 0x41a   : > { %v3876_v41 = vadd.f32 %v3875_v20, %v7675_v56  ;;  %v7680_v18 = vadd.f32 %v7641_v14, %v3777_v33 }
 0x41b   : > { %v5041_v12 = vpop.f32.mrf.mxu0 }
 0x41c   : > { %v3877_v49 = vadd.f32 %v3876_v41, %v7680_v18  ;;  %v7699_v35 = vadd.f32 %v5041_v12, %v7641_v14 }
 0x41d   : > { %v3790_v23 = vpop.f32.mrf.mxu0 }
 0x41e   : > { %v3878_v58 = vadd.f32 %v3877_v49, %v7683_v37  ;;  %v7691_v7 = vadd.f32 %v7641_v14, %v3790_v23 }
 0x41f   : > { %v5042_v52 = vpop.f32.mrf.mxu0 }
 0x420   : > { %v3879_v25 = vadd.f32 %v3878_v58, %v7687_v60  ;;  %v7703_v15 = vadd.f32 %v5042_v52, %v7641_v14 }
 0x421   : > { %v3793_v34 = vpop.f32.mrf.mxu0 }
 0x422   : > { %v3880_v10 = vadd.f32 %v3879_v25, %v7691_v7  ;;  %v7696_v46 = vadd.f32 %v7641_v14, %v3793_v34 }
 0x423   : > { %v5045_v45 = vpop.f32.mrf.mxu0 }
 0x424   : > { %v3881_v4 = vadd.f32 %v3880_v10, %v7696_v46  ;;  %v7715_v21 = vadd.f32 %v5045_v45, %v7641_v14 }
 0x425   : > { %v3806_v1 = vpop.f32.mrf.mxu0 }
 0x426   : > { %v3882_v40 = vadd.f32 %v3881_v4, %v7699_v35  ;;  %v7707_v39 = vadd.f32 %v7641_v14, %v3806_v1 }
 0x427   : > { %v5046_v29 = vpop.f32.mrf.mxu0 }
 0x428   : > { %v3883_v55 = vadd.f32 %v3882_v40, %v7703_v15  ;;  %v7719_v31 = vadd.f32 %v5046_v29, %v7641_v14 }
 0x429   : > { %v3809_v27 = vpop.f32.mrf.mxu0 }
 0x42a   : > { %v3884_v59 = vadd.f32 %v3883_v55, %v7707_v39  ;;  %v7712_v42 = vadd.f32 %v7641_v14, %v3809_v27 }
 0x42b   : > { %v5049_v11 = vpop.f32.mrf.mxu0 }
 0x42c   : > { %v3885_v2 = vadd.f32 %v3884_v59, %v7712_v42  ;;  %v7731_v38 = vadd.f32 %v5049_v11, %v7641_v14 }
 0x42d   : > { %v3822_v63 = vpop.f32.mrf.mxu0 }
 0x42e   : > { %v3886_v57 = vadd.f32 %v3885_v2, %v7715_v21  ;;  %v7723_v30 = vadd.f32 %v7641_v14, %v3822_v63 }
 0x42f   : > { %v5050_v51 = vpop.f32.mrf.mxu0 }
 0x430   : > { %v3887_v16 = vadd.f32 %v3886_v57, %v7719_v31  ;;  %v7735_v50 = vadd.f32 %v5050_v51, %v7641_v14 }
 0x431   : > { %v3825_v24 = vpop.f32.mrf.mxu0 }
 0x432   : > { %v3888_v36 = vadd.f32 %v3887_v16, %v7723_v30  ;;  %v7728_v47 = vadd.f32 %v7641_v14, %v3825_v24 }
 0x433   : > { %v5053_v32 = vpop.f32.mrf.mxu0 }
 0x434   : > { %v3889_v17 = vadd.f32 %v3888_v36, %v7728_v47  ;;  %v7747_v26 = vadd.f32 %v5053_v32, %v7641_v14 }
 0x435   : > { %v3838_v22 = vpop.f32.mrf.mxu0 }
 0x436   : > { %v3890_v9 = vadd.f32 %v3889_v17, %v7731_v38  ;;  %v7739_v53 = vadd.f32 %v7641_v14, %v3838_v22 }
 0x437   : > { %v5054_v3 = vpop.f32.mrf.mxu0 }
 0x438   : > { %v3891_v44 = vadd.f32 %v3890_v9, %v7735_v50  ;;  %v7751_v41 = vadd.f32 %v5054_v3, %v7641_v14  ;;  %v3915_v9 = vld [vmem:[%s8034_s7] sm:$0x7] }
 0x439   : > { %v3841_v54 = vpop.f32.mrf.mxu0 }
 0x43a   : > { %v3892_v19 = vadd.f32 %v3891_v44, %v7739_v53  ;;  %v7744_v13 = vadd.f32 %v7641_v14, %v3841_v54 }
 0x43b   : > { %v5057_v8 = vpop.f32.mrf.mxu0 }
 0x43c   : > { %v3893_v20 = vadd.f32 %v3892_v19, %v7744_v13  ;;  %v7763_v10 = vadd.f32 %v5057_v8, %v7641_v14 }
 0x43d   : > { %v3854_v33 = vpop.f32.mrf.mxu0 }
 0x43e   : > { %v3894_v12 = vadd.f32 %v3893_v20, %v7747_v26  ;;  %v7755_v23 = vadd.f32 %v7641_v14, %v3854_v33 }
 0x43f   : > { %v5058_v49 = vpop.f32.mrf.mxu0 }
 0x440   : > { %v3895_v58 = vadd.f32 %v3894_v12, %v7751_v41  ;;  %v7767_v4 = vadd.f32 %v5058_v49, %v7641_v14 }
 0x441   : > { %v3857_v52 = vpop.f32.mrf.mxu0 }
 0x442   : > { %v3896_v25 = vadd.f32 %v3895_v58, %v7755_v23  ;;  %v7760_v34 = vadd.f32 %v7641_v14, %v3857_v52 }
 0x444   : > { %v3897_v45 = vadd.f32 %v3896_v25, %v7760_v34 }
 0x446   : > { %v3898_v1 = vadd.f32 %v3897_v45, %v7763_v10 }
 0x448   : > { %v3899_v40 = vadd.f32 %v3898_v1, %v7767_v4 }
 0x44a   : > { %v3900_v29 = vrot.slane %v3899_v40, 4 }
 0x44c   : > { %v3901_v55 = vadd.f32 %v3900_v29, %v3899_v40  ;;  %v8492_v40 = vld [vmem:[#allocation15_spill] sm:$0xff] }
 0x44d   : > { %v3956_v29 = vsub.s32 0, %v8492_v40  ;;  %v5269_v40 = vld [vmem:[%s5669_s23 + $0x70] sm:$0xff] }
 0x44e   : > { %v3902_v27 = vrot.slane %v3901_v55, 2 }
 0x450   : > { %v3903_v59 = vadd.f32 %v3902_v27, %v3901_v55 }
 0x452   : > { %v3904_v11 = vrot.slane %v3903_v59, 1 }
 0x454   : > { %v3905_v2 = vadd.f32 %v3904_v11, %v3903_v59 }
 0x456   : > { %v3907_v63 = vmul.f32 0.00390625, %v3905_v2 }
 0x458   : > { %3909 = vrot.lane.b32.xlu0 %v3907_v63, %s5477_s15  ;;  %s5399_s15 = scalar_lea.vmem %s5398_s21, 8192 }
 0x4ca   : > { %v3910_v57 = vpop.permute.xlu0 %3909 }
 0x4cb   : > { %v3913_v51 = vsel %vm3912_vm4, 0.0, %v3910_v57  ;;  %v3914_v16 = vsel %vm3912_vm4, %v3910_v57, 0.0 }
 0x4cc   : > { %v3921_v24 = vrot.slane %v3914_v16, 7  ;;  %v3920_v14 = vrot.slane %v3913_v51, 7  ;;  %v3935_v36 = vrot.slane %v3914_v16, 6  ;;  %v3934_v32 = vrot.slane %v3913_v51, 6 }
 0x4cd   : > { %v3916_v33 = vmul.f32 %v3915_v9, %v3913_v51 }
 0x4ce   : > { %3924 = vrot.lane.b32.xlu1 %v3921_v24, %s5478_s26  ;;  %3922 = vrot.lane.b32.xlu0 %v3920_v14, %s5478_s26 }
 0x4d2   : > { %3936 = vrot.lane.b32.xlu1 %v3934_v32, %s5479_s10  ;;  %3938 = vrot.lane.b32.xlu0 %v3935_v36, %s5479_s10  ;;  %v5260_v32 = vld [vmem:[%s5669_s23 + $0x28] sm:$0xff] }
 0x540   : > { %v3925_v17 = vpop.permute.xlu1 %3924  ;;  %v3923_v22 = vpop.permute.xlu0 %3922 }
 0x541   : > { %v3927_v3 = vsel %vm3926_vm10, %v3923_v22, %v3925_v17  ;;  %v5261_v22 = vld [vmem:[%s5669_s23 + $0x30] sm:$0xff] }
 0x542   : > { %v3929_v44 = vmul.f32 %v3927_v3, %v3915_v9  ;;  %v5262_v3 = vld [vmem:[%s5669_s23 + $0x38] sm:$0xff] }
 0x544   : > { %v3931_v54 = vrot.slane %v3929_v44, 1  ;;  %v3937_v19 = vpop.permute.xlu1 %3936  ;;  %v3939_v8 = vpop.permute.xlu0 %3938 }
 0x545   : > { %v3941_v20 = vsel %vm3940_vm12, %v3937_v19, %v3939_v8  ;;  %v5264_v8 = vld [vmem:[%s5669_s23 + $0x48] sm:$0xff] }
 0x546   : > { %v3943_v12 = vmul.f32 %v3941_v20, %v3915_v9  ;;  %v3933_v49 = vadd.f32 %v3931_v54, %v3916_v33  ;;  %v5263_v54 = vld [vmem:[%s5669_s23 + $0x40] sm:$0xff]  ;;  %v5265_v33 = vld [vmem:[%s5669_s23 + $0x50] sm:$0xff] }
 0x548   : > { %v3945_v58 = vrot.slane %v3943_v12, 2 }
 0x54a   : > { %v3947_v52 = vadd.f32 %v3945_v58, %v3933_v49  ;;  %v5266_v49 = vld [vmem:[%s5669_s23 + $0x58] sm:$0xff] }
 0x54c   : > { %v4387_v25 = vmul.f32 -1.442695, %v3947_v52  ;;  %v5267_v52 = vld [vmem:[%s5669_s23 + $0x60] sm:$0xff] }
 0x54e   : > { %5251 = vpow2.f32 %v4387_v25 }
 0x55b   : > { %v5252_v45 = vpop.eup %5251 }
 0x55c   : > { %v3951_v1 = vadd.f32 1.0, %v5252_v45  ;;  %v5268_v45 = vld [vmem:[%s5669_s23 + $0x68] sm:$0xff] }
 0x55e   : > { %5253 = vrcp.f32 %v3951_v1 }
 0x56b   : > { %v5254_v55 = vpop.eup %5253 }
 0x56c   : > { %v3957_v27 = vrot.slane %v5254_v55, %v3956_v29  ;;  %v5270_v55 = vld [vmem:[%s5669_s23 + $0x78] sm:$0xff] }
 0x56e   : > { %v3958_v59 = vmul.f32 %v3957_v27, %v7644_v5  ;;  %v3959_v11 = vmul.f32 %v3957_v27, %v7647_v43  ;;  %v3960_v2 = vmul.f32 %v3957_v27, %v7650_v6  ;;  %v3961_v63 = vmul.f32 %v3957_v27, %v7655_v0 }
 0x56f   : > { %v3962_v57 = vmul.f32 %v3957_v27, %v7659_v62  ;;  %v3963_v51 = vmul.f32 %v3957_v27, %v7664_v28  ;;  %v3964_v16 = vmul.f32 %v3957_v27, %v7667_v48  ;;  %v3965_v24 = vmul.f32 %v3957_v27, %v7671_v61 }
 0x570   : > { %v3966_v14 = vmul.f32 %v3957_v27, %v7675_v56  ;;  %v3967_v36 = vmul.f32 %v3957_v27, %v7680_v18  ;;  %v3968_v5 = vmul.f32 %v3957_v27, %v7683_v37  ;;  %v3969_v43 = vmul.f32 %v3957_v27, %v7687_v60 }
 0x571   : > { %v3970_v6 = vmul.f32 %v3957_v27, %v7691_v7  ;;  %v3971_v0 = vmul.f32 %v3957_v27, %v7696_v46  ;;  %v3972_v62 = vmul.f32 %v3957_v27, %v7699_v35  ;;  %v3973_v28 = vmul.f32 %v3957_v27, %v7703_v15 }
 0x572   : > { %v3974_v48 = vmul.f32 %v3957_v27, %v7707_v39  ;;  %v3975_v61 = vmul.f32 %v3957_v27, %v7712_v42  ;;  %v3976_v56 = vmul.f32 %v3957_v27, %v7715_v21  ;;  %v3977_v18 = vmul.f32 %v3957_v27, %v7719_v31 }
 0x573   : > { %v3978_v37 = vmul.f32 %v3957_v27, %v7723_v30  ;;  %v3979_v60 = vmul.f32 %v3957_v27, %v7728_v47  ;;  %v3980_v7 = vmul.f32 %v3957_v27, %v7731_v38  ;;  %v3981_v46 = vmul.f32 %v3957_v27, %v7735_v50  ;;  %v5255_v38 = vld [vmem:[%s5669_s23] sm:$0xff] }
 0x574   : > { %v3982_v35 = vmul.f32 %v3957_v27, %v7739_v53  ;;  %v3983_v15 = vmul.f32 %v3957_v27, %v7744_v13  ;;  %v3984_v39 = vmul.f32 %v3957_v27, %v7747_v26  ;;  %v3985_v42 = vmul.f32 %v3957_v27, %v7751_v41  ;;  %v5256_v53 = vld [vmem:[%s5669_s23 + $0x8] sm:$0xff]  ;;  %v5257_v26 = vld [vmem:[%s5669_s23 + $0x10] sm:$0xff] }
 0x575   : > { %v3986_v21 = vmul.f32 %v3957_v27, %v7755_v23  ;;  %v3987_v31 = vmul.f32 %v3957_v27, %v7760_v34  ;;  %v7806_v30 = vmul.f32 %v3957_v27, %v7763_v10  ;;  %v7809_v47 = vmul.f32 %v3957_v27, %v7767_v4  ;;  %v5258_v23 = vld [vmem:[%s5669_s23 + $0x18] sm:$0xff]  ;;  %v5259_v10 = vld [vmem:[%s5669_s23 + $0x20] sm:$0xff] }
 0x576   : > { %v7812_v50 = vadd.f32 %v5255_v38, %v3958_v59  ;;  %v7815_v13 = vadd.f32 %v5256_v53, %v3959_v11  ;;  %v7818_v41 = vadd.f32 %v5257_v26, %v3960_v2  ;;  %v7821_v34 = vadd.f32 %v5258_v23, %v3961_v63  ;;  %v5271_v59 = vld [vmem:[%s5669_s23 + $0x80] sm:$0xff]  ;;  %v5272_v2 = vld [vmem:[%s5669_s23 + $0x88] sm:$0xff]  ;;  %v5282_v53 = vld [vmem:[%s5669_s23 + $0xd8] sm:$0xff] }
 0x577   : > { %v7824_v4 = vadd.f32 %v5259_v10, %v3962_v57  ;;  %v7827_v17 = vadd.f32 %v5260_v32, %v3963_v51  ;;  %v7830_v9 = vadd.f32 %v5261_v22, %v3964_v16  ;;  %v7833_v44 = vadd.f32 %v5262_v3, %v3965_v24  ;;  %v5273_v57 = vld [vmem:[%s5669_s23 + $0x90] sm:$0xff]  ;;  %v5274_v16 = vld [vmem:[%s5669_s23 + $0x98] sm:$0xff]  ;;  %v5283_v26 = vld [vmem:[%s5669_s23 + $0xe0] sm:$0xff] }
 0x578   : > { %v7836_v19 = vadd.f32 %v5263_v54, %v3966_v14  ;;  %v7839_v20 = vadd.f32 %v5264_v8, %v3967_v36  ;;  %v7842_v12 = vadd.f32 %v5265_v33, %v3968_v5  ;;  %v7845_v58 = vadd.f32 %v5266_v49, %v3969_v43  ;;  %v5275_v14 = vld [vmem:[%s5669_s23 + $0xa0] sm:$0xff]  ;;  %v5276_v5 = vld [vmem:[%s5669_s23 + $0xa8] sm:$0xff]  ;;  %v5286_v32 = vld [vmem:[%s5669_s23 + $0xf8] sm:$0xff] }
 0x579   : > { %v7848_v25 = vadd.f32 %v5267_v52, %v3970_v6  ;;  %v7851_v1 = vadd.f32 %v5268_v45, %v3971_v0  ;;  %v7854_v29 = vadd.f32 %v5269_v40, %v3972_v62  ;;  %v7857_v27 = vadd.f32 %v5270_v55, %v3973_v28  ;;  %v5277_v6 = vld [vmem:[%s5669_s23 + $0xb0] sm:$0xff]  ;;  %v5278_v62 = vld [vmem:[%s5669_s23 + $0xb8] sm:$0xff] }
 0x57a   : > { %v7860_v11 = vadd.f32 %v5271_v59, %v3974_v48  ;;  %v7863_v63 = vadd.f32 %v5272_v2, %v3975_v61  ;;  %v7866_v51 = vadd.f32 %v5273_v57, %v3976_v56  ;;  %v7869_v24 = vadd.f32 %v5274_v16, %v3977_v18  ;;  %v5279_v48 = vld [vmem:[%s5669_s23 + $0xc0] sm:$0xff]  ;;  %v5280_v56 = vld [vmem:[%s5669_s23 + $0xc8] sm:$0xff] }
 0x57b   : > { %v7872_v36 = vadd.f32 %v5275_v14, %v3978_v37  ;;  %v7875_v43 = vadd.f32 %v5276_v5, %v3979_v60  ;;  %v7878_v0 = vadd.f32 %v5277_v6, %v3980_v7  ;;  %v7881_v28 = vadd.f32 %v5278_v62, %v3981_v46  ;;  %v5281_v37 = vld [vmem:[%s5669_s23 + $0xd0] sm:$0xff]  ;;  %v5284_v7 = vld [vmem:[%s5669_s23 + $0xe8] sm:$0xff] }
 0x57c   : > { %v7884_v61 = vadd.f32 %v5279_v48, %v3982_v35  ;;  %v7887_v18 = vadd.f32 %v5280_v56, %v3983_v15  ;;  %v7890_v38 = vadd.f32 %v5281_v37, %v3984_v39  ;;  %v7893_v60 = vadd.f32 %v5282_v53, %v3985_v42  ;;  %v5285_v46 = vld [vmem:[%s5669_s23 + $0xf0] sm:$0xff]  ;;  %s4100_s23 = sshll.u32 %s7923_s20, 4  ;;  %s7968_s23 = int_to_ptr.vmem [resolvable:$true] %s4100_s23 }
 0x57d   : > { %v7896_v23 = vadd.f32 %v5283_v26, %v3986_v21  ;;  %v7899_v10 = vadd.f32 %v5284_v7, %v3987_v31  ;;  %v7903_v35 = vadd.f32 %v5285_v46, %v7806_v30  ;;  %v7907_v15 = vadd.f32 %v5286_v32, %v7809_v47  ;;  %s5393_s17 = scalar_lea.vmem %s7968_s23, 4096  ;;  %p5400_p5 = scmp.lt.s32.totalorder %s7968_s23, %s5398_s21 }
 0x57e   : > { %v4022_v39 = vmax.f32 %v7812_v50, 0.0  ;;  %v4023_v42 = vmax.f32 %v7815_v13, 0.0  ;;  %v4024_v22 = vmax.f32 %v7818_v41, 0.0  ;;  %v4025_v21 = vmax.f32 %v7821_v34, 0.0  ;;  %p5394_p4 = scmp.ne.s32.totalorder %s7968_s23, %s5393_s17  ;;  %p5401_p3 = scmp.lt.s32.totalorder %s5399_s15, %s5393_s17 }
 0x57f   : > { %v4026_v31 = vmax.f32 %v7824_v4, 0.0  ;;  %v4027_v3 = vmax.f32 %v7827_v17, 0.0  ;;  %v4028_v54 = vmax.f32 %v7830_v9, 0.0  ;;  %v4029_v30 = vmax.f32 %v7833_v44, 0.0 }
 0x580   : > { %v4030_v8 = vmax.f32 %v7836_v19, 0.0  ;;  %v4031_v47 = vmax.f32 %v7839_v20, 0.0  ;;  %v4032_v50 = vmax.f32 %v7842_v12, 0.0  ;;  %v4033_v13 = vmax.f32 %v7845_v58, 0.0  ;;  %4054 = vst [vmem:[%s7923_s20] sm:$0xff] %v4022_v39  ;;  %4055 = vst [vmem:[%s7923_s20 + $0x8] sm:$0xff] %v4023_v42  ;;  %p5395_p12 = pnand %p5394_p4, %p8493_p6  ;;  %p5402_p7 = por %p5401_p3, %p5400_p5 }
 0x581   : > { %4056 = vst [vmem:[%s7923_s20 + $0x10] sm:$0xff] %v4024_v22  ;;  %4057 = vst [vmem:[%s7923_s20 + $0x18] sm:$0xff] %v4025_v21  ;;  %v4034_v41 = vmax.f32 %v7848_v25, 0.0  ;;  %v4035_v34 = vmax.f32 %v7851_v1, 0.0  ;;  %v4036_v4 = vmax.f32 %v7854_v29, 0.0  ;;  %v4037_v17 = vmax.f32 %v7857_v27, 0.0 }
 0x582   : > { %4058 = vst [vmem:[%s7923_s20 + $0x20] sm:$0xff] %v4026_v31  ;;  %4059 = vst [vmem:[%s7923_s20 + $0x28] sm:$0xff] %v4027_v3  ;;  %v4038_v9 = vmax.f32 %v7860_v11, 0.0  ;;  %v4039_v44 = vmax.f32 %v7863_v63, 0.0  ;;  %v4040_v19 = vmax.f32 %v7866_v51, 0.0  ;;  %v4041_v20 = vmax.f32 %v7869_v24, 0.0  ;;  %p5396_p0 = pneg %p5395_p12 }
 0x583   : > { %4060 = vst [vmem:[%s7923_s20 + $0x30] sm:$0xff] %v4028_v54  ;;  %4061 = vst [vmem:[%s7923_s20 + $0x38] sm:$0xff] %v4029_v30  ;;  %v4042_v33 = vmax.f32 %v7872_v36, 0.0  ;;  %v4043_v12 = vmax.f32 %v7875_v43, 0.0  ;;  %v4044_v49 = vmax.f32 %v7878_v0, 0.0  ;;  %v4045_v58 = vmax.f32 %v7881_v28, 0.0 }
 0x584   : > { %4062 = vst [vmem:[%s7923_s20 + $0x40] sm:$0xff] %v4030_v8  ;;  %4063 = vst [vmem:[%s7923_s20 + $0x48] sm:$0xff] %v4031_v47  ;;  %v4046_v52 = vmax.f32 %v7884_v61, 0.0  ;;  %v4047_v25 = vmax.f32 %v7887_v18, 0.0  ;;  %v4048_v45 = vmax.f32 %v7890_v38, 0.0  ;;  %v4049_v1 = vmax.f32 %v7893_v60, 0.0  ;;  %p5403_p9 = pnand %p5402_p7, %p5396_p0 }
 0x585   : > { %4064 = vst [vmem:[%s7923_s20 + $0x50] sm:$0xff] %v4032_v50  ;;  %4065 = vst [vmem:[%s7923_s20 + $0x58] sm:$0xff] %v4033_v13  ;;  %v4050_v40 = vmax.f32 %v7896_v23, 0.0  ;;  %v4051_v29 = vmax.f32 %v7899_v10, 0.0  ;;  %v4052_v55 = vmax.f32 %v7903_v35, 0.0  ;;  %v4053_v27 = vmax.f32 %v7907_v15, 0.0 }
 0x586   : > { %4066 = vst [vmem:[%s7923_s20 + $0x60] sm:$0xff] %v4034_v41  ;;  %4067 = vst [vmem:[%s7923_s20 + $0x68] sm:$0xff] %v4035_v34 }
 0x587   : > { %4068 = vst [vmem:[%s7923_s20 + $0x70] sm:$0xff] %v4036_v4  ;;  %4069 = vst [vmem:[%s7923_s20 + $0x78] sm:$0xff] %v4037_v17 }
 0x588   : > { %4070 = vst [vmem:[%s7923_s20 + $0x80] sm:$0xff] %v4038_v9  ;;  %4071 = vst [vmem:[%s7923_s20 + $0x88] sm:$0xff] %v4039_v44 }
 0x589   : > { %4072 = vst [vmem:[%s7923_s20 + $0x90] sm:$0xff] %v4040_v19  ;;  %4073 = vst [vmem:[%s7923_s20 + $0x98] sm:$0xff] %v4041_v20 }
 0x58a   : > { %4074 = vst [vmem:[%s7923_s20 + $0xa0] sm:$0xff] %v4042_v33  ;;  %4075 = vst [vmem:[%s7923_s20 + $0xa8] sm:$0xff] %v4043_v12 }
 0x58b   : > { %4076 = vst [vmem:[%s7923_s20 + $0xb0] sm:$0xff] %v4044_v49  ;;  %4077 = vst [vmem:[%s7923_s20 + $0xb8] sm:$0xff] %v4045_v58 }
 0x58c   : > { %4078 = vst [vmem:[%s7923_s20 + $0xc0] sm:$0xff] %v4046_v52  ;;  %4079 = vst [vmem:[%s7923_s20 + $0xc8] sm:$0xff] %v4047_v25 }
 0x58d   : > { %4080 = vst [vmem:[%s7923_s20 + $0xd0] sm:$0xff] %v4048_v45  ;;  %4081 = vst [vmem:[%s7923_s20 + $0xd8] sm:$0xff] %v4049_v1 }
 0x58e   : > { %4082 = vst [vmem:[%s7923_s20 + $0xe0] sm:$0xff] %v4050_v40  ;;  %4083 = vst [vmem:[%s7923_s20 + $0xe8] sm:$0xff] %v4051_v29 }
 0x58f   : > { %4084 = vst [vmem:[%s7923_s20 + $0xf0] sm:$0xff] %v4052_v55  ;;  %4085 = vst [vmem:[%s7923_s20 + $0xf8] sm:$0xff] %v4053_v27 }
 0x590   : > { %5406 = shalt.err (!%p5403_p9)
}
 0x591   : > { %s5407_s26 = scalar_lea.hbm %s7966_s13, 4096  ;;  %s5411_s22 = scalar_lea.hbm %s8035_s8, 8192 }
 0x592   : > { %p5408_p1 = scmp.ne.s32.totalorder %s7966_s13, %s5407_s26  ;;  %p5412_p11 = scmp.lt.s32.totalorder %s7966_s13, %s8035_s8 }
 0x593   : > { %p5413_p13 = scmp.lt.s32.totalorder %s5411_s22, %s5407_s26 }
 0x594   : > { %p5409_p8 = pnand %p5408_p1, %p8493_p6 }
 0x595   : > { %p5414_p2 = por %p5413_p13, %p5412_p11 }
 0x596   : > { %p5410_p10 = pneg %p5409_p8 }
 0x598   : > { %p5415_p4 = pnand %p5414_p2, %p5410_p10 }
 0x59a   : > { %5418 = shalt.err (!%p5415_p4)
}
 0x59b   : > { %s5481_s9 = smov 128   ;;  %s5482_s11 = smov 8  }
 0x59c   : > { %5089 = dma.vmem_to_hbm [thread:$0]  (%p8493_p6), %s7968_s23, 4096, %s7966_s13, %s4087_s14, %s5481_s9, %s5481_s9, %s5482_s11  }
 0x59d PF: > { %s4115_s17 = sand.u32 1, %s5453_s27   ;;  %p8494_p12 = scmp.ne.s32.totalorder %s8109_s12, 0 }
 0x59e   : > { %p8495_p0 = scmp.ge.s32.totalorder %s5465_s30, 2  ;;  %s4116_s19 = scalar_lea.sflag [#allocation4], %s4115_s17 }
 0x5a0   : > { %p5106_p5 = pnand %p8495_p0, %p8494_p12 }
 0x5a2   : > { %p5107_p3 = pneg %p5106_p5 }
 0x5a4   : > { %5448 = dma.done.wait (%p5107_p3), %s4116_s19, 4096  }
 0x5a5   : > { %5450 = vsyncadd (%p5107_p3), %s4116_s19, 4294963200  ;;  %p23_p7 = scmp.ge.s32.totalorder %s5608_s18, 4   ;;  %s8496_s27 = smov %s5457_s28 }
 0x5a6   : > { %s8497_s28 = smov %s5461_s29  ;;  %s8498_s29 = smov %s5618_s24 }
 0x5a7   : > { %s8499_s30 = smov %s5608_s18  ;;  %25 = sbr.rel (!%p23_p7) target bundleno = 10 (0xa), region = 109 }
 0x5ac   :  { %4121 = vsyncpa [#allocation3], 1 }
 0x5ad   :  { %4123 = vsyncpa [#allocation3 + $0x1], 1 }
 0x5ae   :  { %4124 = vsyncpa [#allocation6], 1 }
 0x5af   :  { %4125 = vsyncpa [#allocation9], 1 }
 0x5b0   :  { %4126 = vsyncpa [#allocation4], 1 }
 0x5b1   :  { %4128 = vsyncpa [#allocation4 + $0x1], 1 }

</bundles_post_ra>
